<compile_context>
chip_gen: v5e
topology: v5e:2x2
jax: 0.10.0
libtpu: 0.0.40
codegen_flags: <defaults>
</compile_context>

<pallas_src>
import jax
import jax.numpy as jnp
from jax.experimental import pallas as pl
from jax.experimental.pallas import tpu as pltpu

IN_DIM = 512
LAYER_DIMS = [512, 1024, 256]
OUT_DIM = 10
OUT_PAD = 128  # lane-dense padded output width; real logits are [:, :OUT_DIM]


def _fused_mlp_kernel(x_ref,
                      w0_ref, b0_ref,
                      w1_ref, b1_ref,
                      w2_ref, b2_ref,
                      w3_ref, b3_ref,
                      o_ref):
    """Whole MLP forward on one (tm, 512) activation tile, all in VMEM."""

    def layer(h, w_ref, b_ref, relu):
        # bf16 operands -> MXU, f32 accumulation.
        acc = jnp.dot(h.astype(jnp.bfloat16), w_ref[...],
                      preferred_element_type=jnp.float32)
        acc = acc + b_ref[...]          # (1, N) broadcasts over rows, f32
        if relu:
            acc = jnp.maximum(acc, 0.0)
        return acc

    h = x_ref[...]                       # (tm, 512) f32
    h = layer(h, w0_ref, b0_ref, True)   # (tm, 512)
    h = layer(h, w1_ref, b1_ref, True)   # (tm, 1024)
    h = layer(h, w2_ref, b2_ref, True)   # (tm, 256)
    h = layer(h, w3_ref, b3_ref, False)  # (tm, 128) padded logits
    o_ref[...] = h.astype(o_ref.dtype)


def _pick_tile(m):
    """Largest clean batch tile: 256/128 if they divide M, else the whole batch."""
    for tm in (256, 128):
        if m >= tm and m % tm == 0:
            return tm
    return m


def fused_mlp(x, params):
    """x: (M, 512) f32; params: [(w_bf16 (K,N), b_f32 (1,N)), ...] (last N=128).

    Returns padded logits (M, 128); caller slices [:, :OUT_DIM].
    """
    M, K = x.shape
    assert K == IN_DIM

    tm = _pick_tile(M)
    grid = (M // tm,)

    in_specs = [pl.BlockSpec((tm, IN_DIM), lambda i: (i, 0))]
    flat_args = [x]
    for (w, b) in params:
        kd, nd = w.shape
        # Same block index every grid step -> weights stay resident in VMEM.
        in_specs.append(pl.BlockSpec((kd, nd), lambda i: (0, 0)))
        in_specs.append(pl.BlockSpec((1, nd), lambda i: (0, 0)))
        flat_args.extend([w, b])

    # Advisory cost: 2*M*K*N flops per layer; bytes ~ weights + biases + x + out.
    layer_kn = sum(w.shape[0] * w.shape[1] for w, _ in params)
    flops = 2 * M * layer_kn
    bytes_accessed = (
        sum(w.size * w.dtype.itemsize + b.size * b.dtype.itemsize
            for w, b in params)
        + x.size * x.dtype.itemsize
        + M * OUT_PAD * 4
    )

    return pl.pallas_call(
        _fused_mlp_kernel,
        out_shape=jax.ShapeDtypeStruct((M, OUT_PAD), jnp.float32),
        grid=grid,
        in_specs=in_specs,
        out_specs=pl.BlockSpec((tm, OUT_PAD), lambda i: (i, 0)),
        compiler_params=pltpu.CompilerParams(
            dimension_semantics=("parallel",),
            # ~2.2 MB bf16 weights (double-buffered) + activation tiles; 32 MiB
            # leaves large headroom yet stays portable to v7x (64 MiB VMEM).
            vmem_limit_bytes=32 * 1024 * 1024,
        ),
        cost_estimate=pl.CostEstimate(
            flops=flops, transcendentals=0, bytes_accessed=bytes_accessed),
    )(*flat_args)


def init_params(key):
    """Deterministic PyTorch-Linear-like init; weights stored bf16 as (K, N).

    Final layer is zero-padded from 10 -> 128 output lanes.
    """
    params = []
    dims = [IN_DIM] + LAYER_DIMS + [OUT_DIM]
    for i in range(len(dims) - 1):
        d_in, d_out = dims[i], dims[i + 1]
        key, kw, kb = jax.random.split(key, 3)
        bound = 1.0 / (d_in ** 0.5)
        w = jax.random.uniform(kw, (d_in, d_out), jnp.float32, -bound, bound)
        b = jax.random.uniform(kb, (1, d_out), jnp.float32, -bound, bound)
        if d_out == OUT_DIM:  # pad output projection to a lane-dense 128 slab
            w = jnp.pad(w, ((0, 0), (0, OUT_PAD - OUT_DIM)))
            b = jnp.pad(b, ((0, 0), (0, OUT_PAD - OUT_DIM)))
        params.append((w.astype(jnp.bfloat16), b))
    return params


@jax.jit
def my_network_forward(x, params):
    out_padded = fused_mlp(x, params)
    return out_padded[:, :OUT_DIM]


def _reference_forward(x, params):
    """Pure-JAX reference using the same bf16 weights / f32 accumulation."""
    h = x
    n = len(params)
    for i, (w, b) in enumerate(params):
        h = jnp.dot(h.astype(jnp.bfloat16), w,
                    preferred_element_type=jnp.float32) + b
        if i < n - 1:
            h = jnp.maximum(h, 0.0)
    return h[:, :OUT_DIM]


if __name__ == "__main__":
    key = jax.random.PRNGKey(0)
    key, kx = jax.random.split(key)

    batch = 8
    x = jax.random.normal(kx, (batch, IN_DIM), jnp.float32)
    params = init_params(key)

    out = my_network_forward(x, params)
    out = jax.block_until_ready(out)
    assert out.shape == (batch, OUT_DIM), out.shape

    ref = _reference_forward(x, params)
    assert jnp.allclose(out, ref, atol=1e-2, rtol=1e-2), (
        float(jnp.max(jnp.abs(out - ref)))
    )

    print("KERNEL_OK")
</pallas_src>

<mosaic_0001>
module attributes {stable_mosaic.version = 11 : i64} {
  func.func @_fused_mlp_kernel(%arg0: i32, %arg1: memref<8x512xf32, #tpu.memory_space<vmem>>, %arg2: memref<512x512xbf16, #tpu.memory_space<vmem>>, %arg3: memref<1x512xf32, #tpu.memory_space<vmem>>, %arg4: memref<512x1024xbf16, #tpu.memory_space<vmem>>, %arg5: memref<1x1024xf32, #tpu.memory_space<vmem>>, %arg6: memref<1024x256xbf16, #tpu.memory_space<vmem>>, %arg7: memref<1x256xf32, #tpu.memory_space<vmem>>, %arg8: memref<256x128xbf16, #tpu.memory_space<vmem>>, %arg9: memref<1x128xf32, #tpu.memory_space<vmem>>, %arg10: memref<8x128xf32, #tpu.memory_space<vmem>>) attributes {dimension_semantics = [#tpu.dimension_semantics<parallel>], iteration_bounds = array<i64: 1>, scalar_prefetch = 0 : i64, scratch_operands = 0 : i64, tpu.core_type = #tpu.core_type<tc>, window_params = [{transform_indices = @transform_0, window_bounds = array<i64: 8, 512>}, {pipeline_mode = #tpu.pipeline_mode<synchronous>, transform_indices = @transform_1, window_bounds = array<i64: 512, 512>}, {pipeline_mode = #tpu.pipeline_mode<synchronous>, transform_indices = @transform_2, window_bounds = array<i64: 1, 512>}, {pipeline_mode = #tpu.pipeline_mode<synchronous>, transform_indices = @transform_3, window_bounds = array<i64: 512, 1024>}, {pipeline_mode = #tpu.pipeline_mode<synchronous>, transform_indices = @transform_4, window_bounds = array<i64: 1, 1024>}, {pipeline_mode = #tpu.pipeline_mode<synchronous>, transform_indices = @transform_5, window_bounds = array<i64: 1024, 256>}, {pipeline_mode = #tpu.pipeline_mode<synchronous>, transform_indices = @transform_6, window_bounds = array<i64: 1, 256>}, {pipeline_mode = #tpu.pipeline_mode<synchronous>, transform_indices = @transform_7, window_bounds = array<i64: 256, 128>}, {pipeline_mode = #tpu.pipeline_mode<synchronous>, transform_indices = @transform_8, window_bounds = array<i64: 1, 128>}, {transform_indices = @transform_9, window_bounds = array<i64: 8, 128>}]} {
    %c0 = arith.constant 0 : index
    %c0_0 = arith.constant 0 : index
    %0 = vector.load %arg1[%c0, %c0_0] : memref<8x512xf32, #tpu.memory_space<vmem>>, vector<8x512xf32>
    %1 = arith.truncf %0 : vector<8x512xf32> to vector<8x512xbf16>
    %c0_1 = arith.constant 0 : index
    %c0_2 = arith.constant 0 : index
    %2 = vector.load %arg2[%c0_1, %c0_2] : memref<512x512xbf16, #tpu.memory_space<vmem>>, vector<512x512xbf16>
    %cst = arith.constant dense<0.000000e+00> : vector<8x512xf32>
    %3 = tpu.matmul %1, %2, %cst {dimension_numbers = #tpu.dot_dimension_numbers<[1], [0], [0], [1], [0, 0, 1, 1], [], []>} : vector<8x512xbf16>, vector<512x512xbf16>, vector<8x512xf32> -> vector<8x512xf32>
    %c0_3 = arith.constant 0 : index
    %c0_4 = arith.constant 0 : index
    %4 = vector.load %arg3[%c0_3, %c0_4] : memref<1x512xf32, #tpu.memory_space<vmem>>, vector<1x512xf32>
    %5 = vector.broadcast %4 : vector<1x512xf32> to vector<8x512xf32>
    %6 = arith.addf %3, %5 : vector<8x512xf32>
    %cst_5 = arith.constant 0.000000e+00 : f32
    %7 = vector.broadcast %cst_5 : f32 to vector<8x512xf32>
    %8 = arith.maximumf %6, %7 : vector<8x512xf32>
    %9 = arith.truncf %8 : vector<8x512xf32> to vector<8x512xbf16>
    %c0_6 = arith.constant 0 : index
    %c0_7 = arith.constant 0 : index
    %10 = vector.load %arg4[%c0_6, %c0_7] : memref<512x1024xbf16, #tpu.memory_space<vmem>>, vector<512x1024xbf16>
    %cst_8 = arith.constant dense<0.000000e+00> : vector<8x1024xf32>
    %11 = tpu.matmul %9, %10, %cst_8 {dimension_numbers = #tpu.dot_dimension_numbers<[1], [0], [0], [1], [0, 0, 1, 1], [], []>} : vector<8x512xbf16>, vector<512x1024xbf16>, vector<8x1024xf32> -> vector<8x1024xf32>
    %c0_9 = arith.constant 0 : index
    %c0_10 = arith.constant 0 : index
    %12 = vector.load %arg5[%c0_9, %c0_10] : memref<1x1024xf32, #tpu.memory_space<vmem>>, vector<1x1024xf32>
    %13 = vector.broadcast %12 : vector<1x1024xf32> to vector<8x1024xf32>
    %14 = arith.addf %11, %13 : vector<8x1024xf32>
    %cst_11 = arith.constant 0.000000e+00 : f32
    %15 = vector.broadcast %cst_11 : f32 to vector<8x1024xf32>
    %16 = arith.maximumf %14, %15 : vector<8x1024xf32>
    %17 = arith.truncf %16 : vector<8x1024xf32> to vector<8x1024xbf16>
    %c0_12 = arith.constant 0 : index
    %c0_13 = arith.constant 0 : index
    %18 = vector.load %arg6[%c0_12, %c0_13] : memref<1024x256xbf16, #tpu.memory_space<vmem>>, vector<1024x256xbf16>
    %cst_14 = arith.constant dense<0.000000e+00> : vector<8x256xf32>
    %19 = tpu.matmul %17, %18, %cst_14 {dimension_numbers = #tpu.dot_dimension_numbers<[1], [0], [0], [1], [0, 0, 1, 1], [], []>} : vector<8x1024xbf16>, vector<1024x256xbf16>, vector<8x256xf32> -> vector<8x256xf32>
    %c0_15 = arith.constant 0 : index
    %c0_16 = arith.constant 0 : index
    %20 = vector.load %arg7[%c0_15, %c0_16] : memref<1x256xf32, #tpu.memory_space<vmem>>, vector<1x256xf32>
    %21 = vector.broadcast %20 : vector<1x256xf32> to vector<8x256xf32>
    %22 = arith.addf %19, %21 : vector<8x256xf32>
    %cst_17 = arith.constant 0.000000e+00 : f32
    %23 = vector.broadcast %cst_17 : f32 to vector<8x256xf32>
    %24 = arith.maximumf %22, %23 : vector<8x256xf32>
    %25 = arith.truncf %24 : vector<8x256xf32> to vector<8x256xbf16>
    %c0_18 = arith.constant 0 : index
    %c0_19 = arith.constant 0 : index
    %26 = vector.load %arg8[%c0_18, %c0_19] : memref<256x128xbf16, #tpu.memory_space<vmem>>, vector<256x128xbf16>
    %cst_20 = arith.constant dense<0.000000e+00> : vector<8x128xf32>
    %27 = tpu.matmul %25, %26, %cst_20 {dimension_numbers = #tpu.dot_dimension_numbers<[1], [0], [0], [1], [0, 0, 1, 1], [], []>} : vector<8x256xbf16>, vector<256x128xbf16>, vector<8x128xf32> -> vector<8x128xf32>
    %c0_21 = arith.constant 0 : index
    %c0_22 = arith.constant 0 : index
    %28 = vector.load %arg9[%c0_21, %c0_22] : memref<1x128xf32, #tpu.memory_space<vmem>>, vector<1x128xf32>
    %29 = vector.broadcast %28 : vector<1x128xf32> to vector<8x128xf32>
    %30 = arith.addf %27, %29 : vector<8x128xf32>
    %c0_23 = arith.constant 0 : index
    %c0_24 = arith.constant 0 : index
    %31 = vector.load %arg10[%c0_23, %c0_24] : memref<8x128xf32, #tpu.memory_space<vmem>>, vector<8x128xf32>
    tpu.vector_store %arg10[%c0_23, %c0_24], %30 {strides = array<i32>} : memref<8x128xf32, #tpu.memory_space<vmem>>, vector<8x128xf32>,
    return
  }
  func.func @transform_0(%arg0: i32) -> (i32, i32) {
    %c0_i32 = arith.constant 0 : i32
    %c0_i32_0 = arith.constant 0 : i32
    return %arg0, %c0_i32 : i32, i32
  }
  func.func @transform_1(%arg0: i32) -> (i32, i32) {
    %c0_i32 = arith.constant 0 : i32
    %c0_i32_0 = arith.constant 0 : i32
    %c0_i32_1 = arith.constant 0 : i32
    return %c0_i32, %c0_i32_0 : i32, i32
  }
  func.func @transform_2(%arg0: i32) -> (i32, i32) {
    %c0_i32 = arith.constant 0 : i32
    %c0_i32_0 = arith.constant 0 : i32
    %c0_i32_1 = arith.constant 0 : i32
    return %c0_i32, %c0_i32_0 : i32, i32
  }
  func.func @transform_3(%arg0: i32) -> (i32, i32) {
    %c0_i32 = arith.constant 0 : i32
    %c0_i32_0 = arith.constant 0 : i32
    %c0_i32_1 = arith.constant 0 : i32
    return %c0_i32, %c0_i32_0 : i32, i32
  }
  func.func @transform_4(%arg0: i32) -> (i32, i32) {
    %c0_i32 = arith.constant 0 : i32
    %c0_i32_0 = arith.constant 0 : i32
    %c0_i32_1 = arith.constant 0 : i32
    return %c0_i32, %c0_i32_0 : i32, i32
  }
  func.func @transform_5(%arg0: i32) -> (i32, i32) {
    %c0_i32 = arith.constant 0 : i32
    %c0_i32_0 = arith.constant 0 : i32
    %c0_i32_1 = arith.constant 0 : i32
    return %c0_i32, %c0_i32_0 : i32, i32
  }
  func.func @transform_6(%arg0: i32) -> (i32, i32) {
    %c0_i32 = arith.constant 0 : i32
    %c0_i32_0 = arith.constant 0 : i32
    %c0_i32_1 = arith.constant 0 : i32
    return %c0_i32, %c0_i32_0 : i32, i32
  }
  func.func @transform_7(%arg0: i32) -> (i32, i32) {
    %c0_i32 = arith.constant 0 : i32
    %c0_i32_0 = arith.constant 0 : i32
    %c0_i32_1 = arith.constant 0 : i32
    return %c0_i32, %c0_i32_0 : i32, i32
  }
  func.func @transform_8(%arg0: i32) -> (i32, i32) {
    %c0_i32 = arith.constant 0 : i32
    %c0_i32_0 = arith.constant 0 : i32
    %c0_i32_1 = arith.constant 0 : i32
    return %c0_i32, %c0_i32_0 : i32, i32
  }
  func.func @transform_9(%arg0: i32) -> (i32, i32) {
    %c0_i32 = arith.constant 0 : i32
    %c0_i32_0 = arith.constant 0 : i32
    return %arg0, %c0_i32 : i32, i32
  }
}

</mosaic_0001>

<bundles_post_ra>
// kernel: my_network_forward.1
= control target key start
LH: loop header
LB: loop body
LE: loop exit
PB: predicated region body
PF: predicated region fallthrough
CT: control target
= control target key end

     0   :  { %14 = vsyncpa [#allocation3], 0  ;;  %s7424_s0 = inlined_call_operand.hbm [shape: f32[8,512], index: 0, kind: input, shape index: {}]   ;;  %s7425_s1 = inlined_call_operand.hbm [shape: bf16[512,512], index: 1, kind: input, shape index: {}]   ;;  %s7426_s2 = inlined_call_operand.hbm [shape: f32[1,512], index: 2, kind: input, shape index: {}]   ;;  %s7427_s3 = inlined_call_operand.hbm [shape: bf16[512,1024], index: 3, kind: input, shape index: {}]   ;;  %s7428_s4 = inlined_call_operand.hbm [shape: f32[1,1024], index: 4, kind: input, shape index: {}]   ;;  %s7429_s5 = inlined_call_operand.hbm [shape: bf16[1024,256], index: 5, kind: input, shape index: {}]   ;;  %s7430_s6 = inlined_call_operand.vmem [shape: f32[1,256], index: 6, kind: input, shape index: {}]   ;;  %s7431_s7 = inlined_call_operand.hbm [shape: bf16[256,128], index: 7, kind: input, shape index: {}]   ;;  %s7432_s8 = inlined_call_operand.vmem [shape: f32[1,128], index: 8, kind: input, shape index: {}]   ;;  %s7433_s9 = inlined_call_operand.hbm [shape: f32[8,128], index: 9, kind: output, shape index: {}]  }
   0x1   :  { %15 = vsyncpa [#allocation6], 0 }
   0x2   :  { %16 = vsyncpa [#allocation9], 0 }
   0x3   :  { %17 = vsyncpa [#allocation12], 0  ;;  %s34_s11 = sshll.u32 %s7425_s1, 4  ;;  %s35_s11 = int_to_ptr.hbm [resolvable:$true] %s34_s11 }
   0x4   :  { %18 = vsyncpa [#allocation4], 0  ;;  %s7149_s12 = smov [#allocation5]   ;;  %s58_s16 = sshll.u32 %s7427_s3, 4  ;;  %s59_s16 = int_to_ptr.hbm [resolvable:$true] %s58_s16 }
   0x5   :  { %s36_s13 = sshll.u32 %s7149_s12, 4  ;;  %s7150_s17 = smov 256   ;;  %s37_s13 = int_to_ptr.vmem [resolvable:$true] %s36_s13 }
   0x6   :  { %s7151_s18 = smov 16   ;;  %s7152_s19 = smov [#allocation8]  }
   0x7   :  { %42 = dma.hbm_to_vmem [thread:$0]  %s35_s11, 16384, %s37_s13, [#allocation6], %s7150_s17, %s7150_s17, %s7151_s18  }
   0x8   :  { %s60_s20 = sshll.u32 %s7152_s19, 4  ;;  %s7153_s21 = smov 512   ;;  %s61_s20 = int_to_ptr.vmem [resolvable:$true] %s60_s20 }
   0x9   :  { %s7154_s22 = smov 32   ;;  %s82_s24 = sshll.u32 %s7429_s5, 4  ;;  %s83_s24 = int_to_ptr.hbm [resolvable:$true] %s82_s24 }
   0xa   :  { %66 = dma.hbm_to_vmem [thread:$0]  %s59_s16, 32768, %s61_s20, [#allocation9], %s7153_s21, %s7153_s21, %s7154_s22  }
   0xb   :  { %s7155_s25 = smov [#allocation11]   ;;  %s24_s28 = sshll.u32 %s7424_s0, 4  ;;  %s25_s28 = int_to_ptr.hbm [resolvable:$true] %s24_s28 }
   0xc   :  { %s84_s26 = sshll.u32 %s7155_s25, 4  ;;  %s7156_s29 = smov 128   ;;  %s85_s26 = int_to_ptr.vmem [resolvable:$true] %s84_s26 }
   0xd   :  { %s7157_s30 = smov 8   ;;  %s7158_s10 = smov [#allocation2]  }
   0xe   :  { %90 = dma.hbm_to_vmem [thread:$0]  %s83_s24, 16384, %s85_s26, [#allocation12], %s7156_s29, %s7156_s29, %s7157_s30  }
   0xf   :  { %s26_s11 = sshll.u32 %s7158_s10, 4  ;;  %s48_s14 = sshll.u32 %s7426_s2, 4  ;;  %s27_s11 = int_to_ptr.vmem [resolvable:$true] %s26_s11  ;;  %s49_s14 = int_to_ptr.hbm [resolvable:$true] %s48_s14 }
  0x10   :  { %29 = dma.hbm_to_vmem [thread:$0]  %s25_s28, 512, %s27_s11, [#allocation3]  }
  0x11   :  { %s72_s16 = sshll.u32 %s7428_s4, 4  ;;  %s7159_s17 = smov [#allocation7]   ;;  %s73_s16 = int_to_ptr.hbm [resolvable:$true] %s72_s16 }
  0x12   :  { %s50_s18 = sshll.u32 %s7159_s17, 4  ;;  %s7160_s0 = smov [#allocation10]   ;;  %s51_s18 = int_to_ptr.vmem [resolvable:$true] %s50_s18 }
  0x13   :  { %53 = dma.hbm_to_vmem [thread:$0]  %s49_s14, 64, %s51_s18, [#allocation6]  }
  0x14   :  { %s74_s19 = sshll.u32 %s7160_s0, 4  ;;  %s97_s22 = sshll.u32 %s7431_s7, 4  ;;  %s75_s19 = int_to_ptr.vmem [resolvable:$true] %s74_s19  ;;  %s98_s22 = int_to_ptr.hbm [resolvable:$true] %s97_s22 }
  0x15   :  { %77 = dma.hbm_to_vmem [thread:$0]  %s73_s16, 128, %s75_s19, [#allocation9]  }
  0x16   :  { %s7161_s2 = smov [#allocation13]   ;;  %s7162_s23 = smov 64  }
  0x17   :  { %s99_s1 = sshll.u32 %s7161_s2, 4  ;;  %s7163_s24 = smov 4   ;;  %s100_s1 = int_to_ptr.vmem [resolvable:$true] %s99_s1 }
  0x18   :  { %105 = dma.hbm_to_vmem [thread:$0]  %s98_s22, 2048, %s100_s1, [#allocation12], %s7162_s23, %s7162_s23, %s7163_s24  }
  0x19   :  { %7139 = dma.done.wait [#allocation3], 512  }
  0x1a   :  { %7140 = vsyncadd [#allocation3], 4294966784 }
  0x1b   :  { %7141 = dma.done.wait [#allocation6], 16448  }
  0x1c   :  { %7142 = vsyncadd [#allocation6], 4294950848 }
  0x1d   :  { %7143 = dma.done.wait [#allocation9], 32896  }
  0x1e   :  { %7144 = vsyncadd [#allocation9], 4294934400 }
  0x1f   :  { %7145 = dma.done.wait [#allocation12], 18432  }
  0x20   :  { %7146 = vsyncadd [#allocation12], 4294948864  ;;  %v4403_v0 = vld [vmem:[#allocation5 + $0xe0] sm:$0xf]  ;;  %v6431_v1 = vld [vmem:[#allocation5 + $0xec] sm:$0xf0] }
  0x21   :  { %v4531_v2 = vld [vmem:[#allocation5 + $0x1e0] sm:$0xf]  ;;  %v4404_v3 = vor.u32 %v6431_v1, %v4403_v0  ;;  %v6463_v4 = vld [vmem:[#allocation5 + $0x1ec] sm:$0xf0]  ;;  %s7164_s26 = smov [#allocation14]   ;;  %s4276_s29 = sshll.u32 %s7433_s9, 4  ;;  %s4277_s29 = int_to_ptr.hbm [resolvable:$true] %s4276_s29 }
  0x22   :  { %v4659_v5 = vld [vmem:[#allocation5 + $0x2e0] sm:$0xf]  ;;  %v6495_v6 = vld [vmem:[#allocation5 + $0x2ec] sm:$0xf0]  ;;  %v4532_v7 = vor.u32 %v6463_v4, %v4531_v2  ;;  %s4274_s27 = sshll.u32 %s7164_s26, 4  ;;  %s4275_s27 = int_to_ptr.vmem [resolvable:$true] %s4274_s27 }
  0x23   :  { %v4660_v8 = vor.u32 %v6495_v6, %v4659_v5  ;;  %v4787_v9 = vld [vmem:[#allocation5 + $0x3e0] sm:$0xf]  ;;  %v6527_v10 = vld [vmem:[#allocation5 + $0x3ec] sm:$0xf0]  ;;  %922 = vmatpush.bf16.msra.mxu0 %v4404_v3 }
  0x24   :  { %v4387_v11 = vld [vmem:[#allocation5 + $0xc0] sm:$0xf]  ;;  %v4788_v12 = vor.u32 %v6527_v10, %v4787_v9  ;;  %v6427_v13 = vld [vmem:[#allocation5 + $0xcc] sm:$0xf0]  ;;  %935 = vmatpush.bf16.msra.mxu1 %v4532_v7 }
  0x25   :  { %v4515_v14 = vld [vmem:[#allocation5 + $0x1c0] sm:$0xf]  ;;  %v6459_v15 = vld [vmem:[#allocation5 + $0x1cc] sm:$0xf0]  ;;  %948 = vmatpush.bf16.msra.mxu2 %v4660_v8  ;;  %v4388_v16 = vor.u32 %v6427_v13, %v4387_v11 }
  0x26   :  { %v4516_v17 = vor.u32 %v6459_v15, %v4515_v14  ;;  %v4643_v18 = vld [vmem:[#allocation5 + $0x2c0] sm:$0xf]  ;;  %v6491_v19 = vld [vmem:[#allocation5 + $0x2cc] sm:$0xf0]  ;;  %961 = vmatpush.bf16.msra.mxu3 %v4788_v12 }
  0x27   :  { %v4771_v20 = vld [vmem:[#allocation5 + $0x3c0] sm:$0xf]  ;;  %v4644_v21 = vor.u32 %v6491_v19, %v4643_v18  ;;  %v6523_v22 = vld [vmem:[#allocation5 + $0x3cc] sm:$0xf0]  ;;  %923 = vmatpush.bf16.msra.mxu0 %v4388_v16 }
  0x28   :  { %v4371_v23 = vld [vmem:[#allocation5 + $0xa0] sm:$0xf]  ;;  %v6423_v24 = vld [vmem:[#allocation5 + $0xac] sm:$0xf0]  ;;  %v4772_v25 = vor.u32 %v6523_v22, %v4771_v20  ;;  %936 = vmatpush.bf16.msra.mxu1 %v4516_v17 }
  0x29   :  { %v4499_v26 = vld [vmem:[#allocation5 + $0x1a0] sm:$0xf]  ;;  %v6455_v27 = vld [vmem:[#allocation5 + $0x1ac] sm:$0xf0]  ;;  %v4372_v29 = vor.u32 %v6423_v24, %v4371_v23  ;;  %949 = vmatpush.bf16.msra.mxu2 %v4644_v21 }
  0x2a   :  { %v4627_v28 = vld [vmem:[#allocation5 + $0x2a0] sm:$0xf]  ;;  %v6487_v30 = vld [vmem:[#allocation5 + $0x2ac] sm:$0xf0]  ;;  %v4500_v33 = vor.u32 %v6455_v27, %v4499_v26  ;;  %962 = vmatpush.bf16.msra.mxu3 %v4772_v25 }
  0x2b   :  { %v4755_v31 = vld [vmem:[#allocation5 + $0x3a0] sm:$0xf]  ;;  %v6519_v32 = vld [vmem:[#allocation5 + $0x3ac] sm:$0xf0]  ;;  %v4628_v34 = vor.u32 %v6487_v30, %v4627_v28  ;;  %924 = vmatpush.bf16.msra.mxu0 %v4372_v29  ;;  %v6429_v28 = vld [vmem:[#allocation5 + $0xe4] sm:$0xf] }
  0x2c   :  { %v4355_v35 = vld [vmem:[#allocation5 + $0x80] sm:$0xf]  ;;  %v6419_v36 = vld [vmem:[#allocation5 + $0x8c] sm:$0xf0]  ;;  %v4756_v38 = vor.u32 %v6519_v32, %v4755_v31  ;;  %937 = vmatpush.bf16.msra.mxu1 %v4500_v33  ;;  %v4405_v29 = vld [vmem:[#allocation5 + $0xf0] sm:$0xf0] }
  0x2d   :  { %v4483_v37 = vld [vmem:[#allocation5 + $0x180] sm:$0xf]  ;;  %v6451_v39 = vld [vmem:[#allocation5 + $0x18c] sm:$0xf0]  ;;  %v4356_v44 = vor.u32 %v6419_v36, %v4355_v35  ;;  %950 = vmatpush.bf16.msra.mxu2 %v4628_v34  ;;  %v6461_v30 = vld [vmem:[#allocation5 + $0x1e4] sm:$0xf] }
  0x2e   :  { %v4611_v40 = vld [vmem:[#allocation5 + $0x280] sm:$0xf]  ;;  %v6483_v41 = vld [vmem:[#allocation5 + $0x28c] sm:$0xf0]  ;;  %v4484_v45 = vor.u32 %v6451_v39, %v4483_v37  ;;  %963 = vmatpush.bf16.msra.mxu3 %v4756_v38  ;;  %v4533_v32 = vld [vmem:[#allocation5 + $0x1f0] sm:$0xf0] }
  0x2f   :  { %v4739_v42 = vld [vmem:[#allocation5 + $0x380] sm:$0xf]  ;;  %v6515_v43 = vld [vmem:[#allocation5 + $0x38c] sm:$0xf0]  ;;  %v4612_v46 = vor.u32 %v6483_v41, %v4611_v40  ;;  %925 = vmatpush.bf16.msra.mxu0 %v4356_v44  ;;  %v6493_v33 = vld [vmem:[#allocation5 + $0x2e4] sm:$0xf]  ;;  %v4408_v41 = vor.u32 %v6429_v28, %v4405_v29 }
  0x30   :  { %v4339_v47 = vld [vmem:[#allocation5 + $0x60] sm:$0xf]  ;;  %v6415_v48 = vld [vmem:[#allocation5 + $0x6c] sm:$0xf0]  ;;  %v4740_v50 = vor.u32 %v6515_v43, %v4739_v42  ;;  %938 = vmatpush.bf16.msra.mxu1 %v4484_v45  ;;  %v4661_v34 = vld [vmem:[#allocation5 + $0x2f0] sm:$0xf0]  ;;  %v4536_v45 = vor.u32 %v6461_v30, %v4533_v32 }
  0x31   :  { %v4467_v49 = vld [vmem:[#allocation5 + $0x160] sm:$0xf]  ;;  %v6447_v51 = vld [vmem:[#allocation5 + $0x16c] sm:$0xf0]  ;;  %v4340_v56 = vor.u32 %v6415_v48, %v4339_v47  ;;  %951 = vmatpush.bf16.msra.mxu2 %v4612_v46  ;;  %v6525_v37 = vld [vmem:[#allocation5 + $0x3e4] sm:$0xf]  ;;  %v4664_v46 = vor.u32 %v6493_v33, %v4661_v34 }
  0x32   :  { %v4595_v52 = vld [vmem:[#allocation5 + $0x260] sm:$0xf]  ;;  %v6479_v53 = vld [vmem:[#allocation5 + $0x26c] sm:$0xf0]  ;;  %v4468_v57 = vor.u32 %v6447_v51, %v4467_v49  ;;  %964 = vmatpush.bf16.msra.mxu3 %v4740_v50  ;;  %v4789_v38 = vld [vmem:[#allocation5 + $0x3f0] sm:$0xf0] }
  0x33   :  { %v4723_v54 = vld [vmem:[#allocation5 + $0x360] sm:$0xf]  ;;  %v6511_v55 = vld [vmem:[#allocation5 + $0x36c] sm:$0xf0]  ;;  %v4596_v58 = vor.u32 %v6479_v53, %v4595_v52  ;;  %926 = vmatpush.bf16.msra.mxu0 %v4340_v56  ;;  %v6425_v42 = vld [vmem:[#allocation5 + $0xc4] sm:$0xf]  ;;  %v4792_v50 = vor.u32 %v6525_v37, %v4789_v38 }
  0x34   :  { %v4323_v59 = vld [vmem:[#allocation5 + $0x40] sm:$0xf]  ;;  %v6411_v60 = vld [vmem:[#allocation5 + $0x4c] sm:$0xf0]  ;;  %v4724_v62 = vor.u32 %v6511_v55, %v4723_v54  ;;  %939 = vmatpush.bf16.msra.mxu1 %v4468_v57  ;;  %v139_v44 = vld [vmem:[#allocation2 + $0x18] sm:$0xff] }
  0x35   :  { %v4451_v61 = vld [vmem:[#allocation5 + $0x140] sm:$0xf]  ;;  %v6443_v63 = vld [vmem:[#allocation5 + $0x14c] sm:$0xf0]  ;;  %v4324_v4 = vor.u32 %v6411_v60, %v4323_v59  ;;  %952 = vmatpush.bf16.msra.mxu2 %v4596_v58  ;;  %v4389_v47 = vld [vmem:[#allocation5 + $0xd0] sm:$0xf0]  ;;  %v7240_v58 = vpack.c.bf16 %v139_v44, %v139_v44 }
  0x36   :  { %v4579_v0 = vld [vmem:[#allocation5 + $0x240] sm:$0xf]  ;;  %v6475_v1 = vld [vmem:[#allocation5 + $0x24c] sm:$0xf0]  ;;  %v4452_v5 = vor.u32 %v6443_v63, %v4451_v61  ;;  %965 = vmatpush.bf16.msra.mxu3 %v4724_v62  ;;  %v6457_v48 = vld [vmem:[#allocation5 + $0x1c4] sm:$0xf]  ;;  %v4392_v59 = vor.u32 %v6425_v42, %v4389_v47 }
  0x37   :  { %v4707_v2 = vld [vmem:[#allocation5 + $0x340] sm:$0xf]  ;;  %v6507_v3 = vld [vmem:[#allocation5 + $0x34c] sm:$0xf0]  ;;  %v4580_v6 = vor.u32 %v6475_v1, %v4579_v0  ;;  %927 = vmatpush.bf16.msra.mxu0 %v4324_v4  ;;  %v137_v49 = vld [vmem:[#allocation2 + $0x8] sm:$0xff] }
  0x38   :  { %v4307_v7 = vld [vmem:[#allocation5 + $0x20] sm:$0xf]  ;;  %v6407_v8 = vld [vmem:[#allocation5 + $0x2c] sm:$0xf0]  ;;  %v4708_v10 = vor.u32 %v6507_v3, %v4707_v2  ;;  %940 = vmatpush.bf16.msra.mxu1 %v4452_v5  ;;  %v4517_v52 = vld [vmem:[#allocation5 + $0x1d0] sm:$0xf0]  ;;  %v7242_v60 = vpack.c.bf16 %v137_v49, %v137_v49 }
  0x39   :  { %v4435_v9 = vld [vmem:[#allocation5 + $0x120] sm:$0xf]  ;;  %v6439_v11 = vld [vmem:[#allocation5 + $0x12c] sm:$0xf0]  ;;  %v4308_v16 = vor.u32 %v6407_v8, %v4307_v7  ;;  %953 = vmatpush.bf16.msra.mxu2 %v4580_v6  ;;  %v6489_v53 = vld [vmem:[#allocation5 + $0x2c4] sm:$0xf]  ;;  %v4520_v61 = vor.u32 %v6457_v48, %v4517_v52 }
  0x3a   :  { %v4563_v12 = vld [vmem:[#allocation5 + $0x220] sm:$0xf]  ;;  %v6471_v13 = vld [vmem:[#allocation5 + $0x22c] sm:$0xf0]  ;;  %v4436_v19 = vor.u32 %v6439_v11, %v4435_v9  ;;  %966 = vmatpush.bf16.msra.mxu3 %v4708_v10  ;;  %v4645_v54 = vld [vmem:[#allocation5 + $0x2d0] sm:$0xf0] }
  0x3b   :  { %v4691_v14 = vld [vmem:[#allocation5 + $0x320] sm:$0xf]  ;;  %v6503_v15 = vld [vmem:[#allocation5 + $0x32c] sm:$0xf0]  ;;  %v4564_v20 = vor.u32 %v6471_v13, %v4563_v12  ;;  %928 = vmatpush.bf16.msra.mxu0 %v4308_v16  ;;  %v6521_v55 = vld [vmem:[#allocation5 + $0x3c4] sm:$0xf]  ;;  %v4648_v62 = vor.u32 %v6489_v53, %v4645_v54 }
  0x3c   :  { %v4291_v17 = vld [vmem:[#allocation5] sm:$0xf]  ;;  %v6403_v18 = vld [vmem:[#allocation5 + $0xc] sm:$0xf0]  ;;  %v4692_v24 = vor.u32 %v6503_v15, %v4691_v14  ;;  %941 = vmatpush.bf16.msra.mxu1 %v4436_v19  ;;  %v4773_v56 = vld [vmem:[#allocation5 + $0x3d0] sm:$0xf0] }
  0x3d   :  { %v4419_v21 = vld [vmem:[#allocation5 + $0x100] sm:$0xf]  ;;  %v6435_v22 = vld [vmem:[#allocation5 + $0x10c] sm:$0xf0]  ;;  %v4292_v31 = vor.u32 %v6403_v18, %v4291_v17  ;;  %954 = vmatpush.bf16.msra.mxu2 %v4564_v20  ;;  %v6421_v63 = vld [vmem:[#allocation5 + $0xa4] sm:$0xf]  ;;  %v4776_v2 = vor.u32 %v6521_v55, %v4773_v56 }
  0x3e   :  { %v4547_v23 = vld [vmem:[#allocation5 + $0x200] sm:$0xf]  ;;  %v6467_v25 = vld [vmem:[#allocation5 + $0x20c] sm:$0xf0]  ;;  %v4420_v35 = vor.u32 %v6435_v22, %v4419_v21  ;;  %967 = vmatpush.bf16.msra.mxu3 %v4692_v24  ;;  %v4373_v0 = vld [vmem:[#allocation5 + $0xb0] sm:$0xf0] }
  0x3f   :  { %v4675_v26 = vld [vmem:[#allocation5 + $0x300] sm:$0xf]  ;;  %v6499_v27 = vld [vmem:[#allocation5 + $0x30c] sm:$0xf0]  ;;  %v4548_v36 = vor.u32 %v6467_v25, %v4547_v23  ;;  %929 = vmatpush.bf16.msra.mxu0 %v4292_v31  ;;  %v6453_v1 = vld [vmem:[#allocation5 + $0x1a4] sm:$0xf]  ;;  %v4376_v8 = vor.u32 %v6421_v63, %v4373_v0 }
  0x40   :  { %v138_v39 = vld [vmem:[#allocation2 + $0x10] sm:$0xff]  ;;  %v4676_v40 = vor.u32 %v6499_v27, %v4675_v26  ;;  %v136_v43 = vld [vmem:[#allocation2] sm:$0xff]  ;;  %942 = vmatpush.bf16.msra.mxu1 %v4420_v35 }
  0x41   :  { %v7236_v51 = vpack.c.bf16 %v138_v39, %v138_v39  ;;  %955 = vmatpush.bf16.msra.mxu2 %v4548_v36  ;;  %v7238_v57 = vpack.c.bf16 %v136_v43, %v136_v43  ;;  %v4501_v3 = vld [vmem:[#allocation5 + $0x1b0] sm:$0xf0]  ;;  %v6485_v4 = vld [vmem:[#allocation5 + $0x2a4] sm:$0xf] }
  0x42   :  { %968 = vmatpush.bf16.msra.mxu3 %v4676_v40  ;;  %v4629_v5 = vld [vmem:[#allocation5 + $0x2b0] sm:$0xf0]  ;;  %v6517_v6 = vld [vmem:[#allocation5 + $0x3a4] sm:$0xf]  ;;  %v4504_v9 = vor.u32 %v6453_v1, %v4501_v3 }
  0x43   :  { %974 = vmatpush.bf16.msrb.mxu0 %v4408_v41  ;;  %v4757_v7 = vld [vmem:[#allocation5 + $0x3b0] sm:$0xf0]  ;;  %943 = vmatmul.bf16.vlgmr.msra.gmra.mxu1 %v7242_v60  ;;  %v4632_v10 = vor.u32 %v6485_v4, %v4629_v5  ;;  %v6417_v11 = vld [vmem:[#allocation5 + $0x84] sm:$0xf] }
  0x44   :  { %987 = vmatpush.bf16.msrb.mxu1 %v4536_v45  ;;  %956 = vmatmul.bf16.vlgmr.msra.gmra.mxu2 %v7236_v51  ;;  %v4357_v12 = vld [vmem:[#allocation5 + $0x90] sm:$0xf0]  ;;  %v6449_v13 = vld [vmem:[#allocation5 + $0x184] sm:$0xf]  ;;  %v4760_v14 = vor.u32 %v6517_v6, %v4757_v7 }
  0x45   :  { %1000 = vmatpush.bf16.msrb.mxu2 %v4664_v46  ;;  %930 = vmatmul.bf16.vlgmr.msra.gmra.mxu0 %v7238_v57  ;;  %v4485_v15 = vld [vmem:[#allocation5 + $0x190] sm:$0xf0]  ;;  %v6481_v16 = vld [vmem:[#allocation5 + $0x284] sm:$0xf]  ;;  %v4360_v20 = vor.u32 %v6417_v11, %v4357_v12  ;;  %v6464_v12 = vld [vmem:[#allocation5 + $0x1f4] sm:$0xf0] }
  0x46   :  { %1013 = vmatpush.bf16.msrb.mxu3 %v4792_v50  ;;  %v4613_v17 = vld [vmem:[#allocation5 + $0x290] sm:$0xf0]  ;;  %v6513_v18 = vld [vmem:[#allocation5 + $0x384] sm:$0xf]  ;;  %v4488_v21 = vor.u32 %v6449_v13, %v4485_v15  ;;  %v4667_v13 = vld [vmem:[#allocation5 + $0x2e8] sm:$0xf] }
  0x47   :  { %969 = vmatmul.bf16.vlgmr.msra.gmra.mxu3 %v7240_v58  ;;  %975 = vmatpush.bf16.msrb.mxu0 %v4392_v59  ;;  %v4741_v19 = vld [vmem:[#allocation5 + $0x390] sm:$0xf0]  ;;  %v4616_v22 = vor.u32 %v6481_v16, %v4613_v17  ;;  %v6413_v23 = vld [vmem:[#allocation5 + $0x64] sm:$0xf]  ;;  %v4795_v17 = vld [vmem:[#allocation5 + $0x3e8] sm:$0xf] }
  0x48   :  { %988 = vmatpush.bf16.msrb.mxu1 %v4520_v61  ;;  %v4341_v24 = vld [vmem:[#allocation5 + $0x70] sm:$0xf0]  ;;  %v6445_v25 = vld [vmem:[#allocation5 + $0x164] sm:$0xf]  ;;  %v4744_v26 = vor.u32 %v6513_v18, %v4741_v19  ;;  %v6528_v18 = vld [vmem:[#allocation5 + $0x3f4] sm:$0xf0] }
  0x49   :  { %1001 = vmatpush.bf16.msrb.mxu2 %v4648_v62  ;;  %v4469_v27 = vld [vmem:[#allocation5 + $0x170] sm:$0xf0]  ;;  %v6477_v28 = vld [vmem:[#allocation5 + $0x264] sm:$0xf]  ;;  %v4344_v32 = vor.u32 %v6413_v23, %v4341_v24  ;;  %v4395_v23 = vld [vmem:[#allocation5 + $0xc8] sm:$0xf] }
  0x4a   :  { %1014 = vmatpush.bf16.msrb.mxu3 %v4776_v2  ;;  %v4597_v29 = vld [vmem:[#allocation5 + $0x270] sm:$0xf0]  ;;  %v6509_v30 = vld [vmem:[#allocation5 + $0x364] sm:$0xf]  ;;  %v4472_v33 = vor.u32 %v6445_v25, %v4469_v27  ;;  %v6428_v24 = vld [vmem:[#allocation5 + $0xd4] sm:$0xf0] }
  0x4b   :  { %976 = vmatpush.bf16.msrb.mxu0 %v4376_v8  ;;  %v4725_v31 = vld [vmem:[#allocation5 + $0x370] sm:$0xf0]  ;;  %v4600_v34 = vor.u32 %v6477_v28, %v4597_v29  ;;  %v6409_v35 = vld [vmem:[#allocation5 + $0x44] sm:$0xf]  ;;  %v4411_v8 = vld [vmem:[#allocation5 + $0xe8] sm:$0xf] }
  0x4c   :  { %989 = vmatpush.bf16.msrb.mxu1 %v4504_v9  ;;  %v4325_v36 = vld [vmem:[#allocation5 + $0x50] sm:$0xf0]  ;;  %v6441_v37 = vld [vmem:[#allocation5 + $0x144] sm:$0xf]  ;;  %v4728_v38 = vor.u32 %v6509_v30, %v4725_v31  ;;  %v6432_v9 = vld [vmem:[#allocation5 + $0xf4] sm:$0xf0] }
  0x4d   :  { %1002 = vmatpush.bf16.msrb.mxu2 %v4632_v10  ;;  %v4453_v39 = vld [vmem:[#allocation5 + $0x150] sm:$0xf0]  ;;  %v6473_v40 = vld [vmem:[#allocation5 + $0x244] sm:$0xf]  ;;  %v4328_v44 = vor.u32 %v6409_v35, %v4325_v36  ;;  %v4539_v10 = vld [vmem:[#allocation5 + $0x1e8] sm:$0xf] }
  0x4e   :  { %1015 = vmatpush.bf16.msrb.mxu3 %v4760_v14  ;;  %v4581_v41 = vld [vmem:[#allocation5 + $0x250] sm:$0xf0]  ;;  %v6505_v42 = vld [vmem:[#allocation5 + $0x344] sm:$0xf]  ;;  %v4456_v45 = vor.u32 %v6441_v37, %v4453_v39  ;;  %v6496_v14 = vld [vmem:[#allocation5 + $0x2f4] sm:$0xf0] }
  0x4f   :  { %977 = vmatpush.bf16.msrb.mxu0 %v4360_v20  ;;  %v4709_v43 = vld [vmem:[#allocation5 + $0x350] sm:$0xf0]  ;;  %v4584_v46 = vor.u32 %v6473_v40, %v4581_v41  ;;  %v6405_v47 = vld [vmem:[#allocation5 + $0x24] sm:$0xf]  ;;  %v4412_v20 = vor.u32 %v6432_v9, %v4411_v8  ;;  %v4523_v25 = vld [vmem:[#allocation5 + $0x1c8] sm:$0xf] }
  0x50   :  { %990 = vmatpush.bf16.msrb.mxu1 %v4488_v21  ;;  %v4309_v48 = vld [vmem:[#allocation5 + $0x30] sm:$0xf0]  ;;  %v6437_v49 = vld [vmem:[#allocation5 + $0x124] sm:$0xf]  ;;  %v4712_v50 = vor.u32 %v6505_v42, %v4709_v43  ;;  %v4540_v21 = vor.u32 %v6464_v12, %v4539_v10  ;;  %v6460_v27 = vld [vmem:[#allocation5 + $0x1d4] sm:$0xf0] }
  0x51   :  { %1003 = vmatpush.bf16.msrb.mxu2 %v4616_v22  ;;  %v4437_v52 = vld [vmem:[#allocation5 + $0x130] sm:$0xf0]  ;;  %v6469_v53 = vld [vmem:[#allocation5 + $0x224] sm:$0xf]  ;;  %v4312_v59 = vor.u32 %v6405_v47, %v4309_v48  ;;  %v4668_v22 = vor.u32 %v6496_v14, %v4667_v13  ;;  %v4651_v28 = vld [vmem:[#allocation5 + $0x2c8] sm:$0xf] }
  0x52   :  { %1016 = vmatpush.bf16.msrb.mxu3 %v4744_v26  ;;  %v4565_v54 = vld [vmem:[#allocation5 + $0x230] sm:$0xf0]  ;;  %v6501_v55 = vld [vmem:[#allocation5 + $0x324] sm:$0xf]  ;;  %v4440_v63 = vor.u32 %v6437_v49, %v4437_v52  ;;  %v4796_v26 = vor.u32 %v6528_v18, %v4795_v17  ;;  %v6492_v29 = vld [vmem:[#allocation5 + $0x2d4] sm:$0xf0] }
  0x53   :  { %978 = vmatpush.bf16.msrb.mxu0 %v4344_v32  ;;  %v4693_v56 = vld [vmem:[#allocation5 + $0x330] sm:$0xf0]  ;;  %v6401_v61 = vld [vmem:[#allocation5 + $0x4] sm:$0xf]  ;;  %v4568_v0 = vor.u32 %v6469_v53, %v4565_v54  ;;  %v4779_v30 = vld [vmem:[#allocation5 + $0x3c8] sm:$0xf]  ;;  %v4396_v32 = vor.u32 %v6428_v24, %v4395_v23 }
  0x54   :  { %991 = vmatpush.bf16.msrb.mxu1 %v4472_v33  ;;  %v4293_v62 = vld [vmem:[#allocation5 + $0x10] sm:$0xf0]  ;;  %v6433_v1 = vld [vmem:[#allocation5 + $0x104] sm:$0xf]  ;;  %v4696_v4 = vor.u32 %v6501_v55, %v4693_v56  ;;  %v6524_v31 = vld [vmem:[#allocation5 + $0x3d4] sm:$0xf0]  ;;  %v4524_v33 = vor.u32 %v6460_v27, %v4523_v25 }
  0x55   :  { %1004 = vmatpush.bf16.msrb.mxu2 %v4600_v34  ;;  %v4421_v2 = vld [vmem:[#allocation5 + $0x110] sm:$0xf0]  ;;  %v6465_v3 = vld [vmem:[#allocation5 + $0x204] sm:$0xf]  ;;  %v4296_v11 = vor.u32 %v6401_v61, %v4293_v62  ;;  %v4652_v34 = vor.u32 %v6492_v29, %v4651_v28  ;;  %v4379_v35 = vld [vmem:[#allocation5 + $0xa8] sm:$0xf] }
  0x56   :  { %1017 = vmatpush.bf16.msrb.mxu3 %v4728_v38  ;;  %v4549_v5 = vld [vmem:[#allocation5 + $0x210] sm:$0xf0]  ;;  %v6497_v6 = vld [vmem:[#allocation5 + $0x304] sm:$0xf]  ;;  %v4424_v15 = vor.u32 %v6433_v1, %v4421_v2  ;;  %v6424_v36 = vld [vmem:[#allocation5 + $0xb4] sm:$0xf0]  ;;  %v4780_v38 = vor.u32 %v6524_v31, %v4779_v30 }
  0x57   :  { %979 = vmatpush.bf16.msrb.mxu0 %v4328_v44  ;;  %v4677_v7 = vld [vmem:[#allocation5 + $0x310] sm:$0xf0]  ;;  %v4552_v16 = vor.u32 %v6465_v3, %v4549_v5  ;;  %v4507_v37 = vld [vmem:[#allocation5 + $0x1a8] sm:$0xf]  ;;  %v6456_v39 = vld [vmem:[#allocation5 + $0x1b4] sm:$0xf0]  ;;  %v4380_v44 = vor.u32 %v6424_v36, %v4379_v35 }
  0x58   :  { %992 = vmatpush.bf16.msrb.mxu1 %v4456_v45  ;;  %v4680_v19 = vor.u32 %v6497_v6, %v4677_v7  ;;  %v4635_v40 = vld [vmem:[#allocation5 + $0x2a8] sm:$0xf]  ;;  %v6488_v41 = vld [vmem:[#allocation5 + $0x2b4] sm:$0xf0]  ;;  %v4508_v45 = vor.u32 %v6456_v39, %v4507_v37 }
  0x59   :  { %1005 = vmatpush.bf16.msrb.mxu2 %v4584_v46  ;;  %v4763_v42 = vld [vmem:[#allocation5 + $0x3a8] sm:$0xf]  ;;  %v6520_v43 = vld [vmem:[#allocation5 + $0x3b4] sm:$0xf0]  ;;  %v4636_v46 = vor.u32 %v6488_v41, %v4635_v40 }
  0x5a   :  { %1018 = vmatpush.bf16.msrb.mxu3 %v4712_v50  ;;  %v4363_v47 = vld [vmem:[#allocation5 + $0x88] sm:$0xf]  ;;  %v6420_v48 = vld [vmem:[#allocation5 + $0x94] sm:$0xf0]  ;;  %v4764_v50 = vor.u32 %v6520_v43, %v4763_v42 }
  0x5b   :  { %980 = vmatpush.bf16.msrb.mxu0 %v4312_v59  ;;  %v4491_v49 = vld [vmem:[#allocation5 + $0x188] sm:$0xf]  ;;  %v6452_v52 = vld [vmem:[#allocation5 + $0x194] sm:$0xf0]  ;;  %v4364_v59 = vor.u32 %v6420_v48, %v4363_v47  ;;  %v4541_v48 = vld [vmem:[#allocation5 + $0x1f8] sm:$0xf0] }
  0x5c   :  { %993 = vmatpush.bf16.msrb.mxu1 %v4440_v63  ;;  %v4619_v53 = vld [vmem:[#allocation5 + $0x288] sm:$0xf]  ;;  %v6484_v54 = vld [vmem:[#allocation5 + $0x294] sm:$0xf0]  ;;  %v4492_v61 = vor.u32 %v6452_v52, %v4491_v49  ;;  %v6494_v49 = vld [vmem:[#allocation5 + $0x2ec] sm:$0xf] }
  0x5d   :  { %1006 = vmatpush.bf16.msrb.mxu2 %v4568_v0  ;;  %v4747_v55 = vld [vmem:[#allocation5 + $0x388] sm:$0xf]  ;;  %v6516_v56 = vld [vmem:[#allocation5 + $0x394] sm:$0xf0]  ;;  %v4620_v62 = vor.u32 %v6484_v54, %v4619_v53  ;;  %v6526_v54 = vld [vmem:[#allocation5 + $0x3ec] sm:$0xf] }
  0x5e   :  { %1019 = vmatpush.bf16.msrb.mxu3 %v4696_v4  ;;  %v4347_v63 = vld [vmem:[#allocation5 + $0x68] sm:$0xf]  ;;  %v6416_v0 = vld [vmem:[#allocation5 + $0x74] sm:$0xf0]  ;;  %v4748_v2 = vor.u32 %v6516_v56, %v4747_v55  ;;  %v4797_v55 = vld [vmem:[#allocation5 + $0x3f8] sm:$0xf0] }
  0x5f   :  { %981 = vmatpush.bf16.msrb.mxu0 %v4296_v11  ;;  %v4475_v1 = vld [vmem:[#allocation5 + $0x168] sm:$0xf]  ;;  %v6448_v3 = vld [vmem:[#allocation5 + $0x174] sm:$0xf0]  ;;  %v4348_v8 = vor.u32 %v6416_v0, %v4347_v63  ;;  %v6426_v63 = vld [vmem:[#allocation5 + $0xcc] sm:$0xf] }
  0x60   :  { %994 = vmatpush.bf16.msrb.mxu1 %v4424_v15  ;;  %v4603_v4 = vld [vmem:[#allocation5 + $0x268] sm:$0xf]  ;;  %v6480_v5 = vld [vmem:[#allocation5 + $0x274] sm:$0xf0]  ;;  %v4476_v9 = vor.u32 %v6448_v3, %v4475_v1  ;;  %v4397_v0 = vld [vmem:[#allocation5 + $0xd8] sm:$0xf0] }
  0x61   :  { %1007 = vmatpush.bf16.msrb.mxu2 %v4552_v16  ;;  %v4731_v6 = vld [vmem:[#allocation5 + $0x368] sm:$0xf]  ;;  %v6512_v7 = vld [vmem:[#allocation5 + $0x374] sm:$0xf0]  ;;  %v4604_v10 = vor.u32 %v6480_v5, %v4603_v4  ;;  %v6458_v1 = vld [vmem:[#allocation5 + $0x1cc] sm:$0xf] }
  0x62   :  { %1020 = vmatpush.bf16.msrb.mxu3 %v4680_v19  ;;  %982 = vmatmul.bf16.vlgmr.msrb.gmra.mxu0 %v7238_v57  ;;  %v4331_v11 = vld [vmem:[#allocation5 + $0x48] sm:$0xf]  ;;  %v6412_v12 = vld [vmem:[#allocation5 + $0x54] sm:$0xf0]  ;;  %v4732_v14 = vor.u32 %v6512_v7, %v4731_v6  ;;  %v4525_v3 = vld [vmem:[#allocation5 + $0x1d8] sm:$0xf0] }
  0x63   :  { %1026 = vmatpush.bf16.msra.mxu0 %v4412_v20  ;;  %995 = vmatmul.bf16.vlgmr.msrb.gmra.mxu1 %v7242_v60  ;;  %v4459_v13 = vld [vmem:[#allocation5 + $0x148] sm:$0xf]  ;;  %v6444_v15 = vld [vmem:[#allocation5 + $0x154] sm:$0xf0]  ;;  %v4332_v20 = vor.u32 %v6412_v12, %v4331_v11  ;;  %v6490_v4 = vld [vmem:[#allocation5 + $0x2cc] sm:$0xf] }
  0x64   :  { %1039 = vmatpush.bf16.msra.mxu1 %v4540_v21  ;;  %1008 = vmatmul.bf16.vlgmr.msrb.gmra.mxu2 %v7236_v51  ;;  %v4587_v16 = vld [vmem:[#allocation5 + $0x248] sm:$0xf]  ;;  %v6476_v17 = vld [vmem:[#allocation5 + $0x254] sm:$0xf0]  ;;  %v4460_v21 = vor.u32 %v6444_v15, %v4459_v13  ;;  %v4653_v5 = vld [vmem:[#allocation5 + $0x2d8] sm:$0xf0] }
  0x65   :  { %1052 = vmatpush.bf16.msra.mxu2 %v4668_v22  ;;  %1021 = vmatmul.bf16.vlgmr.msrb.gmra.mxu3 %v7240_v58  ;;  %v4715_v18 = vld [vmem:[#allocation5 + $0x348] sm:$0xf]  ;;  %v6508_v19 = vld [vmem:[#allocation5 + $0x354] sm:$0xf0]  ;;  %v4588_v22 = vor.u32 %v6476_v17, %v4587_v16  ;;  %v6522_v6 = vld [vmem:[#allocation5 + $0x3cc] sm:$0xf] }
  0x66   :  { %1065 = vmatpush.bf16.msra.mxu3 %v4796_v26  ;;  %v4315_v23 = vld [vmem:[#allocation5 + $0x28] sm:$0xf]  ;;  %v6408_v24 = vld [vmem:[#allocation5 + $0x34] sm:$0xf0]  ;;  %v4716_v26 = vor.u32 %v6508_v19, %v4715_v18  ;;  %v4781_v7 = vld [vmem:[#allocation5 + $0x3d8] sm:$0xf0] }
  0x67   :  { %1027 = vmatpush.bf16.msra.mxu0 %v4396_v32  ;;  %v4443_v25 = vld [vmem:[#allocation5 + $0x128] sm:$0xf]  ;;  %v6440_v27 = vld [vmem:[#allocation5 + $0x134] sm:$0xf0]  ;;  %v4316_v32 = vor.u32 %v6408_v24, %v4315_v23  ;;  %v6422_v11 = vld [vmem:[#allocation5 + $0xac] sm:$0xf] }
  0x68   :  { %1040 = vmatpush.bf16.msra.mxu1 %v4524_v33  ;;  %v4571_v28 = vld [vmem:[#allocation5 + $0x228] sm:$0xf]  ;;  %v6472_v29 = vld [vmem:[#allocation5 + $0x234] sm:$0xf0]  ;;  %v4444_v35 = vor.u32 %v6440_v27, %v4443_v25  ;;  %v4381_v12 = vld [vmem:[#allocation5 + $0xb8] sm:$0xf0] }
  0x69   :  { %1053 = vmatpush.bf16.msra.mxu2 %v4652_v34  ;;  %v4699_v30 = vld [vmem:[#allocation5 + $0x328] sm:$0xf]  ;;  %v6504_v31 = vld [vmem:[#allocation5 + $0x334] sm:$0xf0]  ;;  %v4572_v36 = vor.u32 %v6472_v29, %v4571_v28  ;;  %v6454_v13 = vld [vmem:[#allocation5 + $0x1ac] sm:$0xf] }
  0x6a   :  { %1066 = vmatpush.bf16.msra.mxu3 %v4780_v38  ;;  %v4299_v33 = vld [vmem:[#allocation5 + $0x8] sm:$0xf]  ;;  %v6404_v34 = vld [vmem:[#allocation5 + $0x14] sm:$0xf0]  ;;  %v4700_v40 = vor.u32 %v6504_v31, %v4699_v30  ;;  %v4509_v15 = vld [vmem:[#allocation5 + $0x1b8] sm:$0xf0] }
  0x6b   :  { %1028 = vmatpush.bf16.msra.mxu0 %v4380_v44  ;;  %v4427_v37 = vld [vmem:[#allocation5 + $0x108] sm:$0xf]  ;;  %v6436_v38 = vld [vmem:[#allocation5 + $0x114] sm:$0xf0]  ;;  %v6430_v44 = vld [vmem:[#allocation5 + $0xec] sm:$0xf]  ;;  %v4300_v47 = vor.u32 %v6404_v34, %v4299_v33 }
  0x6c   :  { %1041 = vmatpush.bf16.msra.mxu1 %v4508_v45  ;;  %v4555_v39 = vld [vmem:[#allocation5 + $0x208] sm:$0xf]  ;;  %v6468_v41 = vld [vmem:[#allocation5 + $0x214] sm:$0xf0]  ;;  %v4413_v45 = vld [vmem:[#allocation5 + $0xf8] sm:$0xf0]  ;;  %v4428_v52 = vor.u32 %v6436_v38, %v4427_v37 }
  0x6d   :  { %1054 = vmatpush.bf16.msra.mxu2 %v4636_v46  ;;  %v4683_v42 = vld [vmem:[#allocation5 + $0x308] sm:$0xf]  ;;  %v6500_v43 = vld [vmem:[#allocation5 + $0x314] sm:$0xf0]  ;;  %v6462_v46 = vld [vmem:[#allocation5 + $0x1ec] sm:$0xf]  ;;  %v4556_v53 = vor.u32 %v6468_v41, %v4555_v39 }
  0x6e   :  { %1067 = vmatpush.bf16.msra.mxu3 %v4764_v50  ;;  %v4669_v50 = vld [vmem:[#allocation5 + $0x2f8] sm:$0xf0]  ;;  %v4684_v56 = vor.u32 %v6500_v43, %v4683_v42  ;;  %v6486_v16 = vld [vmem:[#allocation5 + $0x2ac] sm:$0xf] }
  0x6f   :  { %1029 = vmatpush.bf16.msra.mxu0 %v4364_v59  ;;  %v4416_v59 = vor.u32 %v6430_v44, %v4413_v45  ;;  %v4637_v17 = vld [vmem:[#allocation5 + $0x2b8] sm:$0xf0]  ;;  %v6518_v18 = vld [vmem:[#allocation5 + $0x3ac] sm:$0xf] }
  0x70   :  { %1042 = vmatpush.bf16.msra.mxu1 %v4492_v61  ;;  %v4544_v61 = vor.u32 %v6462_v46, %v4541_v48  ;;  %v4765_v19 = vld [vmem:[#allocation5 + $0x3b8] sm:$0xf0]  ;;  %v6418_v23 = vld [vmem:[#allocation5 + $0x8c] sm:$0xf] }
  0x71   :  { %1055 = vmatpush.bf16.msra.mxu2 %v4620_v62  ;;  %v4672_v62 = vor.u32 %v6494_v49, %v4669_v50  ;;  %v4365_v24 = vld [vmem:[#allocation5 + $0x98] sm:$0xf0]  ;;  %v6450_v25 = vld [vmem:[#allocation5 + $0x18c] sm:$0xf] }
  0x72   :  { %1068 = vmatpush.bf16.msra.mxu3 %v4748_v2  ;;  %v4800_v2 = vor.u32 %v6526_v54, %v4797_v55  ;;  %v4493_v27 = vld [vmem:[#allocation5 + $0x198] sm:$0xf0]  ;;  %v6482_v28 = vld [vmem:[#allocation5 + $0x28c] sm:$0xf] }
  0x73   :  { %1030 = vmatpush.bf16.msra.mxu0 %v4348_v8  ;;  %v4400_v8 = vor.u32 %v6426_v63, %v4397_v0  ;;  %v4621_v29 = vld [vmem:[#allocation5 + $0x298] sm:$0xf0]  ;;  %v6514_v30 = vld [vmem:[#allocation5 + $0x38c] sm:$0xf]  ;;  %v4496_v33 = vor.u32 %v6450_v25, %v4493_v27 }
  0x74   :  { %1043 = vmatpush.bf16.msra.mxu1 %v4476_v9  ;;  %v4528_v9 = vor.u32 %v6458_v1, %v4525_v3  ;;  %v4749_v31 = vld [vmem:[#allocation5 + $0x398] sm:$0xf0]  ;;  %v4624_v34 = vor.u32 %v6482_v28, %v4621_v29  ;;  %v6446_v37 = vld [vmem:[#allocation5 + $0x16c] sm:$0xf]  ;;  %v4995_v29 = vld [vmem:[#allocation8 + $0x180] sm:$0xf] }
  0x75   :  { %1056 = vmatpush.bf16.msra.mxu2 %v4604_v10  ;;  %v4656_v10 = vor.u32 %v6490_v4, %v4653_v5  ;;  %v4752_v38 = vor.u32 %v6514_v30, %v4749_v31  ;;  %v4477_v39 = vld [vmem:[#allocation5 + $0x178] sm:$0xf0]  ;;  %v6510_v42 = vld [vmem:[#allocation5 + $0x36c] sm:$0xf]  ;;  %v6581_v30 = vld [vmem:[#allocation8 + $0x19c] sm:$0xf0] }
  0x76   :  { %1069 = vmatpush.bf16.msra.mxu3 %v4732_v14  ;;  %v4784_v14 = vor.u32 %v6522_v6, %v4781_v7  ;;  %v4605_v41 = vld [vmem:[#allocation5 + $0x278] sm:$0xf0]  ;;  %v4480_v45 = vor.u32 %v6446_v37, %v4477_v39  ;;  %v6442_v49 = vld [vmem:[#allocation5 + $0x14c] sm:$0xf]  ;;  %v6637_v39 = vld [vmem:[#allocation8 + $0x35c] sm:$0xf0] }
  0x77   :  { %1031 = vmatpush.bf16.msra.mxu0 %v4332_v20  ;;  %v4384_v20 = vor.u32 %v6422_v11, %v4381_v12  ;;  %v4733_v43 = vld [vmem:[#allocation5 + $0x378] sm:$0xf0]  ;;  %v6506_v55 = vld [vmem:[#allocation5 + $0x34c] sm:$0xf] }
  0x78   :  { %1044 = vmatpush.bf16.msra.mxu1 %v4460_v21  ;;  %v4512_v21 = vor.u32 %v6454_v13, %v4509_v15  ;;  %v4333_v48 = vld [vmem:[#allocation5 + $0x58] sm:$0xf0]  ;;  %v4736_v50 = vor.u32 %v6510_v42, %v4733_v43  ;;  %v6406_v63 = vld [vmem:[#allocation5 + $0x2c] sm:$0xf]  ;;  %v6565_v42 = vld [vmem:[#allocation8 + $0x11c] sm:$0xf0] }
  0x79   :  { %1057 = vmatpush.bf16.msra.mxu2 %v4588_v22  ;;  %v4640_v22 = vor.u32 %v6486_v16, %v4637_v17  ;;  %v4589_v54 = vld [vmem:[#allocation5 + $0x258] sm:$0xf0]  ;;  %v6438_v1 = vld [vmem:[#allocation5 + $0x12c] sm:$0xf] }
  0x7a   :  { %1070 = vmatpush.bf16.msra.mxu3 %v4716_v26  ;;  %v4768_v26 = vor.u32 %v6518_v18, %v4765_v19  ;;  %v4317_v0 = vld [vmem:[#allocation5 + $0x38] sm:$0xf0]  ;;  %v6470_v4 = vld [vmem:[#allocation5 + $0x22c] sm:$0xf] }
  0x7b   :  { %1032 = vmatpush.bf16.msra.mxu0 %v4316_v32  ;;  %v4368_v32 = vor.u32 %v6418_v23, %v4365_v24  ;;  %v4445_v3 = vld [vmem:[#allocation5 + $0x138] sm:$0xf0]  ;;  %v6502_v6 = vld [vmem:[#allocation5 + $0x32c] sm:$0xf]  ;;  %v5283_v23 = vld [vmem:[#allocation8 + $0x3c0] sm:$0xf] }
  0x7c   :  { %1045 = vmatpush.bf16.msra.mxu1 %v4444_v35  ;;  %v6414_v35 = vld [vmem:[#allocation5 + $0x6c] sm:$0xf]  ;;  %v4573_v5 = vld [vmem:[#allocation5 + $0x238] sm:$0xf0]  ;;  %v6653_v24 = vld [vmem:[#allocation8 + $0x3dc] sm:$0xf0] }
  0x7d   :  { %1058 = vmatpush.bf16.msra.mxu2 %v4572_v36  ;;  %v4349_v36 = vld [vmem:[#allocation5 + $0x78] sm:$0xf0]  ;;  %v4576_v11 = vor.u32 %v6470_v4, %v4573_v5  ;;  %v6434_v13 = vld [vmem:[#allocation5 + $0x10c] sm:$0xf]  ;;  %v5284_v31 = vor.u32 %v6653_v24, %v5283_v23  ;;  %v5539_v5 = vld [vmem:[#allocation8 + $0x5c0] sm:$0xf] }
  0x7e   :  { %1071 = vmatpush.bf16.msra.mxu3 %v4700_v40  ;;  %v6478_v40 = vld [vmem:[#allocation5 + $0x26c] sm:$0xf]  ;;  %v4352_v44 = vor.u32 %v6414_v35, %v4349_v36  ;;  %v4701_v7 = vld [vmem:[#allocation5 + $0x338] sm:$0xf0]  ;;  %v4963_v35 = vld [vmem:[#allocation8 + $0x140] sm:$0xf] }
  0x7f   :  { %1033 = vmatpush.bf16.msra.mxu0 %v4300_v47  ;;  %v4608_v46 = vor.u32 %v6478_v40, %v4605_v41  ;;  %v6410_v47 = vld [vmem:[#allocation5 + $0x4c] sm:$0xf]  ;;  %v4301_v12 = vld [vmem:[#allocation5 + $0x18] sm:$0xf0]  ;;  %v4704_v15 = vor.u32 %v6502_v6, %v4701_v7  ;;  %v6573_v36 = vld [vmem:[#allocation8 + $0x15c] sm:$0xf0] }
  0x80   :  { %1046 = vmatpush.bf16.msra.mxu1 %v4428_v52  ;;  %v4461_v52 = vld [vmem:[#allocation5 + $0x158] sm:$0xf0]  ;;  %v6466_v16 = vld [vmem:[#allocation5 + $0x20c] sm:$0xf]  ;;  %v4964_v40 = vor.u32 %v6573_v36, %v4963_v35  ;;  %v4931_v41 = vld [vmem:[#allocation8 + $0x100] sm:$0xf] }
  0x81   :  { %1059 = vmatpush.bf16.msra.mxu2 %v4556_v53  ;;  %v6474_v53 = vld [vmem:[#allocation5 + $0x24c] sm:$0xf]  ;;  %v4557_v17 = vld [vmem:[#allocation5 + $0x218] sm:$0xf0]  ;;  %v6717_v6 = vld [vmem:[#allocation8 + $0x5dc] sm:$0xf0] }
  0x82   :  { %1072 = vmatpush.bf16.msra.mxu3 %v4684_v56  ;;  %1034 = vmatmul.bf16.vlgmr.msra.gmra.mxu0 %v7238_v57  ;;  %v4717_v56 = vld [vmem:[#allocation5 + $0x358] sm:$0xf0]  ;;  %v6498_v18 = vld [vmem:[#allocation5 + $0x30c] sm:$0xf]  ;;  %v5029_v7 = vld [vmem:[#allocation8 + $0x1e0] sm:$0xf0] }
  0x83   :  { %1078 = vmatpush.bf16.msrb.mxu0 %v4416_v59  ;;  %1047 = vmatmul.bf16.vlgmr.msra.gmra.mxu1 %v7242_v60  ;;  %v4336_v59 = vor.u32 %v6410_v47, %v4333_v48  ;;  %v4685_v19 = vld [vmem:[#allocation5 + $0x318] sm:$0xf0]  ;;  %v6557_v47 = vld [vmem:[#allocation8 + $0xdc] sm:$0xf0]  ;;  %v5253_v23 = vld [vmem:[#allocation8 + $0x3a0] sm:$0xf0] }
  0x84   :  { %1091 = vmatpush.bf16.msrb.mxu1 %v4544_v61  ;;  %1060 = vmatmul.bf16.vlgmr.msra.gmra.mxu2 %v7236_v51  ;;  %v4464_v61 = vor.u32 %v6442_v49, %v4461_v52  ;;  %v4688_v27 = vor.u32 %v6498_v18, %v4685_v19  ;;  %v5155_v48 = vld [vmem:[#allocation8 + $0x2c0] sm:$0xf]  ;;  %v6577_v18 = vld [vmem:[#allocation8 + $0x184] sm:$0xf] }
  0x85   :  { %1104 = vmatpush.bf16.msrb.mxu2 %v4672_v62  ;;  %1073 = vmatmul.bf16.vlgmr.msra.gmra.mxu3 %v7240_v58  ;;  %v4592_v62 = vor.u32 %v6474_v53, %v4589_v54  ;;  %v5123_v53 = vld [vmem:[#allocation8 + $0x280] sm:$0xf]  ;;  %v4997_v19 = vld [vmem:[#allocation8 + $0x1a0] sm:$0xf0] }
  0x86   :  { %1117 = vmatpush.bf16.msrb.mxu3 %v4800_v2  ;;  %v4720_v2 = vor.u32 %v6506_v55, %v4717_v56  ;;  %v6613_v54 = vld [vmem:[#allocation8 + $0x29c] sm:$0xf0]  ;;  %v5000_v24 = vor.u32 %v6577_v18, %v4997_v19  ;;  %v6529_v18 = vld [vmem:[#allocation8 + $0x4] sm:$0xf] }
  0x87   :  { %1079 = vmatpush.bf16.msrb.mxu0 %v4400_v8  ;;  %v4320_v8 = vor.u32 %v6406_v63, %v4317_v0  ;;  %v4835_v56 = vld [vmem:[#allocation8 + $0x40] sm:$0xf]  ;;  %v4805_v19 = vld [vmem:[#allocation8 + $0x20] sm:$0xf0] }
  0x88   :  { %1092 = vmatpush.bf16.msrb.mxu1 %v4528_v9  ;;  %v6402_v9 = vld [vmem:[#allocation5 + $0xc] sm:$0xf]  ;;  %v6605_v63 = vld [vmem:[#allocation8 + $0x25c] sm:$0xf0] }
  0x89   :  { %1105 = vmatpush.bf16.msrb.mxu2 %v4656_v10  ;;  %v4448_v10 = vor.u32 %v6438_v1, %v4445_v3  ;;  %v4803_v1 = vld [vmem:[#allocation8] sm:$0xf]  ;;  %v6585_v3 = vld [vmem:[#allocation8 + $0x1c4] sm:$0xf] }
  0x8a   :  { %1118 = vmatpush.bf16.msrb.mxu3 %v4784_v14  ;;  %v4429_v14 = vld [vmem:[#allocation5 + $0x118] sm:$0xf0]  ;;  %v5443_v35 = vld [vmem:[#allocation8 + $0x500] sm:$0xf] }
  0x8b   :  { %1080 = vmatpush.bf16.msrb.mxu0 %v4384_v20  ;;  %v5027_v20 = vld [vmem:[#allocation8 + $0x1c0] sm:$0xf]  ;;  %v4432_v25 = vor.u32 %v6434_v13, %v4429_v14  ;;  %v5032_v14 = vor.u32 %v6585_v3, %v5029_v7 }
  0x8c   :  { %1093 = vmatpush.bf16.msrb.mxu1 %v4512_v21  ;;  %v6589_v21 = vld [vmem:[#allocation8 + $0x1dc] sm:$0xf0] }
  0x8d   :  { %1106 = vmatpush.bf16.msrb.mxu2 %v4640_v22  ;;  %v4304_v22 = vor.u32 %v6402_v9, %v4301_v12  ;;  %v5028_v28 = vor.u32 %v6589_v21, %v5027_v20  ;;  %v6597_v9 = vld [vmem:[#allocation8 + $0x21c] sm:$0xf0]  ;;  %v5285_v12 = vld [vmem:[#allocation8 + $0x3e0] sm:$0xf0] }
  0x8e   :  { %1119 = vmatpush.bf16.msrb.mxu3 %v4768_v26  ;;  %v4560_v26 = vor.u32 %v6466_v16, %v4557_v17  ;;  %v5507_v16 = vld [vmem:[#allocation8 + $0x580] sm:$0xf] }
  0x8f   :  { %1081 = vmatpush.bf16.msrb.mxu0 %v4368_v32  ;;  %v5251_v32 = vld [vmem:[#allocation8 + $0x380] sm:$0xf] }
  0x90   :  { %1094 = vmatpush.bf16.msrb.mxu1 %v4496_v33  ;;  %v6645_v33 = vld [vmem:[#allocation8 + $0x39c] sm:$0xf0] }
  0x91   :  { %1107 = vmatpush.bf16.msrb.mxu2 %v4624_v34  ;;  %v4996_v34 = vor.u32 %v6581_v30, %v4995_v29  ;;  %v5252_v37 = vor.u32 %v6645_v33, %v5251_v32  ;;  %v6709_v17 = vld [vmem:[#allocation8 + $0x59c] sm:$0xf0]  ;;  %v5221_v32 = vld [vmem:[#allocation8 + $0x360] sm:$0xf0]  ;;  %v7260_v33 = vld [vmem:[#allocation7] sm:$0xf] }
  0x92   :  { %1120 = vmatpush.bf16.msrb.mxu3 %v4752_v38  ;;  %v5219_v38 = vld [vmem:[#allocation8 + $0x340] sm:$0xf]  ;;  %v5508_v21 = vor.u32 %v6709_v17, %v5507_v16  ;;  %v5093_v16 = vld [vmem:[#allocation8 + $0x260] sm:$0xf0] }
  0x93   :  { %1082 = vmatpush.bf16.msrb.mxu0 %v4352_v44  ;;  %v5220_v43 = vor.u32 %v6637_v39, %v5219_v38  ;;  %v5187_v44 = vld [vmem:[#allocation8 + $0x300] sm:$0xf]  ;;  %v4933_v38 = vld [vmem:[#allocation8 + $0x120] sm:$0xf0] }
  0x94   :  { %1095 = vmatpush.bf16.msrb.mxu1 %v4480_v45  ;;  %v4932_v45 = vor.u32 %v6565_v42, %v4931_v41  ;;  %v6693_v36 = vld [vmem:[#allocation8 + $0x51c] sm:$0xf0]  ;;  %v274_v41 = vperm.slane %v7260_v33, 0  ;;  %v6625_v42 = vld [vmem:[#allocation8 + $0x304] sm:$0xf] }
  0x95   :  { %1108 = vmatpush.bf16.msrb.mxu2 %v4608_v46  ;;  %v4899_v46 = vld [vmem:[#allocation8 + $0xc0] sm:$0xf] }
  0x96   :  { %1121 = vmatpush.bf16.msrb.mxu3 %v4736_v50  ;;  %v4900_v49 = vor.u32 %v6557_v47, %v4899_v46  ;;  %v4867_v50 = vld [vmem:[#allocation8 + $0x80] sm:$0xf]  ;;  %v6553_v47 = vld [vmem:[#allocation8 + $0xc4] sm:$0xf] }
  0x97   :  { %1083 = vmatpush.bf16.msrb.mxu0 %v4336_v59  ;;  %v6541_v59 = vld [vmem:[#allocation8 + $0x5c] sm:$0xf0] }
  0x98   :  { %1096 = vmatpush.bf16.msrb.mxu1 %v4464_v61  ;;  %v5124_v61 = vor.u32 %v6613_v54, %v5123_v53  ;;  %v4836_v0 = vor.u32 %v6541_v59, %v4835_v56  ;;  %v6677_v56 = vld [vmem:[#allocation8 + $0x49c] sm:$0xf0]  ;;  %v6545_v59 = vld [vmem:[#allocation8 + $0x84] sm:$0xf] }
  0x99   :  { %1109 = vmatpush.bf16.msrb.mxu2 %v4592_v62  ;;  %v5091_v62 = vld [vmem:[#allocation8 + $0x240] sm:$0xf] }
  0x9a   :  { %1122 = vmatpush.bf16.msrb.mxu3 %v4720_v2  ;;  %v6533_v2 = vld [vmem:[#allocation8 + $0x1c] sm:$0xf0]  ;;  %v5092_v4 = vor.u32 %v6605_v63, %v5091_v62 }
  0x9b   :  { %1084 = vmatpush.bf16.msrb.mxu0 %v4320_v8  ;;  %v5059_v8 = vld [vmem:[#allocation8 + $0x200] sm:$0xf]  ;;  %v4804_v13 = vor.u32 %v6533_v2, %v4803_v1  ;;  %v6609_v1 = vld [vmem:[#allocation8 + $0x284] sm:$0xf] }
  0x9c   :  { %1097 = vmatpush.bf16.msrb.mxu1 %v4448_v10  ;;  %v5540_v10 = vor.u32 %v6717_v6, %v5539_v5  ;;  %v5125_v2 = vld [vmem:[#allocation8 + $0x2a0] sm:$0xf0]  ;;  %v5347_v6 = vld [vmem:[#allocation8 + $0x440] sm:$0xf] }
  0x9d   :  { %1110 = vmatpush.bf16.msrb.mxu2 %v4576_v11  ;;  %v6649_v11 = vld [vmem:[#allocation8 + $0x3c4] sm:$0xf]  ;;  %v6669_v7 = vld [vmem:[#allocation8 + $0x45c] sm:$0xf0] }
  0x9e   :  { %1123 = vmatpush.bf16.msrb.mxu3 %v4704_v15  ;;  %v5060_v15 = vor.u32 %v6597_v9, %v5059_v8  ;;  %v5288_v20 = vor.u32 %v6649_v11, %v5285_v12  ;;  %v6537_v9 = vld [vmem:[#allocation8 + $0x44] sm:$0xf]  ;;  %v5128_v12 = vor.u32 %v6609_v1, %v5125_v2 }
  0x9f   :  { %1085 = vmatpush.bf16.msrb.mxu0 %v4304_v22  ;;  %v6641_v22 = vld [vmem:[#allocation8 + $0x384] sm:$0xf] }
  0xa0   :  { %1098 = vmatpush.bf16.msrb.mxu1 %v4432_v25  ;;  %v5475_v25 = vld [vmem:[#allocation8 + $0x540] sm:$0xf]  ;;  %v5256_v29 = vor.u32 %v6641_v22, %v5253_v23  ;;  %v6590_v22 = vld [vmem:[#allocation8 + $0x1e4] sm:$0xf0]  ;;  %v5445_v2 = vld [vmem:[#allocation8 + $0x520] sm:$0xf0] }
  0xa1   :  { %1111 = vmatpush.bf16.msrb.mxu2 %v4560_v26  ;;  %v6701_v26 = vld [vmem:[#allocation8 + $0x55c] sm:$0xf0] }
  0xa2   :  { %1124 = vmatpush.bf16.msrb.mxu3 %v4688_v27  ;;  %1086 = vmatmul.bf16.vlgmr.msrb.gmra.mxu0 %v7238_v57  ;;  %v6629_v57 = vld [vmem:[#allocation8 + $0x31c] sm:$0xf0]  ;;  %v6569_v27 = vld [vmem:[#allocation8 + $0x144] sm:$0xf]  ;;  %v5476_v30 = vor.u32 %v6701_v26, %v5475_v25 }
  0xa3   :  { %2692 = vmatpush.bf16.msra.mxu0 %v5028_v28  ;;  %1099 = vmatmul.bf16.vlgmr.msrb.gmra.mxu1 %v7242_v60  ;;  %v5188_v60 = vor.u32 %v6629_v57, %v5187_v44  ;;  %v4965_v28 = vld [vmem:[#allocation8 + $0x160] sm:$0xf0]  ;;  %v5411_v57 = vld [vmem:[#allocation8 + $0x4c0] sm:$0xf] }
  0xa4   :  { %2705 = vmatpush.bf16.msra.mxu1 %v5284_v31  ;;  %1112 = vmatmul.bf16.vlgmr.msrb.gmra.mxu2 %v7236_v51  ;;  %v6621_v51 = vld [vmem:[#allocation8 + $0x2dc] sm:$0xf0]  ;;  %v6633_v31 = vld [vmem:[#allocation8 + $0x344] sm:$0xf] }
  0xa5   :  { %1125 = vmatmul.bf16.vlgmr.msrb.gmra.mxu3 %v7240_v58  ;;  %v6549_v58 = vld [vmem:[#allocation8 + $0x9c] sm:$0xf0]  ;;  %v5156_v52 = vor.u32 %v6621_v51, %v5155_v48  ;;  %2718 = vmatpush.bf16.msra.mxu2 %v5540_v10  ;;  %v5224_v39 = vor.u32 %v6633_v31, %v5221_v32  ;;  %v4837_v10 = vld [vmem:[#allocation8 + $0x60] sm:$0xf0] }
  0xa6   :  { %v4868_v55 = vor.u32 %v6549_v58, %v4867_v50  ;;  %v6617_v58 = vld [vmem:[#allocation8 + $0x2c4] sm:$0xf]  ;;  %v5315_v23 = vld [vmem:[#allocation8 + $0x400] sm:$0xf] }
  0xa7   :  { %2693 = vmatpush.bf16.msra.mxu0 %v4996_v34  ;;  %v4968_v34 = vor.u32 %v6569_v27, %v4965_v28  ;;  %v6593_v28 = vld [vmem:[#allocation8 + $0x204] sm:$0xf] }
  0xa8   :  { %2706 = vmatpush.bf16.msra.mxu1 %v5252_v37  ;;  %v6561_v37 = vld [vmem:[#allocation8 + $0x104] sm:$0xf] }
  0xa9   :  { %2719 = vmatpush.bf16.msra.mxu2 %v5508_v21  ;;  %v4936_v44 = vor.u32 %v6561_v37, %v4933_v38  ;;  %v5035_v21 = vld [vmem:[#allocation8 + $0x1c8] sm:$0xf]  ;;  %v5061_v32 = vld [vmem:[#allocation8 + $0x220] sm:$0xf0] }
  0xab   :  { %2694 = vmatpush.bf16.msra.mxu0 %v4964_v40  ;;  %v5444_v40 = vor.u32 %v6693_v36, %v5443_v35  ;;  %v6713_v35 = vld [vmem:[#allocation8 + $0x5c4] sm:$0xf] }
  0xac   :  { %2707 = vmatpush.bf16.msra.mxu1 %v5220_v43  ;;  %v5189_v43 = vld [vmem:[#allocation8 + $0x320] sm:$0xf0] }
  0xad   :  { %2720 = vmatpush.bf16.msra.mxu2 %v5476_v30  ;;  %v5192_v48 = vor.u32 %v6625_v42, %v5189_v43  ;;  %v6781_v30 = vld [vmem:[#allocation8 + $0x7dc] sm:$0xf0]  ;;  %v5541_v36 = vld [vmem:[#allocation8 + $0x5e0] sm:$0xf0] }
  0xae   :  { %v5544_v38 = vor.u32 %v6713_v35, %v5541_v36  ;;  %v5763_v42 = vld [vmem:[#allocation8 + $0x780] sm:$0xf]  ;;  %v6665_v35 = vld [vmem:[#allocation8 + $0x444] sm:$0xf]  ;;  %v4843_v36 = vld [vmem:[#allocation8 + $0x48] sm:$0xf] }
  0xaf   :  { %2695 = vmatpush.bf16.msra.mxu0 %v4932_v45  ;;  %v6685_v45 = vld [vmem:[#allocation8 + $0x4dc] sm:$0xf0] }
  0xb0   :  { %2708 = vmatpush.bf16.msra.mxu1 %v5188_v60  ;;  %v4901_v60 = vld [vmem:[#allocation8 + $0xe0] sm:$0xf0]  ;;  %v5412_v51 = vor.u32 %v6685_v45, %v5411_v57  ;;  %v6773_v43 = vld [vmem:[#allocation8 + $0x79c] sm:$0xf0]  ;;  %v5003_v57 = vld [vmem:[#allocation8 + $0x188] sm:$0xf] }
  0xb1   :  { %2721 = vmatpush.bf16.msra.mxu2 %v5444_v40  ;;  %v4904_v53 = vor.u32 %v6553_v47, %v4901_v60  ;;  %v5036_v40 = vor.u32 %v6590_v22, %v5035_v21  ;;  %v6582_v45 = vld [vmem:[#allocation8 + $0x1a4] sm:$0xf0]  ;;  %v5509_v47 = vld [vmem:[#allocation8 + $0x5a0] sm:$0xf0] }
  0xb2   :  { %v4875_v22 = vld [vmem:[#allocation8 + $0x88] sm:$0xf] }
  0xb3   :  { %2696 = vmatpush.bf16.msra.mxu0 %v4900_v49 }
  0xb4   :  { %2709 = vmatpush.bf16.msra.mxu1 %v5156_v52  ;;  %v5157_v52 = vld [vmem:[#allocation8 + $0x2e0] sm:$0xf0] }
  0xb5   :  { %2722 = vmatpush.bf16.msra.mxu2 %v5412_v51  ;;  %v5160_v62 = vor.u32 %v6617_v58, %v5157_v52  ;;  %v5731_v51 = vld [vmem:[#allocation8 + $0x740] sm:$0xf]  ;;  %v4971_v58 = vld [vmem:[#allocation8 + $0x148] sm:$0xf] }
  0xb6   :  { %v6574_v52 = vld [vmem:[#allocation8 + $0x164] sm:$0xf0] }
  0xb7   :  { %2697 = vmatpush.bf16.msra.mxu0 %v4868_v55  ;;  %v5379_v55 = vld [vmem:[#allocation8 + $0x480] sm:$0xf] }
  0xb8   :  { %2710 = vmatpush.bf16.msra.mxu1 %v5124_v61  ;;  %v4869_v61 = vld [vmem:[#allocation8 + $0xa0] sm:$0xf0]  ;;  %v5380_v63 = vor.u32 %v6677_v56, %v5379_v55  ;;  %v4972_v56 = vor.u32 %v6574_v52, %v4971_v58  ;;  %v5259_v52 = vld [vmem:[#allocation8 + $0x388] sm:$0xf] }
  0xb9   :  { %v4872_v5 = vor.u32 %v6545_v59, %v4869_v61  ;;  %v5699_v59 = vld [vmem:[#allocation8 + $0x700] sm:$0xf] }
  0xba   :  { %2723 = vmatpush.bf16.msra.mxu2 %v5380_v63  ;;  %v6757_v61 = vld [vmem:[#allocation8 + $0x71c] sm:$0xf0]  ;;  %v4939_v63 = vld [vmem:[#allocation8 + $0x108] sm:$0xf] }
  0xbb   :  { %2698 = vmatpush.bf16.msra.mxu0 %v4836_v0  ;;  %v5700_v1 = vor.u32 %v6757_v61, %v5699_v59  ;;  %v6646_v59 = vld [vmem:[#allocation8 + $0x3a4] sm:$0xf0] }
  0xbc   :  { %2711 = vmatpush.bf16.msra.mxu1 %v5092_v4 }
  0xbf   :  { %2699 = vmatpush.bf16.msra.mxu0 %v4804_v13  ;;  %v5348_v13 = vor.u32 %v6669_v7, %v5347_v6  ;;  %v5667_v6 = vld [vmem:[#allocation8 + $0x6c0] sm:$0xf] }
  0xc0   :  { %2712 = vmatpush.bf16.msra.mxu1 %v5060_v15  ;;  %v944_v50 = vpop.f32.mrf.mxu1  ;;  %v6601_v15 = vld [vmem:[#allocation8 + $0x244] sm:$0xf]  ;;  %v6749_v7 = vld [vmem:[#allocation8 + $0x6dc] sm:$0xf0] }
  0xc1   :  { %2724 = vmatpush.bf16.msra.mxu2 %v5348_v13  ;;  %v5096_v26 = vor.u32 %v6601_v15, %v5093_v16 }
  0xc2   :  { %v931_v46 = vpop.f32.mrf.mxu0 }
  0xc3   :  { %2744 = vmatpush.bf16.msrb.mxu0 %v5032_v14  ;;  %v932_v49 = vadd.f32 %v931_v46, %v274_v41  ;;  %v5064_v41 = vor.u32 %v6593_v28, %v5061_v32  ;;  %v5764_v46 = vor.u32 %v6773_v43, %v5763_v42  ;;  %v5603_v32 = vld [vmem:[#allocation8 + $0x640] sm:$0xf]  ;;  %v6654_v42 = vld [vmem:[#allocation8 + $0x3e4] sm:$0xf0] }
  0xc4   :  { %2757 = vmatpush.bf16.msrb.mxu1 %v5288_v20  ;;  %v4840_v20 = vor.u32 %v6537_v9, %v4837_v10  ;;  %v4907_v9 = vld [vmem:[#allocation8 + $0xc8] sm:$0xf] }
  0xc5   :  { %v945_v54 = vadd.f32 %v944_v50, %v932_v49  ;;  %v6765_v49 = vld [vmem:[#allocation8 + $0x75c] sm:$0xf0]  ;;  %v6697_v50 = vld [vmem:[#allocation8 + $0x544] sm:$0xf]  ;;  %v6558_v10 = vld [vmem:[#allocation8 + $0xe4] sm:$0xf0] }
  0xc7   :  { %2745 = vmatpush.bf16.msrb.mxu0 %v5000_v24  ;;  %v957_v0 = vpop.f32.mrf.mxu2  ;;  %v6661_v24 = vld [vmem:[#allocation8 + $0x41c] sm:$0xf0] }
  0xc8   :  { %2758 = vmatpush.bf16.msrb.mxu1 %v5256_v29  ;;  %v958_v3 = vadd.f32 %v957_v0, %v945_v54  ;;  %v946_v14 = vpop.f32.mrf.mxu1  ;;  %v5316_v27 = vor.u32 %v6661_v24, %v5315_v23  ;;  %v5795_v29 = vld [vmem:[#allocation8 + $0x7c0] sm:$0xf]  ;;  %v5477_v54 = vld [vmem:[#allocation8 + $0x560] sm:$0xf0]  ;;  %v6566_v0 = vld [vmem:[#allocation8 + $0x124] sm:$0xf0] }
  0xc9   :  { %v5480_v55 = vor.u32 %v6697_v50, %v5477_v54  ;;  %v6550_v23 = vld [vmem:[#allocation8 + $0xa4] sm:$0xf0]  ;;  %v6725_v50 = vld [vmem:[#allocation8 + $0x61c] sm:$0xf0]  ;;  %v6657_v54 = vld [vmem:[#allocation8 + $0x404] sm:$0xf] }
  0xca   :  { %v970_v4 = vpop.f32.mrf.mxu3  ;;  %v933_v11 = vpop.f32.mrf.mxu0  ;;  %2725 = vmatpush.bf16.msra.mxu2 %v5316_v27 }
  0xcb   :  { %2746 = vmatpush.bf16.msrb.mxu0 %v4968_v34  ;;  %v971_v8 = vadd.f32 %v970_v4, %v958_v3  ;;  %v5796_v34 = vor.u32 %v6781_v30, %v5795_v29  ;;  %v275_v4 = vperm.slane %v7260_v33, 1  ;;  %v5668_v11 = vor.u32 %v6749_v7, %v5667_v6  ;;  %v6578_v6 = vld [vmem:[#allocation8 + $0x18c] sm:$0xf] }
  0xcc   :  { %2759 = vmatpush.bf16.msrb.mxu1 %v5224_v39  ;;  %v4808_v39 = vor.u32 %v6529_v18, %v4805_v19  ;;  %v5635_v18 = vld [vmem:[#allocation8 + $0x680] sm:$0xf]  ;;  %v5005_v7 = vld [vmem:[#allocation8 + $0x1a8] sm:$0xf0] }
  0xcd   :  { %v1130_v17 = vmax.f32 %v971_v8, 0.0  ;;  %2731 = vmatpush.bf16.msra.mxu3 %v5796_v34  ;;  %v6681_v8 = vld [vmem:[#allocation8 + $0x4c4] sm:$0xf]  ;;  %v6741_v19 = vld [vmem:[#allocation8 + $0x69c] sm:$0xf0] }
  0xce   :  { %2770 = vmatpush.bf16.msrb.mxu2 %v5544_v38  ;;  %v5636_v24 = vor.u32 %v6741_v19, %v5635_v18  ;;  %v6733_v34 = vld [vmem:[#allocation8 + $0x65c] sm:$0xf0]  ;;  %v4973_v18 = vld [vmem:[#allocation8 + $0x168] sm:$0xf0]  ;;  %v5195_v19 = vld [vmem:[#allocation8 + $0x308] sm:$0xf] }
  0xcf   :  { %2747 = vmatpush.bf16.msrb.mxu0 %v4936_v44  ;;  %v7263_v25 = vpack.c.bf16 %v1130_v17, %v1130_v17  ;;  %v959_v31 = vpop.f32.mrf.mxu2  ;;  %v6705_v44 = vld [vmem:[#allocation8 + $0x584] sm:$0xf]  ;;  %v4908_v17 = vor.u32 %v6558_v10, %v4907_v9  ;;  %v5604_v38 = vor.u32 %v6733_v34, %v5603_v32  ;;  %v5227_v9 = vld [vmem:[#allocation8 + $0x348] sm:$0xf]  ;;  %v276_v32 = vperm.slane %v7260_v33, 2 }
  0xd0   :  { %2760 = vmatpush.bf16.msrb.mxu1 %v5192_v48  ;;  %v5512_v60 = vor.u32 %v6705_v44, %v5509_v47  ;;  %v5004_v48 = vor.u32 %v6582_v45, %v5003_v57  ;;  %v4876_v31 = vor.u32 %v6550_v23, %v4875_v22  ;;  %v4811_v57 = vld [vmem:[#allocation8 + $0x8] sm:$0xf] }
  0xd1   :  { %2700 = vmatmul.bf16.vlgmr.msra.gmra.mxu0 %v7263_v25  ;;  %2732 = vmatpush.bf16.msra.mxu3 %v5764_v46  ;;  %v6534_v45 = vld [vmem:[#allocation8 + $0x24] sm:$0xf0] }
  0xd2   :  { %v972_v37 = vpop.f32.mrf.mxu3  ;;  %2771 = vmatpush.bf16.msrb.mxu2 %v5512_v60  ;;  %v6638_v10 = vld [vmem:[#allocation8 + $0x364] sm:$0xf0] }
  0xd3   :  { %2748 = vmatpush.bf16.msrb.mxu0 %v4904_v53  ;;  %v5732_v53 = vor.u32 %v6765_v49, %v5731_v51  ;;  %v6542_v37 = vld [vmem:[#allocation8 + $0x64] sm:$0xf0]  ;;  %v5037_v51 = vld [vmem:[#allocation8 + $0x1e8] sm:$0xf0]  ;;  %v5571_v49 = vld [vmem:[#allocation8 + $0x600] sm:$0xf] }
  0xd4   :  { %2761 = vmatpush.bf16.msrb.mxu1 %v5160_v62  ;;  %v6689_v62 = vld [vmem:[#allocation8 + $0x504] sm:$0xf]  ;;  %v4844_v60 = vor.u32 %v6542_v37, %v4843_v36  ;;  %v6554_v36 = vld [vmem:[#allocation8 + $0xcc] sm:$0xf] }
  0xd5   :  { %2733 = vmatpush.bf16.msra.mxu3 %v5732_v53  ;;  %v5448_v3 = vor.u32 %v6689_v62, %v5445_v2  ;;  %v5572_v53 = vor.u32 %v6725_v50, %v5571_v49  ;;  %v6777_v62 = vld [vmem:[#allocation8 + $0x7c4] sm:$0xf]  ;;  %v4812_v2 = vor.u32 %v6534_v45, %v4811_v57  ;;  %v5099_v49 = vld [vmem:[#allocation8 + $0x248] sm:$0xf] }
  0xd6   :  { %2772 = vmatpush.bf16.msrb.mxu2 %v5480_v55  ;;  %v5317_v55 = vld [vmem:[#allocation8 + $0x420] sm:$0xf0]  ;;  %v6606_v50 = vld [vmem:[#allocation8 + $0x264] sm:$0xf0] }
  0xd7   :  { %2749 = vmatpush.bf16.msrb.mxu0 %v4872_v5  ;;  %v4940_v5 = vor.u32 %v6566_v0, %v4939_v63  ;;  %v5320_v61 = vor.u32 %v6657_v54, %v5317_v55  ;;  %v5797_v63 = vld [vmem:[#allocation8 + $0x7e0] sm:$0xf0]  ;;  %v5100_v55 = vor.u32 %v6606_v50, %v5099_v49 }
  0xd8   :  { %2762 = vmatpush.bf16.msrb.mxu1 %v5128_v12  ;;  %v5413_v12 = vld [vmem:[#allocation8 + $0x4e0] sm:$0xf0] }
  0xd9   :  { %2734 = vmatpush.bf16.msra.mxu3 %v5700_v1  ;;  %v5416_v14 = vor.u32 %v6681_v8, %v5413_v12  ;;  %v5800_v1 = vor.u32 %v6777_v62, %v5797_v63  ;;  %v6769_v8 = vld [vmem:[#allocation8 + $0x784] sm:$0xf] }
  0xda   :  { %2773 = vmatpush.bf16.msrb.mxu2 %v5448_v3  ;;  %v6745_v37 = vld [vmem:[#allocation8 + $0x6c4] sm:$0xf] }
  0xdb   :  { %2750 = vmatpush.bf16.msrb.mxu0 %v4840_v20  ;;  %v6673_v20 = vld [vmem:[#allocation8 + $0x484] sm:$0xf] }
  0xdc   :  { %2763 = vmatpush.bf16.msrb.mxu1 %v5096_v26  ;;  %v5381_v26 = vld [vmem:[#allocation8 + $0x4a0] sm:$0xf0] }
  0xdd   :  { %2735 = vmatpush.bf16.msra.mxu3 %v5668_v11  ;;  %v5384_v27 = vor.u32 %v6673_v20, %v5381_v26  ;;  %v5765_v11 = vld [vmem:[#allocation8 + $0x7a0] sm:$0xf0]  ;;  %v6630_v20 = vld [vmem:[#allocation8 + $0x324] sm:$0xf0] }
  0xde   :  { %2774 = vmatpush.bf16.msrb.mxu2 %v5416_v14  ;;  %v5768_v12 = vor.u32 %v6769_v8, %v5765_v11  ;;  %v5228_v14 = vor.u32 %v6638_v10, %v5227_v9  ;;  %v5196_v23 = vor.u32 %v6630_v20, %v5195_v19  ;;  %v6753_v26 = vld [vmem:[#allocation8 + $0x704] sm:$0xf]  ;;  %v5547_v9 = vld [vmem:[#allocation8 + $0x5c8] sm:$0xf]  ;;  %v4813_v19 = vld [vmem:[#allocation8 + $0x28] sm:$0xf0] }
  0xdf   :  { %2751 = vmatpush.bf16.msrb.mxu0 %v4808_v39  ;;  %v983_v13 = vpop.f32.mrf.mxu0  ;;  %v5349_v39 = vld [vmem:[#allocation8 + $0x460] sm:$0xf0]  ;;  %v6718_v10 = vld [vmem:[#allocation8 + $0x5e4] sm:$0xf0]  ;;  %v5043_v20 = vld [vmem:[#allocation8 + $0x1d0] sm:$0xf] }
  0xe0   :  { %2764 = vmatpush.bf16.msrb.mxu1 %v5064_v41  ;;  %v984_v15 = vadd.f32 %v983_v13, %v275_v4  ;;  %v996_v16 = vpop.f32.mrf.mxu1  ;;  %v5291_v41 = vld [vmem:[#allocation8 + $0x3c8] sm:$0xf]  ;;  %v5352_v44 = vor.u32 %v6665_v35, %v5349_v39  ;;  %v5008_v13 = vor.u32 %v6578_v6, %v5005_v7  ;;  %v4909_v39 = vld [vmem:[#allocation8 + $0xe8] sm:$0xf0]  ;;  %v5605_v62 = vld [vmem:[#allocation8 + $0x660] sm:$0xf0] }
  0xe1   :  { %2736 = vmatpush.bf16.msra.mxu3 %v5636_v24  ;;  %v5292_v58 = vor.u32 %v6654_v42, %v5291_v41  ;;  %v6562_v24 = vld [vmem:[#allocation8 + $0x10c] sm:$0xf]  ;;  %v6614_v41 = vld [vmem:[#allocation8 + $0x2a4] sm:$0xf0]  ;;  %v4912_v45 = vor.u32 %v6554_v36, %v4909_v39  ;;  %v5011_v36 = vld [vmem:[#allocation8 + $0x190] sm:$0xf] }
  0xe2   :  { %2752 = vmatmul.bf16.vlgmr.msrb.gmra.mxu0 %v7263_v25  ;;  %v997_v21 = vadd.f32 %v996_v16, %v984_v15  ;;  %2775 = vmatpush.bf16.msrb.mxu2 %v5384_v27  ;;  %v6570_v15 = vld [vmem:[#allocation8 + $0x14c] sm:$0xf]  ;;  %v6761_v16 = vld [vmem:[#allocation8 + $0x744] sm:$0xf] }
  0xe3   :  { %2796 = vmatpush.bf16.msra.mxu0 %v5036_v40  ;;  %v4976_v22 = vor.u32 %v6570_v15, %v4973_v18  ;;  %v5701_v27 = vld [vmem:[#allocation8 + $0x720] sm:$0xf0]  ;;  %v5293_v6 = vld [vmem:[#allocation8 + $0x3e8] sm:$0xf0] }
  0xe4   :  { %v6721_v15 = vld [vmem:[#allocation8 + $0x604] sm:$0xf]  ;;  %v6634_v39 = vld [vmem:[#allocation8 + $0x34c] sm:$0xf] }
  0xe5   :  { %2737 = vmatpush.bf16.msra.mxu3 %v5604_v38  ;;  %v5669_v38 = vld [vmem:[#allocation8 + $0x6e0] sm:$0xf0] }
  0xe6   :  { %2776 = vmatpush.bf16.msrb.mxu2 %v5352_v44  ;;  %v5672_v42 = vor.u32 %v6745_v37, %v5669_v38  ;;  %v6583_v38 = vld [vmem:[#allocation8 + $0x1ac] sm:$0xf0] }
  0xe7   :  { %2797 = vmatpush.bf16.msra.mxu0 %v5004_v48  ;;  %v1009_v28 = vpop.f32.mrf.mxu2  ;;  %v985_v43 = vpop.f32.mrf.mxu0  ;;  %v6586_v48 = vld [vmem:[#allocation8 + $0x1cc] sm:$0xf] }
  0xe8   :  { %v1010_v29 = vadd.f32 %v1009_v28, %v997_v21  ;;  %v1022_v30 = vpop.f32.mrf.mxu3  ;;  %v998_v46 = vpop.f32.mrf.mxu1  ;;  %v5040_v4 = vor.u32 %v6586_v48, %v5037_v51  ;;  %v4941_v28 = vld [vmem:[#allocation8 + $0x128] sm:$0xf0]  ;;  %v5637_v48 = vld [vmem:[#allocation8 + $0x6a0] sm:$0xf0] }
  0xe9   :  { %2738 = vmatpush.bf16.msra.mxu3 %v5572_v53  ;;  %v4944_v34 = vor.u32 %v6562_v24, %v4941_v28  ;;  %v4877_v51 = vld [vmem:[#allocation8 + $0xa8] sm:$0xf0]  ;;  %v5515_v28 = vld [vmem:[#allocation8 + $0x588] sm:$0xf] }
  0xea   :  { %v1023_v40 = vadd.f32 %v1022_v30, %v1010_v29  ;;  %2777 = vmatpush.bf16.msrb.mxu2 %v5320_v61  ;;  %v5163_v29 = vld [vmem:[#allocation8 + $0x2c8] sm:$0xf]  ;;  %v6729_v61 = vld [vmem:[#allocation8 + $0x644] sm:$0xf]  ;;  %v5261_v24 = vld [vmem:[#allocation8 + $0x3a8] sm:$0xf0] }
  0xeb   :  { %2798 = vmatpush.bf16.msra.mxu0 %v4972_v56  ;;  %v6622_v30 = vld [vmem:[#allocation8 + $0x2e4] sm:$0xf0] }
  0xec   :  { %v1131_v47 = vmax.f32 %v1023_v40, 0.0  ;;  %v5164_v35 = vor.u32 %v6622_v30, %v5163_v29  ;;  %v5131_v40 = vld [vmem:[#allocation8 + $0x288] sm:$0xf] }
  0xed   :  { %2783 = vmatpush.bf16.msrb.mxu3 %v5800_v1  ;;  %v5132_v46 = vor.u32 %v6614_v41, %v5131_v40  ;;  %v4845_v1 = vld [vmem:[#allocation8 + $0x68] sm:$0xf0]  ;;  %v6710_v29 = vld [vmem:[#allocation8 + $0x5a4] sm:$0xf0] }
  0xee   :  { %v7268_v56 = vpack.c.bf16 %v1131_v47, %v1131_v47  ;;  %v6546_v47 = vld [vmem:[#allocation8 + $0x8c] sm:$0xf]  ;;  %v5516_v37 = vor.u32 %v6710_v29, %v5515_v28  ;;  %v5483_v41 = vld [vmem:[#allocation8 + $0x548] sm:$0xf] }
  0xef   :  { %2799 = vmatpush.bf16.msra.mxu0 %v4940_v5  ;;  %v1011_v0 = vpop.f32.mrf.mxu2  ;;  %v5260_v5 = vor.u32 %v6646_v59, %v5259_v52  ;;  %v4880_v54 = vor.u32 %v6546_v47, %v4877_v51  ;;  %v6538_v59 = vld [vmem:[#allocation8 + $0x4c] sm:$0xf]  ;;  %v6694_v51 = vld [vmem:[#allocation8 + $0x524] sm:$0xf0] }
  0xf0   :  { %2713 = vmatmul.bf16.vlgmr.msra.gmra.mxu1 %v7268_v56  ;;  %v1024_v3 = vpop.f32.mrf.mxu3  ;;  %v4848_v11 = vor.u32 %v6538_v59, %v4845_v1  ;;  %v5229_v40 = vld [vmem:[#allocation8 + $0x368] sm:$0xf0]  ;;  %v5323_v28 = vld [vmem:[#allocation8 + $0x408] sm:$0xf] }
  0xf1   :  { %2809 = vmatpush.bf16.msra.mxu1 %v5292_v58  ;;  %2784 = vmatpush.bf16.msrb.mxu3 %v5768_v12  ;;  %v6598_v3 = vld [vmem:[#allocation8 + $0x224] sm:$0xf0]  ;;  %v6626_v47 = vld [vmem:[#allocation8 + $0x30c] sm:$0xf] }
  0xf2   :  { %v6618_v59 = vld [vmem:[#allocation8 + $0x2cc] sm:$0xf] }
  0xf3   :  { %2800 = vmatpush.bf16.msra.mxu0 %v4908_v17  ;;  %v5733_v17 = vld [vmem:[#allocation8 + $0x760] sm:$0xf0] }
  0xf4   :  { %v5736_v21 = vor.u32 %v6761_v16, %v5733_v17  ;;  %v5573_v16 = vld [vmem:[#allocation8 + $0x620] sm:$0xf0] }
  0xf5   :  { %2810 = vmatpush.bf16.msra.mxu1 %v5260_v5  ;;  %v6650_v5 = vld [vmem:[#allocation8 + $0x3cc] sm:$0xf] }
  0xf6   :  { %2785 = vmatpush.bf16.msrb.mxu3 %v5736_v21  ;;  %v5296_v18 = vor.u32 %v6650_v5, %v5293_v6  ;;  %v5548_v21 = vor.u32 %v6718_v10, %v5547_v9  ;;  %v6678_v6 = vld [vmem:[#allocation8 + $0x4a4] sm:$0xf0] }
  0xf7   :  { %2801 = vmatpush.bf16.msra.mxu0 %v4876_v31  ;;  %v5704_v31 = vor.u32 %v6753_v26, %v5701_v27  ;;  %v5576_v26 = vor.u32 %v6721_v15, %v5573_v16  ;;  %v5355_v15 = vld [vmem:[#allocation8 + $0x448] sm:$0xf] }
  0xf9   :  { %2811 = vmatpush.bf16.msra.mxu1 %v5228_v14  ;;  %v6530_v14 = vld [vmem:[#allocation8 + $0xc] sm:$0xf] }
  0xfa   :  { %2786 = vmatpush.bf16.msrb.mxu3 %v5704_v31  ;;  %v4816_v30 = vor.u32 %v6530_v14, %v4813_v19  ;;  %v6551_v14 = vld [vmem:[#allocation8 + $0xac] sm:$0xf0]  ;;  %v5101_v19 = vld [vmem:[#allocation8 + $0x268] sm:$0xf0] }
  0xfb   :  { %2802 = vmatpush.bf16.msra.mxu0 %v4844_v60  ;;  %v6737_v60 = vld [vmem:[#allocation8 + $0x684] sm:$0xf] }
  0xfc   :  { %v5640_v58 = vor.u32 %v6737_v60, %v5637_v48  ;;  %v5197_v60 = vld [vmem:[#allocation8 + $0x328] sm:$0xf0]  ;;  %v5451_v48 = vld [vmem:[#allocation8 + $0x508] sm:$0xf] }
  0xfd   :  { %2812 = vmatpush.bf16.msra.mxu1 %v5196_v23  ;;  %v6642_v23 = vld [vmem:[#allocation8 + $0x38c] sm:$0xf]  ;;  %v5200_v50 = vor.u32 %v6626_v47, %v5197_v60  ;;  %v6535_v47 = vld [vmem:[#allocation8 + $0x2c] sm:$0xf0] }
  0xfe   :  { %2787 = vmatpush.bf16.msrb.mxu3 %v5672_v42  ;;  %v6702_v42 = vld [vmem:[#allocation8 + $0x564] sm:$0xf0] }
  0xff   :  { %2803 = vmatpush.bf16.msra.mxu0 %v4812_v2  ;;  %v1035_v43 = vpop.f32.mrf.mxu0  ;;  %v5067_v2 = vld [vmem:[#allocation8 + $0x208] sm:$0xf] }
 0x100   :  { %2765 = vmatmul.bf16.vlgmr.msrb.gmra.mxu1 %v7268_v56  ;;  %v1036_v44 = vadd.f32 %v1035_v43, %v276_v32  ;;  %v1048_v57 = vpop.f32.mrf.mxu1  ;;  %v5068_v12 = vor.u32 %v6598_v3, %v5067_v2  ;;  %v5012_v43 = vor.u32 %v6583_v38, %v5011_v36  ;;  %v4915_v2 = vld [vmem:[#allocation8 + $0xd0] sm:$0xf]  ;;  %v6714_v38 = vld [vmem:[#allocation8 + $0x5cc] sm:$0xf] }
 0x101   :  { %2813 = vmatpush.bf16.msra.mxu1 %v5164_v35  ;;  %v6559_v3 = vld [vmem:[#allocation8 + $0xec] sm:$0xf0] }
 0x102   :  { %2804 = vmatmul.bf16.vlgmr.msra.gmra.mxu0 %v7263_v25  ;;  %v1049_v52 = vadd.f32 %v1048_v57, %v1036_v44  ;;  %2788 = vmatpush.bf16.msrb.mxu3 %v5640_v58  ;;  %v5232_v44 = vor.u32 %v6634_v39, %v5229_v40  ;;  %v4979_v57 = vld [vmem:[#allocation8 + $0x150] sm:$0xf]  ;;  %v5452_v58 = vor.u32 %v6694_v51, %v5451_v48  ;;  %v5549_v39 = vld [vmem:[#allocation8 + $0x5e8] sm:$0xf0]  ;;  %v6587_v51 = vld [vmem:[#allocation8 + $0x1d4] sm:$0xf] }
 0x103   :  { %2848 = vmatpush.bf16.msrb.mxu0 %v5040_v4  ;;  %v5608_v4 = vor.u32 %v6729_v61, %v5605_v62  ;;  %v5165_v61 = vld [vmem:[#allocation8 + $0x2e8] sm:$0xf0]  ;;  %v277_v62 = vperm.slane %v7260_v33, 3  ;;  %v5552_v48 = vor.u32 %v6714_v38, %v5549_v39  ;;  %v5171_v38 = vld [vmem:[#allocation8 + $0x2d0] sm:$0xf] }
 0x104   :  { %v5168_v1 = vor.u32 %v6618_v59, %v5165_v61  ;;  %v6774_v61 = vld [vmem:[#allocation8 + $0x7a4] sm:$0xf0]  ;;  %v6623_v39 = vld [vmem:[#allocation8 + $0x2ec] sm:$0xf0] }
 0x105   :  { %2814 = vmatpush.bf16.msra.mxu1 %v5132_v46  ;;  %v6575_v46 = vld [vmem:[#allocation8 + $0x16c] sm:$0xf0] }
 0x106   :  { %2789 = vmatpush.bf16.msrb.mxu3 %v5608_v4  ;;  %v4980_v49 = vor.u32 %v6575_v46, %v4979_v57  ;;  %v5387_v4 = vld [vmem:[#allocation8 + $0x488] sm:$0xf]  ;;  %v4819_v46 = vld [vmem:[#allocation8 + $0x10] sm:$0xf] }
 0x107   :  { %2849 = vmatpush.bf16.msrb.mxu0 %v5008_v13  ;;  %v1061_v53 = vpop.f32.mrf.mxu2  ;;  %v1037_v8 = vpop.f32.mrf.mxu0  ;;  %v5388_v33 = vor.u32 %v6678_v6, %v5387_v4  ;;  %v4820_v59 = vor.u32 %v6535_v47, %v4819_v46  ;;  %v6579_v4 = vld [vmem:[#allocation8 + $0x194] sm:$0xf]  ;;  %v6674_v46 = vld [vmem:[#allocation8 + $0x48c] sm:$0xf] }
 0x108   :  { %v1062_v63 = vadd.f32 %v1061_v53, %v1049_v52  ;;  %v1074_v0 = vpop.f32.mrf.mxu3  ;;  %v1050_v13 = vpop.f32.mrf.mxu1  ;;  %v4947_v52 = vld [vmem:[#allocation8 + $0x110] sm:$0xf]  ;;  %v5133_v8 = vld [vmem:[#allocation8 + $0x2a8] sm:$0xf0] }
 0x109   :  { %2815 = vmatpush.bf16.msra.mxu1 %v5100_v55  ;;  %v6567_v53 = vld [vmem:[#allocation8 + $0x12c] sm:$0xf0]  ;;  %v6686_v55 = vld [vmem:[#allocation8 + $0x4e4] sm:$0xf0]  ;;  %v5389_v47 = vld [vmem:[#allocation8 + $0x4a8] sm:$0xf0] }
 0x10a   :  { %v1075_v7 = vadd.f32 %v1074_v0, %v1062_v63  ;;  %2790 = vmatpush.bf16.msrb.mxu3 %v5576_v26  ;;  %v4948_v63 = vor.u32 %v6567_v53, %v4947_v52  ;;  %v4883_v13 = vld [vmem:[#allocation8 + $0x90] sm:$0xf]  ;;  %v5771_v52 = vld [vmem:[#allocation8 + $0x788] sm:$0xf]  ;;  %v6706_v53 = vld [vmem:[#allocation8 + $0x58c] sm:$0xf] }
 0x10b   :  { %2850 = vmatpush.bf16.msrb.mxu0 %v4976_v22  ;;  %v6591_v22 = vld [vmem:[#allocation8 + $0x1ec] sm:$0xf0]  ;;  %v5772_v6 = vor.u32 %v6774_v61, %v5771_v52  ;;  %v4885_v52 = vld [vmem:[#allocation8 + $0xb0] sm:$0xf0]  ;;  %v6666_v61 = vld [vmem:[#allocation8 + $0x44c] sm:$0xf] }
 0x10c   :  { %v1132_v17 = vmax.f32 %v1075_v7, 0.0  ;;  %v5044_v32 = vor.u32 %v6591_v22, %v5043_v20  ;;  %v6610_v7 = vld [vmem:[#allocation8 + $0x28c] sm:$0xf]  ;;  %v4884_v20 = vor.u32 %v6551_v14, %v4883_v13  ;;  %v6543_v26 = vld [vmem:[#allocation8 + $0x6c] sm:$0xf0] }
 0x10d   :  { %2816 = vmatpush.bf16.msra.mxu1 %v5068_v12  ;;  %v5136_v12 = vor.u32 %v6610_v7, %v5133_v8  ;;  %v5739_v8 = vld [vmem:[#allocation8 + $0x748] sm:$0xf] }
 0x10e   :  { %v7274_v27 = vpack.c.bf16 %v1132_v17, %v1132_v17  ;;  %v6670_v17 = vld [vmem:[#allocation8 + $0x464] sm:$0xf0] }
 0x10f   :  { %2851 = vmatpush.bf16.msrb.mxu0 %v4944_v34  ;;  %v1063_v31 = vpop.f32.mrf.mxu2  ;;  %v5264_v34 = vor.u32 %v6642_v23, %v5261_v24  ;;  %v5356_v22 = vor.u32 %v6670_v17, %v5355_v15  ;;  %v4851_v24 = vld [vmem:[#allocation8 + $0x50] sm:$0xf]  ;;  %v6571_v15 = vld [vmem:[#allocation8 + $0x154] sm:$0xf] }
 0x110   :  { %2726 = vmatmul.bf16.vlgmr.msra.gmra.mxu2 %v7274_v27  ;;  %v1076_v35 = vpop.f32.mrf.mxu3  ;;  %2817 = vmatmul.bf16.vlgmr.msra.gmra.mxu1 %v7268_v56 }
 0x111   :  { %2861 = vmatpush.bf16.msrb.mxu1 %v5296_v18  ;;  %2822 = vmatpush.bf16.msra.mxu2 %v5548_v21  ;;  %v6602_v18 = vld [vmem:[#allocation8 + $0x24c] sm:$0xf] }
 0x112   :  { %v5104_v23 = vor.u32 %v6602_v18, %v5101_v19  ;;  %v5069_v35 = vld [vmem:[#allocation8 + $0x228] sm:$0xf0]  ;;  %v5707_v19 = vld [vmem:[#allocation8 + $0x708] sm:$0xf] }
 0x113   :  { %2852 = vmatpush.bf16.msrb.mxu0 %v4912_v45  ;;  %v5484_v45 = vor.u32 %v6702_v42, %v5483_v41  ;;  %v4852_v41 = vor.u32 %v6543_v26, %v4851_v24  ;;  %v6782_v42 = vld [vmem:[#allocation8 + $0x7e4] sm:$0xf0]  ;;  %v6631_v24 = vld [vmem:[#allocation8 + $0x32c] sm:$0xf0] }
 0x115   :  { %2862 = vmatpush.bf16.msrb.mxu1 %v5264_v34  ;;  %2823 = vmatpush.bf16.msra.mxu2 %v5516_v37  ;;  %v6594_v34 = vld [vmem:[#allocation8 + $0x20c] sm:$0xf]  ;;  %v5803_v37 = vld [vmem:[#allocation8 + $0x7c8] sm:$0xf] }
 0x117   :  { %2853 = vmatpush.bf16.msrb.mxu0 %v4880_v54  ;;  %v5419_v54 = vld [vmem:[#allocation8 + $0x4c8] sm:$0xf] }
 0x118   :  { %v5420_v0 = vor.u32 %v6686_v55, %v5419_v54  ;;  %v5517_v54 = vld [vmem:[#allocation8 + $0x5a8] sm:$0xf0] }
 0x119   :  { %2863 = vmatpush.bf16.msrb.mxu1 %v5232_v44  ;;  %2824 = vmatpush.bf16.msra.mxu2 %v5484_v45  ;;  %v6655_v44 = vld [vmem:[#allocation8 + $0x3ec] sm:$0xf0]  ;;  %v5072_v45 = vor.u32 %v6594_v34, %v5069_v35  ;;  %v5675_v34 = vld [vmem:[#allocation8 + $0x6c8] sm:$0xf]  ;;  %v6682_v35 = vld [vmem:[#allocation8 + $0x4cc] sm:$0xf] }
 0x11b   :  { %2854 = vmatpush.bf16.msrb.mxu0 %v4848_v11  ;;  %v4916_v11 = vor.u32 %v6559_v3, %v4915_v2  ;;  %v5520_v3 = vor.u32 %v6706_v53, %v5517_v54 }
 0x11d   :  { %2864 = vmatpush.bf16.msrb.mxu1 %v5200_v50  ;;  %2825 = vmatpush.bf16.msra.mxu2 %v5452_v58  ;;  %v5804_v50 = vor.u32 %v6782_v42, %v5803_v37  ;;  %v6750_v37 = vld [vmem:[#allocation8 + $0x6e4] sm:$0xf0]  ;;  %v6555_v42 = vld [vmem:[#allocation8 + $0xd4] sm:$0xf] }
 0x11f   :  { %2855 = vmatpush.bf16.msrb.mxu0 %v4816_v30  ;;  %v1087_v5 = vpop.f32.mrf.mxu0 }
 0x120   :  { %v1088_v9 = vadd.f32 %v1087_v5, %v277_v62  ;;  %v1100_v10 = vpop.f32.mrf.mxu1  ;;  %2778 = vmatmul.bf16.vlgmr.msrb.gmra.mxu2 %v7274_v27  ;;  %v5267_v62 = vld [vmem:[#allocation8 + $0x390] sm:$0xf]  ;;  %v5013_v5 = vld [vmem:[#allocation8 + $0x1b0] sm:$0xf0] }
 0x121   :  { %2826 = vmatpush.bf16.msra.mxu2 %v5420_v0  ;;  %2865 = vmatpush.bf16.msrb.mxu1 %v5168_v1  ;;  %v5016_v13 = vor.u32 %v6579_v4, %v5013_v5  ;;  %v6539_v4 = vld [vmem:[#allocation8 + $0x54] sm:$0xf] }
 0x122   :  { %2856 = vmatmul.bf16.vlgmr.msrb.gmra.mxu0 %v7263_v25  ;;  %v1101_v16 = vadd.f32 %v1100_v10, %v1088_v9  ;;  %v6698_v9 = vld [vmem:[#allocation8 + $0x54c] sm:$0xf]  ;;  %v4853_v5 = vld [vmem:[#allocation8 + $0x70] sm:$0xf0] }
 0x123   :  { %2900 = vmatpush.bf16.msra.mxu0 %v5044_v32  ;;  %v6662_v32 = vld [vmem:[#allocation8 + $0x424] sm:$0xf0]  ;;  %v5485_v10 = vld [vmem:[#allocation8 + $0x568] sm:$0xf0] }
 0x124   :  { %v5324_v57 = vor.u32 %v6662_v32, %v5323_v28  ;;  %v5488_v14 = vor.u32 %v6698_v9, %v5485_v10  ;;  %v6726_v9 = vld [vmem:[#allocation8 + $0x624] sm:$0xf0]  ;;  %v6658_v10 = vld [vmem:[#allocation8 + $0x40c] sm:$0xf] }
 0x125   :  { %2827 = vmatpush.bf16.msra.mxu2 %v5388_v33  ;;  %2866 = vmatpush.bf16.msrb.mxu1 %v5136_v12  ;;  %v5235_v33 = vld [vmem:[#allocation8 + $0x350] sm:$0xf] }
 0x126   :  { %v6639_v12 = vld [vmem:[#allocation8 + $0x36c] sm:$0xf0] }
 0x127   :  { %2901 = vmatpush.bf16.msra.mxu0 %v5012_v43  ;;  %v1113_v21 = vpop.f32.mrf.mxu2  ;;  %v1089_v31 = vpop.f32.mrf.mxu0  ;;  %v5299_v43 = vld [vmem:[#allocation8 + $0x3d0] sm:$0xf]  ;;  %v5236_v18 = vor.u32 %v6639_v12, %v5235_v33 }
 0x128   :  { %v1114_v29 = vadd.f32 %v1113_v21, %v1101_v16  ;;  %v1126_v30 = vpop.f32.mrf.mxu3  ;;  %v1102_v36 = vpop.f32.mrf.mxu1  ;;  %v5300_v58 = vor.u32 %v6655_v44, %v5299_v43  ;;  %v4981_v16 = vld [vmem:[#allocation8 + $0x170] sm:$0xf0]  ;;  %v5453_v21 = vld [vmem:[#allocation8 + $0x528] sm:$0xf0]  ;;  %v5676_v44 = vor.u32 %v6750_v37, %v5675_v34  ;;  %v5075_v33 = vld [vmem:[#allocation8 + $0x210] sm:$0xf] }
 0x129   :  { %2828 = vmatpush.bf16.msra.mxu2 %v5356_v22  ;;  %2867 = vmatpush.bf16.msrb.mxu1 %v5104_v23  ;;  %v6758_v22 = vld [vmem:[#allocation8 + $0x724] sm:$0xf0]  ;;  %v5203_v23 = vld [vmem:[#allocation8 + $0x310] sm:$0xf]  ;;  %v4984_v26 = vor.u32 %v6571_v15, %v4981_v16  ;;  %v5421_v36 = vld [vmem:[#allocation8 + $0x4e8] sm:$0xf0] }
 0x12a   :  { %v1127_v40 = vadd.f32 %v1126_v30, %v1114_v29  ;;  %v6563_v29 = vld [vmem:[#allocation8 + $0x114] sm:$0xf]  ;;  %v5708_v31 = vor.u32 %v6758_v22, %v5707_v19  ;;  %v5204_v32 = vor.u32 %v6631_v24, %v5203_v23  ;;  %v6599_v12 = vld [vmem:[#allocation8 + $0x22c] sm:$0xf0]  ;;  %v5805_v15 = vld [vmem:[#allocation8 + $0x7e8] sm:$0xf0] }
 0x12b   :  { %2902 = vmatpush.bf16.msra.mxu0 %v4980_v49  ;;  %v5045_v49 = vld [vmem:[#allocation8 + $0x1f0] sm:$0xf0]  ;;  %v5555_v16 = vld [vmem:[#allocation8 + $0x5d0] sm:$0xf]  ;;  %v5076_v22 = vor.u32 %v6599_v12, %v5075_v33  ;;  %v5773_v34 = vld [vmem:[#allocation8 + $0x7a8] sm:$0xf0] }
 0x12c   :  { %v1133_v60 = vmax.f32 %v1127_v40, 0.0  ;;  %v5048_v1 = vor.u32 %v6587_v51, %v5045_v49  ;;  %v4949_v30 = vld [vmem:[#allocation8 + $0x130] sm:$0xf0]  ;;  %v6615_v51 = vld [vmem:[#allocation8 + $0x2ac] sm:$0xf0] }
 0x12d   :  { %2829 = vmatpush.bf16.msra.mxu2 %v5324_v57  ;;  %2868 = vmatpush.bf16.msrb.mxu1 %v5072_v45  ;;  %v4952_v40 = vor.u32 %v6563_v29, %v4949_v30  ;;  %v4917_v43 = vld [vmem:[#allocation8 + $0xf0] sm:$0xf0]  ;;  %v5172_v57 = vor.u32 %v6623_v39, %v5171_v38  ;;  %v5643_v45 = vld [vmem:[#allocation8 + $0x688] sm:$0xf]  ;;  %v5051_v29 = vld [vmem:[#allocation8 + $0x1d8] sm:$0xf] }
 0x12e   :  { %v7281_v55 = vpack.c.bf16 %v1133_v60, %v1133_v60  ;;  %v6742_v60 = vld [vmem:[#allocation8 + $0x6a4] sm:$0xf0]  ;;  %v4920_v49 = vor.u32 %v6555_v42, %v4917_v43  ;;  %v6651_v19 = vld [vmem:[#allocation8 + $0x3d4] sm:$0xf]  ;;  %v6592_v30 = vld [vmem:[#allocation8 + $0x1f4] sm:$0xf0] }
 0x12f   :  { %2903 = vmatpush.bf16.msra.mxu0 %v4948_v63  ;;  %v6647_v63 = vld [vmem:[#allocation8 + $0x3ac] sm:$0xf0]  ;;  %v1115_v0 = vpop.f32.mrf.mxu2  ;;  %v5644_v53 = vor.u32 %v6742_v60, %v5643_v45  ;;  %v6531_v23 = vld [vmem:[#allocation8 + $0x14] sm:$0xf]  ;;  %v5019_v43 = vld [vmem:[#allocation8 + $0x198] sm:$0xf] }
 0x130   :  { %v1128_v2 = vpop.f32.mrf.mxu3  ;;  %2739 = vmatmul.bf16.vlgmr.msra.gmra.mxu3 %v7281_v55  ;;  %v5268_v7 = vor.u32 %v6647_v63, %v5267_v62  ;;  %2869 = vmatmul.bf16.vlgmr.msrb.gmra.mxu1 %v7268_v56  ;;  %v5357_v62 = vld [vmem:[#allocation8 + $0x468] sm:$0xf0]  ;;  %v6734_v63 = vld [vmem:[#allocation8 + $0x664] sm:$0xf0]  ;;  %v5107_v0 = vld [vmem:[#allocation8 + $0x250] sm:$0xf] }
 0x131   :  { %2874 = vmatpush.bf16.msrb.mxu2 %v5552_v48  ;;  %2835 = vmatpush.bf16.msra.mxu3 %v5804_v50  ;;  %v5139_v48 = vld [vmem:[#allocation8 + $0x290] sm:$0xf]  ;;  %v5392_v50 = vor.u32 %v6674_v46, %v5389_v47  ;;  %v4821_v24 = vld [vmem:[#allocation8 + $0x30] sm:$0xf0]  ;;  %v5741_v46 = vld [vmem:[#allocation8 + $0x768] sm:$0xf0] }
 0x132   :  { %2913 = vmatpush.bf16.msra.mxu1 %v5300_v58  ;;  %2830 = vmatmul.bf16.vlgmr.msra.gmra.mxu2 %v7274_v27  ;;  %v6547_v58 = vld [vmem:[#allocation8 + $0x94] sm:$0xf]  ;;  %v5140_v54 = vor.u32 %v6615_v51, %v5139_v48  ;;  %v4824_v37 = vor.u32 %v6531_v23, %v4821_v24  ;;  %v5491_v47 = vld [vmem:[#allocation8 + $0x550] sm:$0xf] }
 0x133   :  { %2904 = vmatpush.bf16.msra.mxu0 %v4916_v11  ;;  %v6766_v11 = vld [vmem:[#allocation8 + $0x764] sm:$0xf0]  ;;  %v4888_v2 = vor.u32 %v6547_v58, %v4885_v52  ;;  %v6643_v38 = vld [vmem:[#allocation8 + $0x394] sm:$0xf]  ;;  %v6703_v60 = vld [vmem:[#allocation8 + $0x56c] sm:$0xf0] }
 0x134   :  { %v5740_v17 = vor.u32 %v6766_v11, %v5739_v8  ;;  %v5325_v11 = vld [vmem:[#allocation8 + $0x428] sm:$0xf0]  ;;  %v5269_v39 = vld [vmem:[#allocation8 + $0x3b0] sm:$0xf0]  ;;  %v5492_v58 = vor.u32 %v6703_v60, %v5491_v47  ;;  %v4987_v52 = vld [vmem:[#allocation8 + $0x158] sm:$0xf] }
 0x135   :  { %2875 = vmatpush.bf16.msrb.mxu2 %v5520_v3  ;;  %2836 = vmatpush.bf16.msra.mxu3 %v5772_v6  ;;  %v5360_v3 = vor.u32 %v6666_v61, %v5357_v62  ;;  %v5579_v6 = vld [vmem:[#allocation8 + $0x608] sm:$0xf]  ;;  %v5272_v45 = vor.u32 %v6643_v38, %v5269_v39  ;;  %v6635_v48 = vld [vmem:[#allocation8 + $0x354] sm:$0xf]  ;;  %v5709_v62 = vld [vmem:[#allocation8 + $0x728] sm:$0xf0] }
 0x136   :  { %2914 = vmatpush.bf16.msra.mxu1 %v5268_v7  ;;  %v5237_v51 = vld [vmem:[#allocation8 + $0x370] sm:$0xf0]  ;;  %v6687_v33 = vld [vmem:[#allocation8 + $0x4ec] sm:$0xf0]  ;;  %v5581_v47 = vld [vmem:[#allocation8 + $0x628] sm:$0xf0] }
 0x137   :  { %2905 = vmatpush.bf16.msra.mxu0 %v4884_v20  ;;  %v6690_v20 = vld [vmem:[#allocation8 + $0x50c] sm:$0xf]  ;;  %v6619_v12 = vld [vmem:[#allocation8 + $0x2d4] sm:$0xf]  ;;  %v5395_v23 = vld [vmem:[#allocation8 + $0x490] sm:$0xf] }
 0x138   :  { %v5456_v28 = vor.u32 %v6690_v20, %v5453_v21  ;;  %v5301_v20 = vld [vmem:[#allocation8 + $0x3f0] sm:$0xf0]  ;;  %v5580_v21 = vor.u32 %v6726_v9, %v5579_v6  ;;  %v4955_v6 = vld [vmem:[#allocation8 + $0x118] sm:$0xf]  ;;  %v6679_v24 = vld [vmem:[#allocation8 + $0x4ac] sm:$0xf0] }
 0x139   :  { %2876 = vmatpush.bf16.msrb.mxu2 %v5488_v14  ;;  %2837 = vmatpush.bf16.msra.mxu3 %v5740_v17  ;;  %v4856_v14 = vor.u32 %v6539_v4, %v4853_v5  ;;  %v6719_v17 = vld [vmem:[#allocation8 + $0x5ec] sm:$0xf0] }
 0x13a   :  { %2915 = vmatpush.bf16.msra.mxu1 %v5236_v18  ;;  %v5328_v18 = vor.u32 %v6658_v10, %v5325_v11  ;;  %v5677_v10 = vld [vmem:[#allocation8 + $0x6e8] sm:$0xf0]  ;;  %v5427_v11 = vld [vmem:[#allocation8 + $0x4d0] sm:$0xf] }
 0x13b   :  { %2906 = vmatpush.bf16.msra.mxu0 %v4852_v41  ;;  %v5424_v41 = vor.u32 %v6682_v35, %v5421_v36  ;;  %v5523_v35 = vld [vmem:[#allocation8 + $0x590] sm:$0xf] }
 0x13c   :  { %v6711_v36 = vld [vmem:[#allocation8 + $0x5ac] sm:$0xf0] }
 0x13d   :  { %2877 = vmatpush.bf16.msrb.mxu2 %v5456_v28  ;;  %2838 = vmatpush.bf16.msra.mxu3 %v5708_v31  ;;  %v5556_v28 = vor.u32 %v6719_v17, %v5555_v16  ;;  %v6770_v31 = vld [vmem:[#allocation8 + $0x78c] sm:$0xf]  ;;  %v5524_v42 = vor.u32 %v6711_v36, %v5523_v35  ;;  %v5428_v16 = vor.u32 %v6687_v33, %v5427_v11  ;;  %v4923_v17 = vld [vmem:[#allocation8 + $0xd8] sm:$0xf]  ;;  %v5363_v38 = vld [vmem:[#allocation8 + $0x450] sm:$0xf] }
 0x13e   :  { %2916 = vmatpush.bf16.msra.mxu1 %v5204_v32  ;;  %v5304_v32 = vor.u32 %v6651_v19, %v5301_v20  ;;  %v6738_v19 = vld [vmem:[#allocation8 + $0x68c] sm:$0xf]  ;;  %v6671_v39 = vld [vmem:[#allocation8 + $0x46c] sm:$0xf0] }
 0x13f   :  { %2907 = vmatpush.bf16.msra.mxu0 %v4820_v59  ;;  %v5611_v59 = vld [vmem:[#allocation8 + $0x648] sm:$0xf]  ;;  %v6730_v35 = vld [vmem:[#allocation8 + $0x64c] sm:$0xf]  ;;  %v5331_v60 = vld [vmem:[#allocation8 + $0x410] sm:$0xf] }
 0x140   :  { %2791 = vmatmul.bf16.vlgmr.msrb.gmra.mxu3 %v7281_v55  ;;  %v5612_v7 = vor.u32 %v6734_v63, %v5611_v59  ;;  %v5240_v59 = vor.u32 %v6635_v48, %v5237_v51  ;;  %v5459_v63 = vld [vmem:[#allocation8 + $0x510] sm:$0xf] }
 0x141   :  { %2878 = vmatpush.bf16.msrb.mxu2 %v5424_v41  ;;  %2839 = vmatpush.bf16.msra.mxu3 %v5676_v44  ;;  %v5776_v41 = vor.u32 %v6770_v31, %v5773_v34  ;;  %v6584_v44 = vld [vmem:[#allocation8 + $0x1b4] sm:$0xf0]  ;;  %v5396_v31 = vor.u32 %v6679_v24, %v5395_v23  ;;  %v5779_v11 = vld [vmem:[#allocation8 + $0x790] sm:$0xf] }
 0x142   :  { %2908 = vmatmul.bf16.vlgmr.msra.gmra.mxu0 %v7263_v25  ;;  %2917 = vmatpush.bf16.msra.mxu1 %v5172_v57  ;;  %v6762_v57 = vld [vmem:[#allocation8 + $0x74c] sm:$0xf]  ;;  %v6552_v34 = vld [vmem:[#allocation8 + $0xb4] sm:$0xf0]  ;;  %v6775_v33 = vld [vmem:[#allocation8 + $0x7ac] sm:$0xf0] }
 0x143   :  { %2952 = vmatpush.bf16.msrb.mxu0 %v5048_v1  ;;  %v6607_v1 = vld [vmem:[#allocation8 + $0x26c] sm:$0xf0] }
 0x144   :  { %v5108_v8 = vor.u32 %v6607_v1, %v5107_v0  ;;  %v6695_v0 = vld [vmem:[#allocation8 + $0x52c] sm:$0xf0]  ;;  %v6627_v1 = vld [vmem:[#allocation8 + $0x314] sm:$0xf] }
 0x145   :  { %2879 = vmatpush.bf16.msrb.mxu2 %v5392_v50  ;;  %2840 = vmatpush.bf16.msra.mxu3 %v5644_v53  ;;  %v5744_v50 = vor.u32 %v6762_v57, %v5741_v46  ;;  %v6576_v53 = vld [vmem:[#allocation8 + $0x174] sm:$0xf0]  ;;  %v5460_v5 = vor.u32 %v6695_v0, %v5459_v63  ;;  %v6722_v46 = vld [vmem:[#allocation8 + $0x60c] sm:$0xf]  ;;  %v5747_v24 = vld [vmem:[#allocation8 + $0x750] sm:$0xf] }
 0x146   :  { %2918 = vmatpush.bf16.msra.mxu1 %v5140_v54  ;;  %v6754_v54 = vld [vmem:[#allocation8 + $0x70c] sm:$0xf]  ;;  %v5307_v63 = vld [vmem:[#allocation8 + $0x3d8] sm:$0xf] }
 0x147   :  { %2953 = vmatpush.bf16.msrb.mxu0 %v5016_v13  ;;  %v6778_v13 = vld [vmem:[#allocation8 + $0x7cc] sm:$0xf]  ;;  %v5712_v4 = vor.u32 %v6754_v54, %v5709_v62  ;;  %v6715_v54 = vld [vmem:[#allocation8 + $0x5d4] sm:$0xf]  ;;  %v6656_v0 = vld [vmem:[#allocation8 + $0x3f4] sm:$0xf0] }
 0x148   :  { %v5557_v62 = vld [vmem:[#allocation8 + $0x5f0] sm:$0xf0] }
 0x149   :  { %2880 = vmatpush.bf16.msrb.mxu2 %v5360_v3  ;;  %2841 = vmatpush.bf16.msra.mxu3 %v5612_v7  ;;  %v4988_v3 = vor.u32 %v6576_v53, %v4987_v52  ;;  %v6568_v7 = vld [vmem:[#allocation8 + $0x134] sm:$0xf0]  ;;  %v5811_v52 = vld [vmem:[#allocation8 + $0x7d0] sm:$0xf] }
 0x14a   :  { %2919 = vmatpush.bf16.msra.mxu1 %v5108_v8  ;;  %v6746_v8 = vld [vmem:[#allocation8 + $0x6cc] sm:$0xf]  ;;  %v6783_v53 = vld [vmem:[#allocation8 + $0x7ec] sm:$0xf0] }
 0x14b   :  { %2954 = vmatpush.bf16.msrb.mxu0 %v4984_v26  ;;  %v5808_v26 = vor.u32 %v6778_v13, %v5805_v15  ;;  %v5173_v13 = vld [vmem:[#allocation8 + $0x2f0] sm:$0xf0]  ;;  %v5680_v15 = vor.u32 %v6746_v8, %v5677_v10  ;;  %v5053_v8 = vld [vmem:[#allocation8 + $0x1f8] sm:$0xf0]  ;;  %v5308_v10 = vor.u32 %v6656_v0, %v5307_v63 }
 0x14c   :  { %v5176_v20 = vor.u32 %v6619_v12, %v5173_v13  ;;  %v6707_v12 = vld [vmem:[#allocation8 + $0x594] sm:$0xf]  ;;  %v6556_v0 = vld [vmem:[#allocation8 + $0xdc] sm:$0xf] }
 0x14d   :  { %2881 = vmatpush.bf16.msrb.mxu2 %v5328_v18  ;;  %2842 = vmatpush.bf16.msra.mxu3 %v5580_v21  ;;  %v6560_v18 = vld [vmem:[#allocation8 + $0xf4] sm:$0xf0]  ;;  %v5525_v13 = vld [vmem:[#allocation8 + $0x5b0] sm:$0xf0] }
 0x14e   :  { %2920 = vmatpush.bf16.msra.mxu1 %v5076_v22  ;;  %v7292_v61 = vpop.f32.mrf.mxu0  ;;  %v5645_v22 = vld [vmem:[#allocation8 + $0x6a8] sm:$0xf0] }
 0x14f   :  { %2955 = vmatpush.bf16.msrb.mxu0 %v4952_v40  ;;  %v5052_v40 = vor.u32 %v6592_v30, %v5051_v29  ;;  %v4924_v29 = vor.u32 %v6560_v18, %v4923_v17  ;;  %v5648_v30 = vor.u32 %v6738_v19, %v5645_v22  ;;  %v5780_v18 = vor.u32 %v6775_v33, %v5779_v11  ;;  %v6616_v11 = vld [vmem:[#allocation8 + $0x2b4] sm:$0xf0] }
 0x150   :  { %2882 = vmatmul.bf16.vlgmr.msrb.gmra.mxu2 %v7274_v27  ;;  %2843 = vmatmul.bf16.vlgmr.msra.gmra.mxu3 %v7281_v55  ;;  %v5528_v22 = vor.u32 %v6707_v12, %v5525_v13  ;;  %v6548_v13 = vld [vmem:[#allocation8 + $0x9c] sm:$0xf] }
 0x151   :  { %2887 = vmatpush.bf16.msrb.mxu3 %v5808_v26  ;;  %2926 = vmatpush.bf16.msra.mxu2 %v5556_v28  ;;  %v6611_v26 = vld [vmem:[#allocation8 + $0x294] sm:$0xf] }
 0x152   :  { %2965 = vmatpush.bf16.msrb.mxu1 %v5304_v32  ;;  %v5141_v28 = vld [vmem:[#allocation8 + $0x2b0] sm:$0xf0]  ;;  %v4891_v32 = vld [vmem:[#allocation8 + $0x98] sm:$0xf] }
 0x153   :  { %2956 = vmatpush.bf16.msrb.mxu0 %v4920_v49  ;;  %2921 = vmatmul.bf16.vlgmr.msra.gmra.mxu1 %v7268_v56  ;;  %v5020_v49 = vor.u32 %v6584_v44, %v5019_v43  ;;  %v5144_v36 = vor.u32 %v6611_v26, %v5141_v28  ;;  %v4859_v43 = vld [vmem:[#allocation8 + $0x58] sm:$0xf]  ;;  %v6767_v26 = vld [vmem:[#allocation8 + $0x76c] sm:$0xf0]  ;;  %v6699_v28 = vld [vmem:[#allocation8 + $0x554] sm:$0xf] }
 0x154   :  { %v6544_v44 = vld [vmem:[#allocation8 + $0x74] sm:$0xf0] }
 0x155   :  { %2888 = vmatpush.bf16.msrb.mxu3 %v5776_v41  ;;  %2927 = vmatpush.bf16.msra.mxu2 %v5524_v42  ;;  %v5109_v41 = vld [vmem:[#allocation8 + $0x270] sm:$0xf0]  ;;  %v4892_v42 = vor.u32 %v6552_v34, %v4891_v32  ;;  %v5748_v34 = vor.u32 %v6767_v26, %v5747_v24  ;;  %v6540_v26 = vld [vmem:[#allocation8 + $0x5c] sm:$0xf] }
 0x156   :  { %2966 = vmatpush.bf16.msrb.mxu1 %v5272_v45  ;;  %v2703_v21 = vpop.f32.mrf.mxu0  ;;  %v5364_v45 = vor.u32 %v6671_v39, %v5363_v38  ;;  %v5715_v39 = vld [vmem:[#allocation8 + $0x710] sm:$0xf] }
 0x157   :  { %2957 = vmatpush.bf16.msrb.mxu0 %v4888_v2  ;;  %v5205_v2 = vld [vmem:[#allocation8 + $0x330] sm:$0xf0]  ;;  %v5021_v21 = vld [vmem:[#allocation8 + $0x1b8] sm:$0xf0] }
 0x158   :  { %v5208_v9 = vor.u32 %v6627_v1, %v5205_v2  ;;  %v5584_v1 = vor.u32 %v6722_v46, %v5581_v47  ;;  %v6564_v47 = vld [vmem:[#allocation8 + $0x11c] sm:$0xf] }
 0x159   :  { %2889 = vmatpush.bf16.msrb.mxu3 %v5744_v50  ;;  %2928 = vmatpush.bf16.msra.mxu2 %v5492_v58  ;;  %v6595_v50 = vld [vmem:[#allocation8 + $0x214] sm:$0xf] }
 0x15a   :  { %2967 = vmatpush.bf16.msrb.mxu1 %v5240_v59  ;;  %v5077_v58 = vld [vmem:[#allocation8 + $0x230] sm:$0xf0]  ;;  %v4860_v59 = vor.u32 %v6544_v44, %v4859_v43  ;;  %v5211_v44 = vld [vmem:[#allocation8 + $0x318] sm:$0xf] }
 0x15b   :  { %2958 = vmatpush.bf16.msrb.mxu0 %v4856_v14  ;;  %v4956_v14 = vor.u32 %v6568_v7, %v4955_v6  ;;  %v6536_v6 = vld [vmem:[#allocation8 + $0x34] sm:$0xf0]  ;;  %v6588_v7 = vld [vmem:[#allocation8 + $0x1dc] sm:$0xf]  ;;  %v5461_v43 = vld [vmem:[#allocation8 + $0x530] sm:$0xf0] }
 0x15c   :  { %v5056_v17 = vor.u32 %v6588_v7, %v5053_v8  ;;  %v6675_v7 = vld [vmem:[#allocation8 + $0x494] sm:$0xf] }
 0x15d   :  { %2890 = vmatpush.bf16.msrb.mxu3 %v5712_v4  ;;  %2929 = vmatpush.bf16.msra.mxu2 %v5460_v5  ;;  %v5080_v4 = vor.u32 %v6595_v50, %v5077_v58  ;;  %v5812_v5 = vor.u32 %v6783_v53, %v5811_v52  ;;  %v5683_v50 = vld [vmem:[#allocation8 + $0x6d0] sm:$0xf]  ;;  %v6683_v52 = vld [vmem:[#allocation8 + $0x4d4] sm:$0xf] }
 0x15e   :  { %2968 = vmatpush.bf16.msrb.mxu1 %v5208_v9  ;;  %v5560_v9 = vor.u32 %v6715_v54, %v5557_v62  ;;  %v6751_v58 = vld [vmem:[#allocation8 + $0x6ec] sm:$0xf0]  ;;  %v5429_v53 = vld [vmem:[#allocation8 + $0x4f0] sm:$0xf0]  ;;  %v5179_v54 = vld [vmem:[#allocation8 + $0x2d8] sm:$0xf] }
 0x15f   :  { %2959 = vmatpush.bf16.msrb.mxu0 %v4824_v37  ;;  %v5613_v37 = vld [vmem:[#allocation8 + $0x668] sm:$0xf0]  ;;  %v7294_v51 = vpop.f32.mrf.mxu0  ;;  %v5684_v63 = vor.u32 %v6751_v58, %v5683_v50 }
 0x160   :  { %v5616_v57 = vor.u32 %v6730_v35, %v5613_v37  ;;  %v6572_v35 = vld [vmem:[#allocation8 + $0x15c] sm:$0xf] }
 0x161   :  { %2891 = vmatpush.bf16.msrb.mxu3 %v5680_v15  ;;  %2930 = vmatpush.bf16.msra.mxu2 %v5428_v16  ;;  %v6648_v15 = vld [vmem:[#allocation8 + $0x3b4] sm:$0xf0] }
 0x162   :  { %2960 = vmatmul.bf16.vlgmr.msrb.gmra.mxu0 %v7263_v25  ;;  %2969 = vmatpush.bf16.msrb.mxu1 %v5176_v20  ;;  %v6580_v20 = vld [vmem:[#allocation8 + $0x19c] sm:$0xf] }
 0x163   :  { %3004 = vmatpush.bf16.msra.mxu0 %v5052_v40  ;;  %v6603_v40 = vld [vmem:[#allocation8 + $0x254] sm:$0xf]  ;;  %v5024_v32 = vor.u32 %v6580_v20, %v5021_v21  ;;  %v5115_v21 = vld [vmem:[#allocation8 + $0x258] sm:$0xf] }
 0x164   :  { %v5112_v48 = vor.u32 %v6603_v40, %v5109_v41  ;;  %v6759_v40 = vld [vmem:[#allocation8 + $0x72c] sm:$0xf0]  ;;  %v6691_v41 = vld [vmem:[#allocation8 + $0x514] sm:$0xf] }
 0x165   :  { %2892 = vmatpush.bf16.msrb.mxu3 %v5648_v30  ;;  %2931 = vmatpush.bf16.msra.mxu2 %v5396_v31  ;;  %v5243_v30 = vld [vmem:[#allocation8 + $0x358] sm:$0xf]  ;;  %v5716_v46 = vor.u32 %v6759_v40, %v5715_v39  ;;  %v5365_v20 = vld [vmem:[#allocation8 + $0x470] sm:$0xf0] }
 0x166   :  { %2970 = vmatpush.bf16.msrb.mxu1 %v5144_v36  ;;  %v6640_v31 = vld [vmem:[#allocation8 + $0x374] sm:$0xf0]  ;;  %v4989_v36 = vld [vmem:[#allocation8 + $0x178] sm:$0xf0]  ;;  %v6779_v40 = vld [vmem:[#allocation8 + $0x7d4] sm:$0xf] }
 0x167   :  { %3005 = vmatpush.bf16.msra.mxu0 %v5020_v49  ;;  %v6663_v49 = vld [vmem:[#allocation8 + $0x42c] sm:$0xf0]  ;;  %v2755_v19 = vpop.f32.mrf.mxu0  ;;  %v5244_v38 = vor.u32 %v6640_v31, %v5243_v30  ;;  %v6600_v39 = vld [vmem:[#allocation8 + $0x234] sm:$0xf0] }
 0x168   :  { %v5332_v2 = vor.u32 %v6663_v49, %v5331_v60  ;;  %v4957_v60 = vld [vmem:[#allocation8 + $0x138] sm:$0xf0]  ;;  %v6667_v19 = vld [vmem:[#allocation8 + $0x454] sm:$0xf] }
 0x169   :  { %2893 = vmatpush.bf16.msrb.mxu3 %v5616_v57  ;;  %2932 = vmatpush.bf16.msra.mxu2 %v5364_v45  ;;  %v6632_v57 = vld [vmem:[#allocation8 + $0x334] sm:$0xf0]  ;;  %v4992_v45 = vor.u32 %v6572_v35, %v4989_v36  ;;  %v4960_v62 = vor.u32 %v6564_v47, %v4957_v60  ;;  %v5368_v31 = vor.u32 %v6667_v19, %v5365_v20  ;;  %v6659_v35 = vld [vmem:[#allocation8 + $0x414] sm:$0xf]  ;;  %v5309_v47 = vld [vmem:[#allocation8 + $0x3f8] sm:$0xf0] }
 0x16a   :  { %2971 = vmatpush.bf16.msrb.mxu1 %v5112_v48  ;;  %v5464_v48 = vor.u32 %v6691_v41, %v5461_v43  ;;  %v5212_v49 = vor.u32 %v6632_v57, %v5211_v44  ;;  %v5333_v36 = vld [vmem:[#allocation8 + $0x430] sm:$0xf0]  ;;  %v5563_v43 = vld [vmem:[#allocation8 + $0x5d8] sm:$0xf] }
 0x16b   :  { %3006 = vmatpush.bf16.msra.mxu0 %v4988_v3  ;;  %v4827_v3 = vld [vmem:[#allocation8 + $0x18] sm:$0xf]  ;;  %v5813_v41 = vld [vmem:[#allocation8 + $0x7f0] sm:$0xf0]  ;;  %v5336_v60 = vor.u32 %v6659_v35, %v5333_v36 }
 0x16c   :  { %v4828_v16 = vor.u32 %v6536_v6, %v4827_v3  ;;  %v5432_v3 = vor.u32 %v6683_v52, %v5429_v53  ;;  %v6743_v6 = vld [vmem:[#allocation8 + $0x6ac] sm:$0xf0]  ;;  %v6720_v44 = vld [vmem:[#allocation8 + $0x5f4] sm:$0xf0]  ;;  %v5816_v50 = vor.u32 %v6779_v40, %v5813_v41  ;;  %v4829_v52 = vld [vmem:[#allocation8 + $0x38] sm:$0xf0] }
 0x16d   :  { %2894 = vmatpush.bf16.msrb.mxu3 %v5584_v1  ;;  %2933 = vmatpush.bf16.msra.mxu2 %v5332_v2  ;;  %v4925_v1 = vld [vmem:[#allocation8 + $0xf8] sm:$0xf0]  ;;  %v5564_v58 = vor.u32 %v6720_v44, %v5563_v43  ;;  %v6771_v53 = vld [vmem:[#allocation8 + $0x794] sm:$0xf] }
 0x16e   :  { %2972 = vmatpush.bf16.msrb.mxu1 %v5080_v4  ;;  %v4928_v33 = vor.u32 %v6556_v0, %v4925_v1  ;;  %v6644_v0 = vld [vmem:[#allocation8 + $0x39c] sm:$0xf]  ;;  %v6747_v40 = vld [vmem:[#allocation8 + $0x6d4] sm:$0xf] }
 0x16f   :  { %3007 = vmatpush.bf16.msra.mxu0 %v4956_v14  ;;  %v5275_v14 = vld [vmem:[#allocation8 + $0x398] sm:$0xf]  ;;  %v5277_v1 = vld [vmem:[#allocation8 + $0x3b8] sm:$0xf0]  ;;  %v5685_v41 = vld [vmem:[#allocation8 + $0x6f0] sm:$0xf0] }
 0x170   :  { %v5276_v23 = vor.u32 %v6648_v15, %v5275_v14  ;;  %2895 = vmatmul.bf16.vlgmr.msrb.gmra.mxu3 %v7281_v55  ;;  %2934 = vmatmul.bf16.vlgmr.msra.gmra.mxu2 %v7274_v27  ;;  %v4893_v14 = vld [vmem:[#allocation8 + $0xb8] sm:$0xf0] }
 0x171   :  { %2939 = vmatpush.bf16.msra.mxu3 %v5812_v5  ;;  %2978 = vmatpush.bf16.msrb.mxu2 %v5560_v9  ;;  %v5651_v5 = vld [vmem:[#allocation8 + $0x690] sm:$0xf]  ;;  %v5397_v9 = vld [vmem:[#allocation8 + $0x4b0] sm:$0xf0] }
 0x172   :  { %3017 = vmatpush.bf16.msra.mxu1 %v5308_v10  ;;  %v5147_v10 = vld [vmem:[#allocation8 + $0x298] sm:$0xf]  ;;  %v5652_v12 = vor.u32 %v6743_v6, %v5651_v5  ;;  %v5400_v15 = vor.u32 %v6675_v7, %v5397_v9  ;;  %v7306_v6 = vld [vmem:[#allocation10] sm:$0xff] }
 0x173   :  { %3008 = vmatpush.bf16.msra.mxu0 %v4924_v29  ;;  %v5493_v29 = vld [vmem:[#allocation8 + $0x570] sm:$0xf0]  ;;  %2973 = vmatmul.bf16.vlgmr.msrb.gmra.mxu1 %v7268_v56  ;;  %v1398_v19 = vperm.slane %v7306_v6, 2 }
 0x174   :  { %v5496_v37 = vor.u32 %v6699_v28, %v5493_v29  ;;  %v4861_v28 = vld [vmem:[#allocation8 + $0x78] sm:$0xf0]  ;;  %v5587_v29 = vld [vmem:[#allocation8 + $0x610] sm:$0xf] }
 0x175   :  { %2940 = vmatpush.bf16.msra.mxu3 %v5780_v18  ;;  %2979 = vmatpush.bf16.msrb.mxu2 %v5528_v22  ;;  %v6735_v18 = vld [vmem:[#allocation8 + $0x66c] sm:$0xf0]  ;;  %v6608_v22 = vld [vmem:[#allocation8 + $0x274] sm:$0xf0]  ;;  %v4864_v57 = vor.u32 %v6540_v26, %v4861_v28 }
 0x176   :  { %3018 = vmatpush.bf16.msra.mxu1 %v5276_v23  ;;  %v4896_v23 = vor.u32 %v6548_v13, %v4893_v14  ;;  %v6704_v13 = vld [vmem:[#allocation8 + $0x574] sm:$0xf0]  ;;  %v6636_v14 = vld [vmem:[#allocation8 + $0x35c] sm:$0xf] }
 0x177   :  { %3009 = vmatpush.bf16.msra.mxu0 %v4892_v42  ;;  %v7300_v42 = vpop.f32.mrf.mxu1  ;;  %v5467_v26 = vld [vmem:[#allocation8 + $0x518] sm:$0xf] }
 0x178   :  { %v6696_v28 = vld [vmem:[#allocation8 + $0x534] sm:$0xf0] }
 0x179   :  { %2941 = vmatpush.bf16.msra.mxu3 %v5748_v34  ;;  %2980 = vmatpush.bf16.msrb.mxu2 %v5496_v37  ;;  %v6727_v34 = vld [vmem:[#allocation8 + $0x62c] sm:$0xf0] }
 0x17a   :  { %3019 = vmatpush.bf16.msra.mxu1 %v5244_v38  ;;  %v5083_v38 = vld [vmem:[#allocation8 + $0x218] sm:$0xf] }
 0x17b   :  { %3010 = vmatpush.bf16.msra.mxu0 %v4860_v59  ;;  %v6624_v59 = vld [vmem:[#allocation8 + $0x2f4] sm:$0xf0] }
 0x17c   :  { %v5180_v4 = vor.u32 %v6624_v59, %v5179_v54  ;;  %v5781_v54 = vld [vmem:[#allocation8 + $0x7b0] sm:$0xf0] }
 0x17d   :  { %2942 = vmatpush.bf16.msra.mxu3 %v5716_v46  ;;  %2981 = vmatpush.bf16.msrb.mxu2 %v5464_v48  ;;  %v6652_v46 = vld [vmem:[#allocation8 + $0x3dc] sm:$0xf]  ;;  %v5084_v48 = vor.u32 %v6600_v39, %v5083_v38  ;;  %v5468_v39 = vor.u32 %v6696_v28, %v5467_v26  ;;  %v6664_v28 = vld [vmem:[#allocation8 + $0x434] sm:$0xf0] }
 0x17e   :  { %3020 = vmatpush.bf16.msra.mxu1 %v5212_v49  ;;  %v6532_v49 = vld [vmem:[#allocation8 + $0x1c] sm:$0xf]  ;;  %v5312_v59 = vor.u32 %v6652_v46, %v5309_v47 }
 0x17f   :  { %3011 = vmatpush.bf16.msra.mxu0 %v4828_v16  ;;  %v7302_v2 = vpop.f32.mrf.mxu0  ;;  %v2716_v8 = vpop.f32.mrf.mxu1  ;;  %v5148_v16 = vor.u32 %v6616_v11, %v5147_v10  ;;  %v4832_v5 = vor.u32 %v6532_v49, %v4829_v52  ;;  %v6763_v10 = vld [vmem:[#allocation8 + $0x754] sm:$0xf]  ;;  %v6620_v46 = vld [vmem:[#allocation8 + $0x2dc] sm:$0xf] }
 0x180   :  { %v5784_v8 = vor.u32 %v6771_v53, %v5781_v54  ;;  %v5749_v11 = vld [vmem:[#allocation8 + $0x770] sm:$0xf0]  ;;  %v2806_v35 = vadd.f32 %v7302_v2, %v1398_v19  ;;  %v5181_v47 = vld [vmem:[#allocation8 + $0x2f8] sm:$0xf0] }
 0x181   :  { %2943 = vmatpush.bf16.msra.mxu3 %v5684_v63  ;;  %2982 = vmatpush.bf16.msrb.mxu2 %v5432_v3  ;;  %v6712_v63 = vld [vmem:[#allocation8 + $0x5b4] sm:$0xf0]  ;;  %v5752_v20 = vor.u32 %v6763_v10, %v5749_v11  ;;  %v6739_v52 = vld [vmem:[#allocation8 + $0x694] sm:$0xf]  ;;  %v5184_v54 = vor.u32 %v6620_v46, %v5181_v47  ;;  %v6788_v46 = vld [vmem:[#allocation11 + $0x14] sm:$0xf0] }
 0x182   :  { %3012 = vmatmul.bf16.vlgmr.msra.gmra.mxu0 %v7263_v25  ;;  %3021 = vmatpush.bf16.msra.mxu1 %v5180_v4  ;;  %v5883_v3 = vld [vmem:[#allocation11 + $0x70] sm:$0xf]  ;;  %v6800_v4 = vld [vmem:[#allocation11 + $0x74] sm:$0xf0]  ;;  %v5653_v53 = vld [vmem:[#allocation8 + $0x6b0] sm:$0xf0] }
 0x183   :  { %3056 = vmatpush.bf16.msrb.mxu0 %v5056_v17  ;;  %v5619_v17 = vld [vmem:[#allocation8 + $0x650] sm:$0xf]  ;;  %v5621_v10 = vld [vmem:[#allocation8 + $0x670] sm:$0xf0]  ;;  %v5787_v47 = vld [vmem:[#allocation8 + $0x798] sm:$0xf] }
 0x184   :  { %v5620_v24 = vor.u32 %v6735_v18, %v5619_v17  ;;  %v5875_v17 = vld [vmem:[#allocation11 + $0x60] sm:$0xf]  ;;  %v6798_v18 = vld [vmem:[#allocation11 + $0x64] sm:$0xf0] }
 0x185   :  { %2944 = vmatpush.bf16.msra.mxu3 %v5652_v12  ;;  %2983 = vmatpush.bf16.msrb.mxu2 %v5400_v15  ;;  %v5499_v12 = vld [vmem:[#allocation8 + $0x558] sm:$0xf]  ;;  %v5884_v15 = vor.u32 %v6800_v4, %v5883_v3  ;;  %v6792_v4 = vld [vmem:[#allocation11 + $0x34] sm:$0xf0] }
 0x186   :  { %3022 = vmatpush.bf16.msra.mxu1 %v5148_v16  ;;  %v5245_v16 = vld [vmem:[#allocation8 + $0x378] sm:$0xf0]  ;;  %v5851_v3 = vld [vmem:[#allocation11 + $0x30] sm:$0xf] }
 0x187   :  { %3057 = vmatpush.bf16.msrb.mxu0 %v5024_v32  ;;  %v2807_v30 = vpop.f32.mrf.mxu0  ;;  %v5116_v32 = vor.u32 %v6608_v22, %v5115_v21  ;;  %v7304_v37 = vpop.f32.mrf.mxu1  ;;  %v5500_v21 = vor.u32 %v6704_v13, %v5499_v12  ;;  %v6755_v22 = vld [vmem:[#allocation8 + $0x714] sm:$0xf]  ;;  %v6672_v12 = vld [vmem:[#allocation8 + $0x474] sm:$0xf0]  ;;  %v6604_v13 = vld [vmem:[#allocation8 + $0x25c] sm:$0xf] }
 0x188   :  { %v5876_v30 = vor.u32 %v6798_v18, %v5875_v17  ;;  %v6790_v17 = vld [vmem:[#allocation11 + $0x24] sm:$0xf0] }
 0x189   :  { %2945 = vmatpush.bf16.msra.mxu3 %v5620_v24  ;;  %2984 = vmatpush.bf16.msrb.mxu2 %v5368_v31  ;;  %v5248_v24 = vor.u32 %v6636_v14, %v5245_v16  ;;  %v5213_v31 = vld [vmem:[#allocation8 + $0x338] sm:$0xf0]  ;;  %v5852_v14 = vor.u32 %v6792_v4, %v5851_v3  ;;  %v5843_v16 = vld [vmem:[#allocation11 + $0x20] sm:$0xf]  ;;  %v5755_v4 = vld [vmem:[#allocation8 + $0x758] sm:$0xf] }
 0x18a   :  { %3023 = vmatpush.bf16.msra.mxu1 %v5116_v32  ;;  %v5867_v32 = vld [vmem:[#allocation11 + $0x50] sm:$0xf] }
 0x18b   :  { %3058 = vmatpush.bf16.msrb.mxu0 %v4992_v45  ;;  %v5588_v45 = vor.u32 %v6727_v34, %v5587_v29  ;;  %v6628_v29 = vld [vmem:[#allocation8 + $0x31c] sm:$0xf]  ;;  %v6796_v34 = vld [vmem:[#allocation11 + $0x54] sm:$0xf0] }
 0x18c   :  { %v5216_v44 = vor.u32 %v6628_v29, %v5213_v31  ;;  %v6596_v29 = vld [vmem:[#allocation8 + $0x21c] sm:$0xf]  ;;  %v5844_v31 = vor.u32 %v6790_v17, %v5843_v16  ;;  %v6760_v16 = vld [vmem:[#allocation8 + $0x734] sm:$0xf0] }
 0x18d   :  { %2946 = vmatpush.bf16.msra.mxu3 %v5588_v45  ;;  %2985 = vmatpush.bf16.msrb.mxu2 %v5336_v60  ;;  %v6688_v45 = vld [vmem:[#allocation8 + $0x4f4] sm:$0xf0]  ;;  %v5859_v60 = vld [vmem:[#allocation11 + $0x40] sm:$0xf]  ;;  %v6692_v17 = vld [vmem:[#allocation8 + $0x51c] sm:$0xf] }
 0x18e   :  { %3024 = vmatpush.bf16.msra.mxu1 %v5084_v48  ;;  %v6794_v48 = vld [vmem:[#allocation11 + $0x44] sm:$0xf0] }
 0x18f   :  { %3059 = vmatpush.bf16.msrb.mxu0 %v4960_v62  ;;  %v5531_v62 = vld [vmem:[#allocation8 + $0x598] sm:$0xf]  ;;  %v2768_v7 = vpop.f32.mrf.mxu1 }
 0x190   :  { %v5532_v9 = vor.u32 %v6712_v63, %v5531_v62  ;;  %2947 = vmatmul.bf16.vlgmr.msra.gmra.mxu3 %v7281_v55  ;;  %2986 = vmatmul.bf16.vlgmr.msrb.gmra.mxu2 %v7274_v27  ;;  %v6680_v62 = vld [vmem:[#allocation8 + $0x4b4] sm:$0xf0]  ;;  %v6612_v63 = vld [vmem:[#allocation8 + $0x29c] sm:$0xf]  ;;  %v5656_v7 = vor.u32 %v6739_v52, %v5653_v53  ;;  %v5939_v52 = vld [vmem:[#allocation11 + $0xe0] sm:$0xf] }
 0x191   :  { %2991 = vmatpush.bf16.msrb.mxu3 %v5816_v50  ;;  %3030 = vmatpush.bf16.msra.mxu2 %v5564_v58  ;;  %v5688_v50 = vor.u32 %v6747_v40, %v5685_v41  ;;  %v6814_v53 = vld [vmem:[#allocation11 + $0xe4] sm:$0xf0] }
 0x192   :  { %3069 = vmatpush.bf16.msrb.mxu1 %v5312_v59  ;;  %v5403_v59 = vld [vmem:[#allocation8 + $0x498] sm:$0xf] }
 0x193   :  { %3060 = vmatpush.bf16.msrb.mxu0 %v4928_v33  ;;  %v5280_v33 = vor.u32 %v6644_v0, %v5277_v1  ;;  %3025 = vmatmul.bf16.vlgmr.msra.gmra.mxu1 %v7268_v56  ;;  %v7318_v49 = vpop.f32.mrf.mxu2  ;;  %v5860_v0 = vor.u32 %v6794_v48, %v5859_v60  ;;  %v5149_v1 = vld [vmem:[#allocation8 + $0x2b8] sm:$0xf0]  ;;  %v6776_v60 = vld [vmem:[#allocation8 + $0x7b4] sm:$0xf0] }
 0x194   :  { %v5152_v11 = vor.u32 %v6612_v63, %v5149_v1  ;;  %v6708_v48 = vld [vmem:[#allocation8 + $0x59c] sm:$0xf]  ;;  %v5788_v63 = vor.u32 %v6776_v60, %v5787_v47  ;;  %v6786_v1 = vld [vmem:[#allocation11 + $0x4] sm:$0xf0]  ;;  %v5907_v60 = vld [vmem:[#allocation11 + $0xa0] sm:$0xf] }
 0x195   :  { %2992 = vmatpush.bf16.msrb.mxu3 %v5784_v8  ;;  %3031 = vmatpush.bf16.msra.mxu2 %v5532_v9  ;;  %v5404_v8 = vor.u32 %v6680_v62, %v5403_v59  ;;  %v6731_v9 = vld [vmem:[#allocation8 + $0x654] sm:$0xf]  ;;  %v1396_v62 = vperm.slane %v7306_v6, 0  ;;  %v5405_v47 = vld [vmem:[#allocation8 + $0x4b8] sm:$0xf0] }
 0x196   :  { %3070 = vmatpush.bf16.msrb.mxu1 %v5280_v33  ;;  %v5371_v33 = vld [vmem:[#allocation8 + $0x458] sm:$0xf] }
 0x197   :  { %3061 = vmatpush.bf16.msrb.mxu0 %v4896_v23  ;;  %v5717_v23 = vld [vmem:[#allocation8 + $0x730] sm:$0xf0]  ;;  %v2818_v36 = vpop.f32.mrf.mxu1 }
 0x198   :  { %v5720_v38 = vor.u32 %v6755_v22, %v5717_v23  ;;  %v7314_v43 = vadd.f32 %v2818_v36, %v2806_v35  ;;  %v6723_v22 = vld [vmem:[#allocation8 + $0x614] sm:$0xf]  ;;  %v6716_v35 = vld [vmem:[#allocation8 + $0x5dc] sm:$0xf] }
 0x199   :  { %2993 = vmatpush.bf16.msrb.mxu3 %v5752_v20  ;;  %3032 = vmatpush.bf16.msra.mxu2 %v5500_v21  ;;  %v5624_v20 = vor.u32 %v6731_v9, %v5621_v10  ;;  %v5372_v21 = vor.u32 %v6672_v12, %v5371_v33  ;;  %v5589_v23 = vld [vmem:[#allocation8 + $0x630] sm:$0xf0]  ;;  %v5565_v36 = vld [vmem:[#allocation8 + $0x5f8] sm:$0xf0]  ;;  %v5931_v10 = vld [vmem:[#allocation11 + $0xd0] sm:$0xf] }
 0x19a   :  { %3071 = vmatpush.bf16.msrb.mxu1 %v5248_v24  ;;  %v5339_v24 = vld [vmem:[#allocation8 + $0x418] sm:$0xf]  ;;  %v5592_v40 = vor.u32 %v6723_v22, %v5589_v23  ;;  %v5501_v9 = vld [vmem:[#allocation8 + $0x578] sm:$0xf0]  ;;  %v1399_v12 = vperm.slane %v7306_v6, 3 }
 0x19b   :  { %3062 = vmatpush.bf16.msrb.mxu0 %v4864_v57  ;;  %v5435_v57 = vld [vmem:[#allocation8 + $0x4d8] sm:$0xf]  ;;  %v2729_v19 = vpop.f32.mrf.mxu2  ;;  %v5340_v41 = vor.u32 %v6664_v28, %v5339_v24  ;;  %v6810_v22 = vld [vmem:[#allocation11 + $0xc4] sm:$0xf0] }
 0x19c   :  { %v5436_v58 = vor.u32 %v6688_v45, %v5435_v57  ;;  %v5835_v45 = vld [vmem:[#allocation11 + $0x10] sm:$0xf]  ;;  %v2702_v19 = vadd.f32 %v7292_v61, %v1396_v62 }
 0x19d   :  { %2994 = vmatpush.bf16.msrb.mxu3 %v5720_v38  ;;  %3033 = vmatpush.bf16.msra.mxu2 %v5468_v39  ;;  %v5947_v38 = vld [vmem:[#allocation11 + $0xf0] sm:$0xf]  ;;  %v6816_v39 = vld [vmem:[#allocation11 + $0xf4] sm:$0xf0]  ;;  %v5836_v59 = vor.u32 %v6788_v46, %v5835_v45  ;;  %v6676_v46 = vld [vmem:[#allocation8 + $0x49c] sm:$0xf] }
 0x19e   :  { %3072 = vmatpush.bf16.msrb.mxu1 %v5216_v44  ;;  %v6744_v45 = vld [vmem:[#allocation8 + $0x6b4] sm:$0xf0] }
 0x19f   :  { %3063 = vmatpush.bf16.msrb.mxu0 %v4832_v5  ;;  %v7316_v2 = vpop.f32.mrf.mxu0  ;;  %v2820_v5 = vpop.f32.mrf.mxu1  ;;  %v6736_v62 = vld [vmem:[#allocation8 + $0x674] sm:$0xf0] }
 0x1a0   :  { %v6768_v5 = vld [vmem:[#allocation8 + $0x774] sm:$0xf0] }
 0x1a1   :  { %2995 = vmatpush.bf16.msrb.mxu3 %v5688_v50  ;;  %3034 = vmatpush.bf16.msra.mxu2 %v5436_v58  ;;  %v5948_v50 = vor.u32 %v6816_v39, %v5947_v38  ;;  %v5533_v58 = vld [vmem:[#allocation8 + $0x5b8] sm:$0xf0]  ;;  %v6808_v38 = vld [vmem:[#allocation11 + $0xb4] sm:$0xf0] }
 0x1a2   :  { %3064 = vmatmul.bf16.vlgmr.msrb.gmra.mxu0 %v7263_v25  ;;  %v5868_v25 = vor.u32 %v6796_v34, %v5867_v32  ;;  %3073 = vmatpush.bf16.msrb.mxu1 %v5184_v54  ;;  %v5819_v32 = vld [vmem:[#allocation8 + $0x7d8] sm:$0xf]  ;;  %v5536_v3 = vor.u32 %v6708_v48, %v5533_v58  ;;  %v6806_v48 = vld [vmem:[#allocation11 + $0xa4] sm:$0xf0] }
 0x1a3   :  { %3898 = vmatpush.bf16.msra.mxu0 %v5884_v15  ;;  %v5117_v15 = vld [vmem:[#allocation8 + $0x278] sm:$0xf0]  ;;  %v6784_v34 = vld [vmem:[#allocation8 + $0x7f4] sm:$0xf0]  ;;  %v7320_v54 = vpop.f32.mrf.mxu2 }
 0x1a4   :  { %v5120_v26 = vor.u32 %v6604_v13, %v5117_v15  ;;  %v5820_v57 = vor.u32 %v6784_v34, %v5819_v32  ;;  %v5756_v13 = vor.u32 %v6768_v5, %v5755_v4  ;;  %v5723_v15 = vld [vmem:[#allocation8 + $0x718] sm:$0xf]  ;;  %v2715_v34 = vadd.f32 %v7300_v42, %v2702_v19  ;;  %v6804_v5 = vld [vmem:[#allocation11 + $0x94] sm:$0xf0]  ;;  %v6780_v19 = vld [vmem:[#allocation8 + $0x7dc] sm:$0xf] }
 0x1a5   :  { %2996 = vmatpush.bf16.msrb.mxu3 %v5656_v7  ;;  %3035 = vmatpush.bf16.msra.mxu2 %v5404_v8  ;;  %v6700_v7 = vld [vmem:[#allocation8 + $0x55c] sm:$0xf]  ;;  %v5940_v8 = vor.u32 %v6814_v53, %v5939_v52  ;;  %v5724_v24 = vor.u32 %v6760_v16, %v5723_v15  ;;  %v5408_v53 = vor.u32 %v6676_v46, %v5405_v47  ;;  %v5899_v4 = vld [vmem:[#allocation11 + $0x90] sm:$0xf] }
 0x1a6   :  { %3074 = vmatpush.bf16.msrb.mxu1 %v5152_v11  ;;  %v6812_v11 = vld [vmem:[#allocation11 + $0xd4] sm:$0xf0]  ;;  %v2728_v39 = vadd.f32 %v7318_v49, %v2715_v34  ;;  %v6660_v15 = vld [vmem:[#allocation8 + $0x41c] sm:$0xf] }
 0x1a7   :  { %3899 = vmatpush.bf16.msra.mxu0 %v5876_v30  ;;  %v2859_v18 = vpop.f32.mrf.mxu0  ;;  %v5085_v30 = vld [vmem:[#allocation8 + $0x238] sm:$0xf0] }
 0x1a8   :  { %v5088_v44 = vor.u32 %v6596_v29, %v5085_v30  ;;  %v5932_v18 = vor.u32 %v6812_v11, %v5931_v10  ;;  %v5691_v29 = vld [vmem:[#allocation8 + $0x6d8] sm:$0xf]  ;;  %v6864_v11 = vld [vmem:[#allocation11 + $0x274] sm:$0xf0]  ;;  %v5341_v16 = vld [vmem:[#allocation8 + $0x438] sm:$0xf0] }
 0x1a9   :  { %2997 = vmatpush.bf16.msrb.mxu3 %v5624_v20  ;;  %3036 = vmatpush.bf16.msra.mxu2 %v5372_v21  ;;  %v5469_v20 = vld [vmem:[#allocation8 + $0x538] sm:$0xf0]  ;;  %v5923_v21 = vld [vmem:[#allocation11 + $0xc0] sm:$0xf]  ;;  %v6752_v30 = vld [vmem:[#allocation8 + $0x6f4] sm:$0xf0] }
 0x1aa   :  { %3075 = vmatpush.bf16.msrb.mxu1 %v5120_v26  ;;  %v5472_v28 = vor.u32 %v6692_v17, %v5469_v20  ;;  %v5924_v32 = vor.u32 %v6810_v22, %v5923_v21  ;;  %v6139_v10 = vld [vmem:[#allocation11 + $0x270] sm:$0xf]  ;;  %v5900_v17 = vor.u32 %v6804_v5, %v5899_v4  ;;  %v5821_v20 = vld [vmem:[#allocation8 + $0x7f8] sm:$0xf0]  ;;  %v6832_v22 = vld [vmem:[#allocation11 + $0x174] sm:$0xf0] }
 0x1ab   :  { %3900 = vmatpush.bf16.msra.mxu0 %v5868_v25  ;;  %v5568_v25 = vor.u32 %v6716_v35, %v5565_v36  ;;  %v2781_v23 = vpop.f32.mrf.mxu2  ;;  %v5437_v35 = vld [vmem:[#allocation8 + $0x4f8] sm:$0xf0]  ;;  %v5915_v36 = vld [vmem:[#allocation11 + $0xb0] sm:$0xf]  ;;  %v5987_v5 = vld [vmem:[#allocation11 + $0x140] sm:$0xf] }
 0x1ac   :  { %v6011_v21 = vld [vmem:[#allocation11 + $0x170] sm:$0xf]  ;;  %v5891_v23 = vld [vmem:[#allocation11 + $0x80] sm:$0xf]  ;;  %v6764_v47 = vld [vmem:[#allocation8 + $0x75c] sm:$0xf] }
 0x1ad   :  { %2998 = vmatpush.bf16.msrb.mxu3 %v5592_v40  ;;  %3037 = vmatpush.bf16.msra.mxu2 %v5340_v41  ;;  %v2870_v26 = vpop.f32.mrf.mxu1  ;;  %v5725_v4 = vld [vmem:[#allocation8 + $0x738] sm:$0xf0] }
 0x1ae   :  { %3076 = vmatpush.bf16.msrb.mxu1 %v5088_v44 }
 0x1af   :  { %3901 = vmatpush.bf16.msra.mxu0 %v5860_v0  ;;  %v5827_v0 = vld [vmem:[#allocation11] sm:$0xf] }
 0x1b0   :  { %2999 = vmatmul.bf16.vlgmr.msrb.gmra.mxu3 %v7281_v55  ;;  %3038 = vmatmul.bf16.vlgmr.msra.gmra.mxu2 %v7274_v27  ;;  %v5828_v33 = vor.u32 %v6786_v1, %v5827_v0  ;;  %v5908_v0 = vor.u32 %v6806_v48, %v5907_v60  ;;  %v5757_v60 = vld [vmem:[#allocation8 + $0x778] sm:$0xf0] }
 0x1b1   :  { %3043 = vmatpush.bf16.msra.mxu3 %v5820_v57  ;;  %3082 = vmatpush.bf16.msrb.mxu2 %v5568_v25  ;;  %v5659_v57 = vld [vmem:[#allocation8 + $0x698] sm:$0xf]  ;;  %v5916_v25 = vor.u32 %v6808_v38, %v5915_v36  ;;  %v6772_v36 = vld [vmem:[#allocation8 + $0x79c] sm:$0xf] }
 0x1b2   :  { %3911 = vmatpush.bf16.msra.mxu1 %v5948_v50  ;;  %v5660_v49 = vor.u32 %v6744_v45, %v5659_v57  ;;  %v5789_v38 = vld [vmem:[#allocation8 + $0x7b8] sm:$0xf0]  ;;  %v6123_v57 = vld [vmem:[#allocation11 + $0x250] sm:$0xf] }
 0x1b3   :  { %3902 = vmatpush.bf16.msra.mxu0 %v5852_v14  ;;  %3077 = vmatmul.bf16.vlgmr.msrb.gmra.mxu1 %v7268_v56  ;;  %v5504_v14 = vor.u32 %v6700_v7, %v5501_v9  ;;  %v2858_v56 = vadd.f32 %v7316_v2, %v1399_v12  ;;  %v5692_v2 = vor.u32 %v6752_v30, %v5691_v29  ;;  %v2740_v41 = vpop.f32.mrf.mxu3  ;;  %v1397_v7 = vperm.slane %v7306_v6, 1  ;;  %v5595_v9 = vld [vmem:[#allocation8 + $0x618] sm:$0xf]  ;;  %v6131_v29 = vld [vmem:[#allocation11 + $0x260] sm:$0xf] }
 0x1b4   :  { %v2741_v42 = vadd.f32 %v2740_v41, %v2728_v39  ;;  %v5344_v30 = vor.u32 %v6660_v15, %v5341_v16  ;;  %v6003_v41 = vld [vmem:[#allocation11 + $0x160] sm:$0xf]  ;;  %v5792_v46 = vor.u32 %v6772_v36, %v5789_v38  ;;  %v5979_v15 = vld [vmem:[#allocation11 + $0x130] sm:$0xf]  ;;  %v6824_v16 = vld [vmem:[#allocation11 + $0x134] sm:$0xf0] }
 0x1b5   :  { %3044 = vmatpush.bf16.msra.mxu3 %v5788_v63  ;;  %3083 = vmatpush.bf16.msrb.mxu2 %v5536_v3  ;;  %v7330_v61 = vadd.f32 %v2870_v26, %v2858_v56  ;;  %v7335_v58 = vpop.f32.mrf.mxu2  ;;  %v2872_v52 = vpop.f32.mrf.mxu1  ;;  %v6668_v63 = vld [vmem:[#allocation8 + $0x45c] sm:$0xf]  ;;  %v6802_v56 = vld [vmem:[#allocation11 + $0x84] sm:$0xf0] }
 0x1b6   :  { %3912 = vmatpush.bf16.msra.mxu1 %v5940_v8  ;;  %v3108_v50 = vmax.f32 %v2741_v42, 0.0  ;;  %v5373_v3 = vld [vmem:[#allocation8 + $0x478] sm:$0xf0]  ;;  %v5892_v39 = vor.u32 %v6802_v56, %v5891_v23  ;;  %v6115_v52 = vld [vmem:[#allocation11 + $0x240] sm:$0xf] }
 0x1b7   :  { %3903 = vmatpush.bf16.msra.mxu0 %v5844_v31  ;;  %v6684_v31 = vld [vmem:[#allocation8 + $0x4dc] sm:$0xf] }
 0x1b8   :  { %v5440_v44 = vor.u32 %v6684_v31, %v5437_v35  ;;  %v7337_v1 = vpack.c.bf16 %v3108_v50, %v3108_v50  ;;  %v5824_v31 = vor.u32 %v6780_v19, %v5821_v20  ;;  %v6012_v35 = vor.u32 %v6832_v22, %v6011_v21  ;;  %v5995_v50 = vld [vmem:[#allocation11 + $0x150] sm:$0xf]  ;;  %v6854_v19 = vld [vmem:[#allocation11 + $0x224] sm:$0xf0]  ;;  %v6740_v22 = vld [vmem:[#allocation8 + $0x69c] sm:$0xf] }
 0x1b9   :  { %3045 = vmatpush.bf16.msra.mxu3 %v5756_v13  ;;  %3084 = vmatpush.bf16.msrb.mxu2 %v5504_v14  ;;  %v5376_v13 = vor.u32 %v6668_v63, %v5373_v3  ;;  %v6728_v14 = vld [vmem:[#allocation8 + $0x634] sm:$0xf0]  ;;  %v6756_v3 = vld [vmem:[#allocation8 + $0x71c] sm:$0xf]  ;;  %v5980_v21 = vor.u32 %v6824_v16, %v5979_v15 }
 0x1ba   :  { %3913 = vmatpush.bf16.msra.mxu1 %v5932_v18  ;;  %v6140_v18 = vor.u32 %v6864_v11, %v6139_v10  ;;  %v6856_v10 = vld [vmem:[#allocation11 + $0x234] sm:$0xf0]  ;;  %v5661_v23 = vld [vmem:[#allocation8 + $0x6b8] sm:$0xf0]  ;;  %v6187_v16 = vld [vmem:[#allocation11 + $0x2d0] sm:$0xf] }
 0x1bb   :  { %3904 = vmatpush.bf16.msra.mxu0 %v5836_v59  ;;  %v5627_v59 = vld [vmem:[#allocation8 + $0x658] sm:$0xf]  ;;  %v2742_v12 = vpop.f32.mrf.mxu3  ;;  %v5629_v36 = vld [vmem:[#allocation8 + $0x678] sm:$0xf0] }
 0x1bc   :  { %v5628_v8 = vor.u32 %v6736_v62, %v5627_v59  ;;  %v5760_v59 = vor.u32 %v6764_v47, %v5757_v60  ;;  %v5693_v12 = vld [vmem:[#allocation8 + $0x6f8] sm:$0xf0] }
 0x1bd   :  { %3046 = vmatpush.bf16.msra.mxu3 %v5724_v24  ;;  %3085 = vmatpush.bf16.msrb.mxu2 %v5472_v28  ;;  %v2754_v24 = vadd.f32 %v7294_v51, %v1397_v7  ;;  %v2833_v26 = vpop.f32.mrf.mxu2  ;;  %v5596_v28 = vor.u32 %v6728_v14, %v5595_v9  ;;  %v6826_v7 = vld [vmem:[#allocation11 + $0x144] sm:$0xf0]  ;;  %v5728_v9 = vor.u32 %v6756_v3, %v5725_v4 }
 0x1be   :  { %3914 = vmatpush.bf16.msra.mxu1 %v5924_v32  ;;  %v6862_v32 = vld [vmem:[#allocation11 + $0x264] sm:$0xf0]  ;;  %v5988_v11 = vor.u32 %v6826_v7, %v5987_v5  ;;  %v6797_v7 = vld [vmem:[#allocation11 + $0x64] sm:$0xf] }
 0x1bf   :  { %3905 = vmatpush.bf16.msra.mxu0 %v5828_v33  ;;  %v7333_v40 = vpop.f32.mrf.mxu0  ;;  %v2767_v34 = vadd.f32 %v7304_v37, %v2754_v24  ;;  %v5971_v24 = vld [vmem:[#allocation11 + $0x120] sm:$0xf]  ;;  %v6822_v26 = vld [vmem:[#allocation11 + $0x124] sm:$0xf0] }
 0x1c0   :  { %v6878_v5 = vld [vmem:[#allocation11 + $0x2e4] sm:$0xf0] }
 0x1c1   :  { %3047 = vmatpush.bf16.msra.mxu3 %v5692_v2  ;;  %3086 = vmatpush.bf16.msrb.mxu2 %v5440_v44  ;;  %v6132_v2 = vor.u32 %v6862_v32, %v6131_v29  ;;  %v6830_v44 = vld [vmem:[#allocation11 + $0x164] sm:$0xf0]  ;;  %v2780_v51 = vadd.f32 %v7320_v54, %v2767_v34  ;;  %v6091_v29 = vld [vmem:[#allocation11 + $0x210] sm:$0xf]  ;;  %v5972_v34 = vor.u32 %v6822_v26, %v5971_v24 }
 0x1c2   :  { %3915 = vmatpush.bf16.msra.mxu1 %v5916_v25  ;;  %3906 = vmatmul.bf16.vlgmr.msra.gmra.mxu0 %v7337_v1  ;;  %v6860_v25 = vld [vmem:[#allocation11 + $0x254] sm:$0xf0]  ;;  %v6004_v37 = vor.u32 %v6830_v44, %v6003_v41  ;;  %v6724_v44 = vld [vmem:[#allocation8 + $0x61c] sm:$0xf]  ;;  %v6059_v26 = vld [vmem:[#allocation11 + $0x1d0] sm:$0xf] }
 0x1c3   :  { %3950 = vmatpush.bf16.msrb.mxu0 %v6140_v18  ;;  %v2792_v45 = vpop.f32.mrf.mxu3  ;;  %v6124_v48 = vor.u32 %v6860_v25, %v6123_v57  ;;  %v6820_v41 = vld [vmem:[#allocation11 + $0x114] sm:$0xf0]  ;;  %v6083_v57 = vld [vmem:[#allocation11 + $0x200] sm:$0xf] }
 0x1c4   :  { %v2793_v42 = vadd.f32 %v2792_v45, %v2780_v51  ;;  %v5597_v51 = vld [vmem:[#allocation8 + $0x638] sm:$0xf0]  ;;  %v2832_v45 = vadd.f32 %v7335_v58, %v7314_v43  ;;  %v5955_v25 = vld [vmem:[#allocation11 + $0x100] sm:$0xf] }
 0x1c5   :  { %3048 = vmatpush.bf16.msra.mxu3 %v5660_v49  ;;  %3087 = vmatpush.bf16.msrb.mxu2 %v5408_v53  ;;  %v6828_v49 = vld [vmem:[#allocation11 + $0x154] sm:$0xf0]  ;;  %v6858_v53 = vld [vmem:[#allocation11 + $0x244] sm:$0xf0]  ;;  %v5600_v43 = vor.u32 %v6724_v44, %v5597_v51  ;;  %v6195_v58 = vld [vmem:[#allocation11 + $0x2e0] sm:$0xf] }
 0x1c6   :  { %3916 = vmatpush.bf16.msra.mxu1 %v5908_v0  ;;  %v3109_v54 = vmax.f32 %v2793_v42, 0.0  ;;  %v6116_v62 = vor.u32 %v6858_v53, %v6115_v52  ;;  %v5996_v0 = vor.u32 %v6828_v49, %v5995_v50  ;;  %v6850_v42 = vld [vmem:[#allocation11 + $0x204] sm:$0xf0]  ;;  %v6880_v50 = vld [vmem:[#allocation11 + $0x2f4] sm:$0xf0] }
 0x1c7   :  { %v2911_v33 = vpop.f32.mrf.mxu0  ;;  %3951 = vmatpush.bf16.msrb.mxu0 %v6132_v2  ;;  %v5963_v2 = vld [vmem:[#allocation11 + $0x110] sm:$0xf]  ;;  %v6799_v49 = vld [vmem:[#allocation11 + $0x74] sm:$0xf]  ;;  %v6818_v53 = vld [vmem:[#allocation11 + $0x104] sm:$0xf0] }
 0x1c8   :  { %v7346_v63 = vpack.c.bf16 %v3109_v54, %v3109_v54  ;;  %v6748_v33 = vld [vmem:[#allocation8 + $0x6dc] sm:$0xf]  ;;  %v5964_v60 = vor.u32 %v6820_v41, %v5963_v2  ;;  %v5885_v54 = vld [vmem:[#allocation11 + $0x78] sm:$0xf0]  ;;  %v6171_v2 = vld [vmem:[#allocation11 + $0x2b0] sm:$0xf] }
 0x1c9   :  { %3049 = vmatpush.bf16.msra.mxu3 %v5628_v8  ;;  %3088 = vmatpush.bf16.msrb.mxu2 %v5376_v13  ;;  %v6107_v8 = vld [vmem:[#allocation11 + $0x230] sm:$0xf]  ;;  %v5696_v18 = vor.u32 %v6748_v33, %v5693_v12  ;;  %v5888_v3 = vor.u32 %v6799_v49, %v5885_v54  ;;  %v6067_v12 = vld [vmem:[#allocation11 + $0x1e0] sm:$0xf]  ;;  %v6872_v41 = vld [vmem:[#allocation11 + $0x2b4] sm:$0xf0] }
 0x1ca   :  { %3917 = vmatpush.bf16.msra.mxu1 %v5900_v17  ;;  %v6108_v13 = vor.u32 %v6856_v10, %v6107_v8  ;;  %v6099_v17 = vld [vmem:[#allocation11 + $0x220] sm:$0xf]  ;;  %v6196_v10 = vor.u32 %v6878_v5, %v6195_v58  ;;  %v6791_v44 = vld [vmem:[#allocation11 + $0x34] sm:$0xf]  ;;  %v5845_v49 = vld [vmem:[#allocation11 + $0x28] sm:$0xf0] }
 0x1cb   :  { %3952 = vmatpush.bf16.msrb.mxu0 %v6124_v48  ;;  %v6100_v56 = vor.u32 %v6854_v19, %v6099_v17  ;;  %v6084_v48 = vor.u32 %v6850_v42, %v6083_v57  ;;  %v6876_v17 = vld [vmem:[#allocation11 + $0x2d4] sm:$0xf0]  ;;  %v6172_v57 = vor.u32 %v6872_v41, %v6171_v2  ;;  %v6035_v54 = vld [vmem:[#allocation11 + $0x1a0] sm:$0xf] }
 0x1cd   :  { %3050 = vmatpush.bf16.msra.mxu3 %v5596_v28  ;;  %3089 = vmatpush.bf16.msrb.mxu2 %v5344_v30  ;;  %v5664_v30 = vor.u32 %v6740_v22, %v5661_v23  ;;  %v5869_v22 = vld [vmem:[#allocation11 + $0x58] sm:$0xf0]  ;;  %v6179_v23 = vld [vmem:[#allocation11 + $0x2c0] sm:$0xf] }
 0x1ce   :  { %3918 = vmatpush.bf16.msra.mxu1 %v5892_v39 }
 0x1cf   :  { %3953 = vmatpush.bf16.msrb.mxu0 %v6116_v62  ;;  %v6848_v62 = vld [vmem:[#allocation11 + $0x1f4] sm:$0xf0] }
 0x1d0   :  { %3051 = vmatmul.bf16.vlgmr.msra.gmra.mxu3 %v7281_v55  ;;  %3090 = vmatmul.bf16.vlgmr.msrb.gmra.mxu2 %v7274_v27  ;;  %v2794_v27 = vpop.f32.mrf.mxu3  ;;  %v7349_v14 = vpop.f32.mrf.mxu1 }
 0x1d1   :  { %3095 = vmatpush.bf16.msrb.mxu3 %v5824_v31  ;;  %3924 = vmatpush.bf16.msra.mxu2 %v6012_v35  ;;  %v6852_v31 = vld [vmem:[#allocation11 + $0x214] sm:$0xf0]  ;;  %v6732_v35 = vld [vmem:[#allocation8 + $0x65c] sm:$0xf]  ;;  %v5956_v27 = vor.u32 %v6818_v53, %v5955_v25 }
 0x1d2   :  { %3919 = vmatmul.bf16.vlgmr.msra.gmra.mxu1 %v7346_v63  ;;  %v6092_v38 = vor.u32 %v6852_v31, %v6091_v29  ;;  %v6844_v29 = vld [vmem:[#allocation11 + $0x1d4] sm:$0xf0]  ;;  %v6793_v31 = vld [vmem:[#allocation11 + $0x44] sm:$0xf] }
 0x1d3   :  { %3954 = vmatpush.bf16.msrb.mxu0 %v6108_v13  ;;  %v7353_v28 = vpop.f32.mrf.mxu2  ;;  %v6846_v13 = vld [vmem:[#allocation11 + $0x1e4] sm:$0xf0] }
 0x1d4   :  { %v6068_v19 = vor.u32 %v6846_v13, %v6067_v12  ;;  %v6834_v12 = vld [vmem:[#allocation11 + $0x184] sm:$0xf0]  ;;  %v6147_v13 = vld [vmem:[#allocation11 + $0x280] sm:$0xf] }
 0x1d5   :  { %3096 = vmatpush.bf16.msrb.mxu3 %v5792_v46  ;;  %3925 = vmatpush.bf16.msra.mxu2 %v6004_v37  ;;  %v5632_v46 = vor.u32 %v6732_v35, %v5629_v36  ;;  %v6203_v37 = vld [vmem:[#allocation11 + $0x2f0] sm:$0xf]  ;;  %v6060_v35 = vor.u32 %v6844_v29, %v6059_v26  ;;  %v6051_v36 = vld [vmem:[#allocation11 + $0x1c0] sm:$0xf]  ;;  %v6815_v26 = vld [vmem:[#allocation11 + $0xf4] sm:$0xf] }
 0x1d6   :  { %v5949_v29 = vld [vmem:[#allocation11 + $0xf8] sm:$0xf0] }
 0x1d7   :  { %3955 = vmatpush.bf16.msrb.mxu0 %v6100_v56  ;;  %v6874_v56 = vld [vmem:[#allocation11 + $0x2c4] sm:$0xf0] }
 0x1d8   :  { %v2844_v32 = vpop.f32.mrf.mxu3  ;;  %v2924_v39 = vpop.f32.mrf.mxu1 }
 0x1d9   :  { %3097 = vmatpush.bf16.msrb.mxu3 %v5760_v59  ;;  %3926 = vmatpush.bf16.msra.mxu2 %v5996_v0  ;;  %v2845_v52 = vadd.f32 %v2844_v32, %v2832_v45  ;;  %v6075_v59 = vld [vmem:[#allocation11 + $0x1f0] sm:$0xf]  ;;  %v6204_v0 = vor.u32 %v6880_v50, %v6203_v37  ;;  %v5861_v32 = vld [vmem:[#allocation11 + $0x48] sm:$0xf0]  ;;  %v6163_v37 = vld [vmem:[#allocation11 + $0x2a0] sm:$0xf] }
 0x1da   :  { %v5864_v39 = vor.u32 %v6793_v31, %v5861_v32  ;;  %v6043_v45 = vld [vmem:[#allocation11 + $0x1b0] sm:$0xf]  ;;  %v6259_v31 = vld [vmem:[#allocation11 + $0x360] sm:$0xf]  ;;  %v6894_v32 = vld [vmem:[#allocation11 + $0x364] sm:$0xf0] }
 0x1db   :  { %3956 = vmatpush.bf16.msrb.mxu0 %v6092_v38  ;;  %v2885_v4 = vpop.f32.mrf.mxu2  ;;  %3963 = vmatpush.bf16.msrb.mxu1 %v6204_v0  ;;  %v3110_v33 = vmax.f32 %v2845_v52, 0.0  ;;  %v6842_v38 = vld [vmem:[#allocation11 + $0x1c4] sm:$0xf0]  ;;  %v6868_v0 = vld [vmem:[#allocation11 + $0x294] sm:$0xf0]  ;;  %v6260_v2 = vor.u32 %v6894_v32, %v6259_v31 }
 0x1dc   :  { %v6052_v51 = vor.u32 %v6842_v38, %v6051_v36  ;;  %v6838_v52 = vld [vmem:[#allocation11 + $0x1a4] sm:$0xf0]  ;;  %v6801_v32 = vld [vmem:[#allocation11 + $0x84] sm:$0xf] }
 0x1dd   :  { %3098 = vmatpush.bf16.msrb.mxu3 %v5728_v9  ;;  %3927 = vmatpush.bf16.msra.mxu2 %v5988_v11  ;;  %v6076_v9 = vor.u32 %v6848_v62, %v6075_v59  ;;  %v5877_v11 = vld [vmem:[#allocation11 + $0x68] sm:$0xf0]  ;;  %v7357_v24 = vpack.c.bf16 %v3110_v33, %v3110_v33  ;;  %v6155_v62 = vld [vmem:[#allocation11 + $0x290] sm:$0xf]  ;;  %v6036_v58 = vor.u32 %v6838_v52, %v6035_v54  ;;  %v6019_v33 = vld [vmem:[#allocation11 + $0x180] sm:$0xf] }
 0x1de   :  { %v5880_v15 = vor.u32 %v6797_v7, %v5877_v11  ;;  %v6156_v5 = vor.u32 %v6868_v0, %v6155_v62  ;;  %v5837_v7 = vld [vmem:[#allocation11 + $0x18] sm:$0xf0]  ;;  %v1400_v52 = vperm.slane %v7306_v6, 4  ;;  %v6888_v62 = vld [vmem:[#allocation11 + $0x334] sm:$0xf0] }
 0x1df   :  { %v7351_v20 = vpop.f32.mrf.mxu0  ;;  %3957 = vmatpush.bf16.msrb.mxu0 %v6084_v48  ;;  %3964 = vmatpush.bf16.msrb.mxu1 %v6196_v10  ;;  %v2884_v10 = vadd.f32 %v7353_v28, %v7330_v61  ;;  %v5952_v28 = vor.u32 %v6815_v26, %v5949_v29  ;;  %v6807_v0 = vld [vmem:[#allocation11 + $0xb4] sm:$0xf] }
 0x1e0   :  { %v2846_v8 = vpop.f32.mrf.mxu3 }
 0x1e1   :  { %3099 = vmatpush.bf16.msrb.mxu3 %v5696_v18  ;;  %3928 = vmatpush.bf16.msra.mxu2 %v5980_v21  ;;  %v6795_v18 = vld [vmem:[#allocation11 + $0x54] sm:$0xf]  ;;  %v6188_v21 = vor.u32 %v6876_v17, %v6187_v16  ;;  %v6027_v8 = vld [vmem:[#allocation11 + $0x190] sm:$0xf] }
 0x1e3   :  { %4002 = vmatpush.bf16.msra.mxu0 %v5888_v3  ;;  %3965 = vmatpush.bf16.msrb.mxu1 %v6188_v21  ;;  %v6787_v3 = vld [vmem:[#allocation11 + $0x14] sm:$0xf]  ;;  %v6267_v21 = vld [vmem:[#allocation11 + $0x370] sm:$0xf] }
 0x1e5   :  { %3100 = vmatpush.bf16.msrb.mxu3 %v5664_v30  ;;  %3929 = vmatpush.bf16.msra.mxu2 %v5972_v34  ;;  %v5872_v30 = vor.u32 %v6795_v18, %v5869_v22  ;;  %v6180_v34 = vor.u32 %v6874_v56, %v6179_v23  ;;  %v6785_v18 = vld [vmem:[#allocation11 + $0x4] sm:$0xf]  ;;  %v6896_v56 = vld [vmem:[#allocation11 + $0x374] sm:$0xf0] }
 0x1e6   :  { %v6268_v61 = vor.u32 %v6896_v56, %v6267_v21  ;;  %v6141_v56 = vld [vmem:[#allocation11 + $0x278] sm:$0xf0] }
 0x1e7   :  { %v2963_v47 = vpop.f32.mrf.mxu0  ;;  %4003 = vmatpush.bf16.msra.mxu0 %v5880_v15  ;;  %3966 = vmatpush.bf16.msrb.mxu1 %v6180_v34  ;;  %v6866_v15 = vld [vmem:[#allocation11 + $0x284] sm:$0xf0]  ;;  %v6813_v34 = vld [vmem:[#allocation11 + $0xe4] sm:$0xf] }
 0x1e8   :  { %v6870_v47 = vld [vmem:[#allocation11 + $0x2a4] sm:$0xf0]  ;;  %v6148_v17 = vor.u32 %v6866_v15, %v6147_v13  ;;  %v6219_v15 = vld [vmem:[#allocation11 + $0x310] sm:$0xf] }
 0x1e9   :  { %3101 = vmatpush.bf16.msrb.mxu3 %v5632_v46  ;;  %3930 = vmatpush.bf16.msra.mxu2 %v5964_v60  ;;  %v6840_v46 = vld [vmem:[#allocation11 + $0x1b4] sm:$0xf0]  ;;  %v6789_v60 = vld [vmem:[#allocation11 + $0x24] sm:$0xf]  ;;  %v6164_v50 = vor.u32 %v6870_v47, %v6163_v37  ;;  %v6243_v47 = vld [vmem:[#allocation11 + $0x340] sm:$0xf] }
 0x1ea   :  { %v6044_v48 = vor.u32 %v6840_v46, %v6043_v45  ;;  %v5848_v53 = vor.u32 %v6789_v60, %v5845_v49  ;;  %v5933_v45 = vld [vmem:[#allocation11 + $0xd8] sm:$0xf0]  ;;  %v6890_v60 = vld [vmem:[#allocation11 + $0x344] sm:$0xf0] }
 0x1eb   :  { %4004 = vmatpush.bf16.msra.mxu0 %v5872_v30  ;;  %3967 = vmatpush.bf16.msrb.mxu1 %v6172_v57  ;;  %v6892_v57 = vld [vmem:[#allocation11 + $0x354] sm:$0xf0]  ;;  %v6244_v49 = vor.u32 %v6890_v60, %v6243_v47  ;;  %v6829_v60 = vld [vmem:[#allocation11 + $0x164] sm:$0xf] }
 0x1ed   :  { %3102 = vmatpush.bf16.msrb.mxu3 %v5600_v43  ;;  %3931 = vmatpush.bf16.msra.mxu2 %v5956_v27  ;;  %v6836_v27 = vld [vmem:[#allocation11 + $0x194] sm:$0xf0] }
 0x1ee   :  { %v6028_v16 = vor.u32 %v6836_v27, %v6027_v8  ;;  %v6805_v8 = vld [vmem:[#allocation11 + $0xa4] sm:$0xf]  ;;  %v2910_v27 = vadd.f32 %v7333_v40, %v1400_v52 }
 0x1ef   :  { %4005 = vmatpush.bf16.msra.mxu0 %v5864_v39  ;;  %3968 = vmatpush.bf16.msrb.mxu1 %v6164_v50  ;;  %v6020_v39 = vor.u32 %v6834_v12, %v6019_v33  ;;  %v5925_v50 = vld [vmem:[#allocation11 + $0xc8] sm:$0xf0] }
 0x1f0   :  { %3103 = vmatmul.bf16.vlgmr.msrb.gmra.mxu3 %v7281_v55  ;;  %3932 = vmatmul.bf16.vlgmr.msra.gmra.mxu2 %v7357_v24  ;;  %v5853_v55 = vld [vmem:[#allocation11 + $0x38] sm:$0xf0]  ;;  %v7361_v42 = vpop.f32.mrf.mxu1  ;;  %v2923_v33 = vadd.f32 %v7349_v14, %v2910_v27 }
 0x1f1   :  { %3937 = vmatpush.bf16.msra.mxu3 %v6076_v9  ;;  %v5856_v25 = vor.u32 %v6791_v44, %v5853_v55  ;;  %v5840_v9 = vor.u32 %v6787_v3, %v5837_v7  ;;  %3976 = vmatpush.bf16.msrb.mxu2 %v6268_v61  ;;  %v6811_v55 = vld [vmem:[#allocation11 + $0xd4] sm:$0xf]  ;;  %v6886_v7 = vld [vmem:[#allocation11 + $0x324] sm:$0xf0] }
 0x1f2   :  { %v5936_v37 = vor.u32 %v6811_v55, %v5933_v45  ;;  %v6323_v45 = vld [vmem:[#allocation11 + $0x3e0] sm:$0xf] }
 0x1f3   :  { %4006 = vmatpush.bf16.msra.mxu0 %v5856_v25  ;;  %v2896_v4 = vpop.f32.mrf.mxu3  ;;  %v7365_v43 = vpop.f32.mrf.mxu2  ;;  %3969 = vmatpush.bf16.msrb.mxu1 %v6156_v5  ;;  %v6227_v5 = vld [vmem:[#allocation11 + $0x320] sm:$0xf] }
 0x1f4   :  { %v2897_v22 = vadd.f32 %v2896_v4, %v2884_v10  ;;  %v5917_v4 = vld [vmem:[#allocation11 + $0xb8] sm:$0xf0]  ;;  %v6228_v10 = vor.u32 %v6886_v7, %v6227_v5  ;;  %v2936_v12 = vadd.f32 %v7365_v43, %v2923_v33  ;;  %v6211_v43 = vld [vmem:[#allocation11 + $0x300] sm:$0xf]  ;;  %v6857_v5 = vld [vmem:[#allocation11 + $0x244] sm:$0xf] }
 0x1f5   :  { %3938 = vmatpush.bf16.msra.mxu3 %v6068_v19  ;;  %v5829_v19 = vld [vmem:[#allocation11 + $0x8] sm:$0xf0]  ;;  %3977 = vmatpush.bf16.msrb.mxu2 %v6260_v2  ;;  %v6912_v2 = vld [vmem:[#allocation11 + $0x3f4] sm:$0xf0] }
 0x1f6   :  { %v5832_v23 = vor.u32 %v6785_v18, %v5829_v19  ;;  %v3111_v41 = vmax.f32 %v2897_v22, 0.0  ;;  %v5901_v19 = vld [vmem:[#allocation11 + $0x98] sm:$0xf0]  ;;  %v6117_v7 = vld [vmem:[#allocation11 + $0x248] sm:$0xf0] }
 0x1f7   :  { %4007 = vmatpush.bf16.msra.mxu0 %v5848_v53  ;;  %3970 = vmatpush.bf16.msrb.mxu1 %v6148_v17  ;;  %v6235_v53 = vld [vmem:[#allocation11 + $0x330] sm:$0xf]  ;;  %v6803_v17 = vld [vmem:[#allocation11 + $0x94] sm:$0xf]  ;;  %v5989_v33 = vld [vmem:[#allocation11 + $0x148] sm:$0xf0] }
 0x1f8   :  { %v2976_v11 = vpop.f32.mrf.mxu1  ;;  %v7369_v25 = vpack.c.bf16 %v3111_v41, %v3111_v41  ;;  %v6236_v3 = vor.u32 %v6888_v62, %v6235_v53  ;;  %v5904_v26 = vor.u32 %v6803_v17, %v5901_v19  ;;  %v6315_v62 = vld [vmem:[#allocation11 + $0x3d0] sm:$0xf] }
 0x1f9   :  { %3939 = vmatpush.bf16.msra.mxu3 %v6060_v35  ;;  %v5941_v35 = vld [vmem:[#allocation11 + $0xe8] sm:$0xf0] }
 0x1fa   :  { %v5944_v44 = vor.u32 %v6813_v34, %v5941_v35  ;;  %v5909_v11 = vld [vmem:[#allocation11 + $0xa8] sm:$0xf0] }
 0x1fb   :  { %4008 = vmatpush.bf16.msra.mxu0 %v5840_v9  ;;  %v2898_v36 = vpop.f32.mrf.mxu3  ;;  %v2937_v38 = vpop.f32.mrf.mxu2  ;;  %4015 = vmatpush.bf16.msra.mxu1 %v5952_v28  ;;  %v5912_v6 = vor.u32 %v6805_v8, %v5909_v11  ;;  %v6861_v28 = vld [vmem:[#allocation11 + $0x264] sm:$0xf]  ;;  %v5893_v34 = vld [vmem:[#allocation11 + $0x88] sm:$0xf0]  ;;  %v6906_v11 = vld [vmem:[#allocation11 + $0x3c4] sm:$0xf0] }
 0x1fc   :  { %v6133_v36 = vld [vmem:[#allocation11 + $0x268] sm:$0xf0]  ;;  %v5896_v38 = vor.u32 %v6801_v32, %v5893_v34  ;;  %v6821_v32 = vld [vmem:[#allocation11 + $0x124] sm:$0xf] }
 0x1fd   :  { %3940 = vmatpush.bf16.msra.mxu3 %v6052_v51  ;;  %v6251_v51 = vld [vmem:[#allocation11 + $0x350] sm:$0xf]  ;;  %v6136_v47 = vor.u32 %v6861_v28, %v6133_v36  ;;  %v6291_v28 = vld [vmem:[#allocation11 + $0x3a0] sm:$0xf]  ;;  %v5973_v34 = vld [vmem:[#allocation11 + $0x128] sm:$0xf0] }
 0x1fe   :  { %v6252_v46 = vor.u32 %v6892_v57, %v6251_v51  ;;  %v6013_v51 = vld [vmem:[#allocation11 + $0x178] sm:$0xf0] }
 0x1ff   :  { %v7363_v59 = vpop.f32.mrf.mxu0  ;;  %4009 = vmatpush.bf16.msra.mxu0 %v5832_v23  ;;  %4016 = vmatpush.bf16.msra.mxu1 %v5944_v44  ;;  %v6863_v23 = vld [vmem:[#allocation11 + $0x274] sm:$0xf] }
 0x200   :  { %3978 = vmatpush.bf16.msrb.mxu2 %v6252_v46  ;;  %v6144_v61 = vor.u32 %v6863_v23, %v6141_v56  ;;  %v6831_v44 = vld [vmem:[#allocation11 + $0x174] sm:$0xf]  ;;  %v6910_v46 = vld [vmem:[#allocation11 + $0x3e4] sm:$0xf0]  ;;  %v6299_v23 = vld [vmem:[#allocation11 + $0x3b0] sm:$0xf] }
 0x201   :  { %3941 = vmatpush.bf16.msra.mxu3 %v6044_v48  ;;  %v6809_v48 = vld [vmem:[#allocation11 + $0xc4] sm:$0xf]  ;;  %v6016_v55 = vor.u32 %v6831_v44, %v6013_v51  ;;  %v6324_v52 = vor.u32 %v6910_v46, %v6323_v45  ;;  %v6904_v56 = vld [vmem:[#allocation11 + $0x3b4] sm:$0xf0]  ;;  %v5976_v51 = vor.u32 %v6821_v32, %v5973_v34  ;;  %v6283_v45 = vld [vmem:[#allocation11 + $0x390] sm:$0xf] }
 0x202   :  { %v5928_v54 = vor.u32 %v6809_v48, %v5925_v50  ;;  %v6005_v48 = vld [vmem:[#allocation11 + $0x168] sm:$0xf0]  ;;  %v6900_v46 = vld [vmem:[#allocation11 + $0x394] sm:$0xf0]  ;;  %v6841_v32 = vld [vmem:[#allocation11 + $0x1c4] sm:$0xf] }
 0x203   :  { %4017 = vmatpush.bf16.msra.mxu1 %v5936_v37  ;;  %v6008_v53 = vor.u32 %v6829_v60, %v6005_v48  ;;  %v6085_v60 = vld [vmem:[#allocation11 + $0x208] sm:$0xf0]  ;;  %v5965_v48 = vld [vmem:[#allocation11 + $0x118] sm:$0xf0] }
 0x204   :  { %3979 = vmatpush.bf16.msrb.mxu2 %v6244_v49  ;;  %v6859_v49 = vld [vmem:[#allocation11 + $0x254] sm:$0xf]  ;;  %v6053_v34 = vld [vmem:[#allocation11 + $0x1c8] sm:$0xf0] }
 0x205   :  { %3942 = vmatpush.bf16.msra.mxu3 %v6036_v58  ;;  %v5920_v58 = vor.u32 %v6807_v0, %v5917_v4  ;;  %v6908_v0 = vld [vmem:[#allocation11 + $0x3d4] sm:$0xf0]  ;;  %v6827_v4 = vld [vmem:[#allocation11 + $0x154] sm:$0xf] }
 0x206   :  { %v6316_v8 = vor.u32 %v6908_v0, %v6315_v62  ;;  %v6275_v0 = vld [vmem:[#allocation11 + $0x380] sm:$0xf] }
 0x207   :  { %v3015_v30 = vpop.f32.mrf.mxu0  ;;  %4018 = vmatpush.bf16.msra.mxu1 %v5928_v54  ;;  %v6125_v54 = vld [vmem:[#allocation11 + $0x258] sm:$0xf0] }
 0x208   :  { %3980 = vmatpush.bf16.msrb.mxu2 %v6236_v3  ;;  %v6882_v30 = vld [vmem:[#allocation11 + $0x304] sm:$0xf0]  ;;  %v6128_v3 = vor.u32 %v6859_v49, %v6125_v54 }
 0x209   :  { %3943 = vmatpush.bf16.msra.mxu3 %v6028_v16  ;;  %v6884_v16 = vld [vmem:[#allocation11 + $0x314] sm:$0xf0]  ;;  %v6212_v31 = vor.u32 %v6882_v30, %v6211_v43  ;;  %v6300_v43 = vor.u32 %v6904_v56, %v6299_v23  ;;  %v5981_v30 = vld [vmem:[#allocation11 + $0x138] sm:$0xf0]  ;;  %v6875_v23 = vld [vmem:[#allocation11 + $0x2d4] sm:$0xf] }
 0x20a   :  { %v6220_v40 = vor.u32 %v6884_v16, %v6219_v15  ;;  %v6855_v15 = vld [vmem:[#allocation11 + $0x234] sm:$0xf]  ;;  %v6109_v16 = vld [vmem:[#allocation11 + $0x238] sm:$0xf0] }
 0x20b   :  { %4019 = vmatpush.bf16.msra.mxu1 %v5920_v58  ;;  %v5997_v58 = vld [vmem:[#allocation11 + $0x158] sm:$0xf0] }
 0x20c   :  { %3981 = vmatpush.bf16.msrb.mxu2 %v6228_v10  ;;  %v6000_v27 = vor.u32 %v6827_v4, %v5997_v58  ;;  %v6307_v10 = vld [vmem:[#allocation11 + $0x3c0] sm:$0xf]  ;;  %v6817_v4 = vld [vmem:[#allocation11 + $0x104] sm:$0xf]  ;;  %v6189_v56 = vld [vmem:[#allocation11 + $0x2d8] sm:$0xf0] }
 0x20d   :  { %3944 = vmatpush.bf16.msra.mxu3 %v6020_v39  ;;  %v6331_v39 = vld [vmem:[#allocation11 + $0x3f0] sm:$0xf]  ;;  %v6308_v17 = vor.u32 %v6906_v11, %v6307_v10  ;;  %v6847_v10 = vld [vmem:[#allocation11 + $0x1f4] sm:$0xf]  ;;  %v6077_v11 = vld [vmem:[#allocation11 + $0x1f8] sm:$0xf0] }
 0x20e   :  { %v6332_v41 = vor.u32 %v6912_v2, %v6331_v39  ;;  %v6851_v2 = vld [vmem:[#allocation11 + $0x214] sm:$0xf] }
 0x20f   :  { %4020 = vmatpush.bf16.msra.mxu1 %v5912_v6  ;;  %v6825_v6 = vld [vmem:[#allocation11 + $0x144] sm:$0xf] }
 0x210   :  { %3945 = vmatmul.bf16.vlgmr.msra.gmra.mxu3 %v7369_v25  ;;  %v7374_v9 = vpop.f32.mrf.mxu1  ;;  %3982 = vmatpush.bf16.msrb.mxu2 %v6220_v40  ;;  %v7385_v40 = vld [vmem:[#allocation10] sm:$0xff] }
 0x211   :  { %3989 = vmatpush.bf16.msrb.mxu3 %v6332_v41  ;;  %v1401_v19 = vperm.slane %v7385_v40, 5  ;;  %v6093_v41 = vld [vmem:[#allocation11 + $0x218] sm:$0xf0] }
 0x213   :  { %v2948_v18 = vpop.f32.mrf.mxu3  ;;  %v7380_v22 = vpop.f32.mrf.mxu2  ;;  %4021 = vmatpush.bf16.msra.mxu1 %v5904_v26  ;;  %v6823_v26 = vld [vmem:[#allocation11 + $0x134] sm:$0xf] }
 0x214   :  { %v2949_v21 = vadd.f32 %v2948_v18, %v2936_v12  ;;  %3983 = vmatpush.bf16.msrb.mxu2 %v6212_v31  ;;  %v6120_v12 = vor.u32 %v6857_v5, %v6117_v7  ;;  %v5992_v18 = vor.u32 %v6825_v6, %v5989_v33  ;;  %v6902_v31 = vld [vmem:[#allocation11 + $0x3a4] sm:$0xf0]  ;;  %v5957_v7 = vld [vmem:[#allocation11 + $0x108] sm:$0xf0]  ;;  %v6877_v33 = vld [vmem:[#allocation11 + $0x2e4] sm:$0xf] }
 0x215   :  { %3990 = vmatpush.bf16.msrb.mxu3 %v6324_v52  ;;  %v6292_v44 = vor.u32 %v6902_v31, %v6291_v28  ;;  %v6181_v28 = vld [vmem:[#allocation11 + $0x2c8] sm:$0xf0] }
 0x216   :  { %v3112_v29 = vmax.f32 %v2949_v21, 0.0  ;;  %v6112_v21 = vor.u32 %v6855_v15, %v6109_v16  ;;  %v6080_v15 = vor.u32 %v6847_v10, %v6077_v11  ;;  %v6845_v16 = vld [vmem:[#allocation11 + $0x1e4] sm:$0xf]  ;;  %v6895_v11 = vld [vmem:[#allocation11 + $0x374] sm:$0xf] }
 0x217   :  { %4022 = vmatpush.bf16.msra.mxu1 %v5896_v38  ;;  %v2962_v38 = vadd.f32 %v7351_v20, %v1401_v19  ;;  %v6284_v20 = vor.u32 %v6900_v46, %v6283_v45  ;;  %v6869_v46 = vld [vmem:[#allocation11 + $0x2a4] sm:$0xf] }
 0x218   :  { %v3028_v14 = vpop.f32.mrf.mxu1  ;;  %v7382_v35 = vpack.c.bf16 %v3112_v29, %v3112_v29  ;;  %4028 = vmatpush.bf16.msra.mxu2 %v6016_v55  ;;  %v6853_v29 = vld [vmem:[#allocation11 + $0x224] sm:$0xf]  ;;  %v6096_v55 = vor.u32 %v6851_v2, %v6093_v41  ;;  %v6173_v2 = vld [vmem:[#allocation11 + $0x2b8] sm:$0xf0]  ;;  %v6839_v41 = vld [vmem:[#allocation11 + $0x1b4] sm:$0xf] }
 0x219   :  { %3991 = vmatpush.bf16.msrb.mxu3 %v6316_v8  ;;  %v6101_v14 = vld [vmem:[#allocation11 + $0x228] sm:$0xf0] }
 0x21a   :  { %3958 = vmatmul.bf16.vlgmr.msrb.gmra.mxu0 %v7382_v35  ;;  %v6104_v36 = vor.u32 %v6853_v29, %v6101_v14  ;;  %v6843_v29 = vld [vmem:[#allocation11 + $0x1d4] sm:$0xf]  ;;  %v6061_v14 = vld [vmem:[#allocation11 + $0x1d8] sm:$0xf0] }
 0x21b   :  { %v2950_v37 = vpop.f32.mrf.mxu3  ;;  %4054 = vmatpush.bf16.msrb.mxu0 %v6144_v61  ;;  %v2989_v50 = vpop.f32.mrf.mxu2  ;;  %v5984_v61 = vor.u32 %v6823_v26, %v5981_v30  ;;  %v6192_v30 = vor.u32 %v6875_v23, %v6189_v56  ;;  %v6064_v31 = vor.u32 %v6843_v29, %v6061_v14  ;;  %v6891_v14 = vld [vmem:[#allocation11 + $0x354] sm:$0xf] }
 0x21c   :  { %4029 = vmatpush.bf16.msra.mxu2 %v6008_v53  ;;  %v6879_v53 = vld [vmem:[#allocation11 + $0x2f4] sm:$0xf] }
 0x21d   :  { %3992 = vmatpush.bf16.msrb.mxu3 %v6308_v17  ;;  %v6069_v17 = vld [vmem:[#allocation11 + $0x1e8] sm:$0xf0] }
 0x21e   :  { %v6072_v26 = vor.u32 %v6845_v16, %v6069_v17 }
 0x21f   :  { %v7378_v13 = vpop.f32.mrf.mxu0  ;;  %4055 = vmatpush.bf16.msrb.mxu0 %v6136_v47  ;;  %v6849_v47 = vld [vmem:[#allocation11 + $0x204] sm:$0xf] }
 0x220   :  { %4030 = vmatpush.bf16.msra.mxu2 %v6000_v27  ;;  %v6088_v62 = vor.u32 %v6849_v47, %v6085_v60  ;;  %v5960_v27 = vor.u32 %v6817_v4, %v5957_v7  ;;  %v6837_v47 = vld [vmem:[#allocation11 + $0x1a4] sm:$0xf]  ;;  %v6037_v60 = vld [vmem:[#allocation11 + $0x1a8] sm:$0xf0] }
 0x221   :  { %3993 = vmatpush.bf16.msrb.mxu3 %v6300_v43  ;;  %v6865_v7 = vld [vmem:[#allocation11 + $0x284] sm:$0xf] }
 0x223   :  { %4056 = vmatpush.bf16.msrb.mxu0 %v6128_v3  ;;  %v6898_v3 = vld [vmem:[#allocation11 + $0x384] sm:$0xf0] }
 0x224   :  { %4031 = vmatpush.bf16.msra.mxu2 %v5992_v18  ;;  %v6276_v5 = vor.u32 %v6898_v3, %v6275_v0  ;;  %v6835_v0 = vld [vmem:[#allocation11 + $0x194] sm:$0xf]  ;;  %v6029_v3 = vld [vmem:[#allocation11 + $0x198] sm:$0xf0] }
 0x225   :  { %3994 = vmatpush.bf16.msrb.mxu3 %v6292_v44  ;;  %v6045_v44 = vld [vmem:[#allocation11 + $0x1b8] sm:$0xf0] }
 0x227   :  { %v3067_v57 = vpop.f32.mrf.mxu0  ;;  %4057 = vmatpush.bf16.msrb.mxu0 %v6120_v12  ;;  %v6197_v12 = vld [vmem:[#allocation11 + $0x2e8] sm:$0xf0] }
 0x228   :  { %4032 = vmatpush.bf16.msra.mxu2 %v5984_v61  ;;  %v2975_v57 = vadd.f32 %v7361_v42, %v2962_v38  ;;  %v6205_v42 = vld [vmem:[#allocation11 + $0x2f8] sm:$0xf0]  ;;  %v6873_v61 = vld [vmem:[#allocation11 + $0x2c4] sm:$0xf]  ;;  %v6871_v38 = vld [vmem:[#allocation11 + $0x2b4] sm:$0xf] }
 0x229   :  { %3995 = vmatpush.bf16.msrb.mxu3 %v6284_v20  ;;  %v6208_v8 = vor.u32 %v6879_v53, %v6205_v42  ;;  %v6176_v45 = vor.u32 %v6871_v38, %v6173_v2  ;;  %v6040_v53 = vor.u32 %v6837_v47, %v6037_v60  ;;  %v6885_v2 = vld [vmem:[#allocation11 + $0x324] sm:$0xf] }
 0x22a   :  { %4010 = vmatmul.bf16.vlgmr.msra.gmra.mxu0 %v7337_v1  ;;  %v6819_v1 = vld [vmem:[#allocation11 + $0x114] sm:$0xf]  ;;  %v2988_v37 = vadd.f32 %v7380_v22, %v2975_v57 }
 0x22b   :  { %4058 = vmatpush.bf16.msrb.mxu0 %v6112_v21  ;;  %v5968_v54 = vor.u32 %v6819_v1, %v5965_v48  ;;  %v6200_v21 = vor.u32 %v6877_v33, %v6197_v12  ;;  %v7404_v57 = vld [vmem:[%s7430_s6] sm:$0x3]  ;;  %v6165_v1 = vld [vmem:[#allocation11 + $0x2a8] sm:$0xf0]  ;;  %v6269_v33 = vld [vmem:[#allocation11 + $0x378] sm:$0xf0] }
 0x22c   :  { %4033 = vmatpush.bf16.msra.mxu2 %v5976_v51  ;;  %v1402_v51 = vperm.slane %v7385_v40, 6  ;;  %v3254_v20 = vperm.slane %v7404_v57, 0  ;;  %v6833_v12 = vld [vmem:[#allocation11 + $0x184] sm:$0xf]  ;;  %v6272_v17 = vor.u32 %v6895_v11, %v6269_v33  ;;  %v6899_v33 = vld [vmem:[#allocation11 + $0x394] sm:$0xf] }
 0x22d   :  { %3996 = vmatpush.bf16.msrb.mxu3 %v6276_v5 }
 0x22e   :  { %v3014_v48 = vadd.f32 %v7363_v59, %v1402_v51  ;;  %v6149_v59 = vld [vmem:[#allocation11 + $0x288] sm:$0xf0]  ;;  %v6221_v51 = vld [vmem:[#allocation11 + $0x318] sm:$0xf0] }
 0x22f   :  { %4059 = vmatpush.bf16.msrb.mxu0 %v6104_v36  ;;  %v6184_v36 = vor.u32 %v6873_v61, %v6181_v28  ;;  %v6152_v16 = vor.u32 %v6865_v7, %v6149_v59  ;;  %v6889_v61 = vld [vmem:[#allocation11 + $0x344] sm:$0xf]  ;;  %v6245_v28 = vld [vmem:[#allocation11 + $0x348] sm:$0xf0]  ;;  %v6903_v7 = vld [vmem:[#allocation11 + $0x3b4] sm:$0xf] }
 0x230   :  { %v7390_v39 = vpop.f32.mrf.mxu1  ;;  %4034 = vmatpush.bf16.msra.mxu2 %v5968_v54  ;;  %v6867_v54 = vld [vmem:[#allocation11 + $0x294] sm:$0xf]  ;;  %v3027_v42 = vadd.f32 %v7374_v9, %v3014_v48  ;;  %v6021_v9 = vld [vmem:[#allocation11 + $0x188] sm:$0xf0]  ;;  %v6333_v48 = vld [vmem:[#allocation11 + $0x3f8] sm:$0xf0] }
 0x231   :  { %4041 = vmatpush.bf16.msra.mxu3 %v6080_v15  ;;  %v6301_v59 = vld [vmem:[#allocation11 + $0x3b8] sm:$0xf0] }
 0x233   :  { %v3000_v50 = vpop.f32.mrf.mxu3  ;;  %v7394_v49 = vpop.f32.mrf.mxu2  ;;  %4060 = vmatpush.bf16.msrb.mxu0 %v6096_v55 }
 0x234   :  { %v3001_v52 = vadd.f32 %v3000_v50, %v2988_v37  ;;  %4035 = vmatpush.bf16.msra.mxu2 %v5960_v27  ;;  %v6048_v37 = vor.u32 %v6839_v41, %v6045_v44  ;;  %v6168_v50 = vor.u32 %v6869_v46, %v6165_v1  ;;  %v3040_v4 = vadd.f32 %v7394_v49, %v3027_v42  ;;  %v6883_v44 = vld [vmem:[#allocation11 + $0x314] sm:$0xf]  ;;  %v6325_v42 = vld [vmem:[#allocation11 + $0x3e8] sm:$0xf0] }
 0x235   :  { %4042 = vmatpush.bf16.msra.mxu3 %v6072_v26  ;;  %v6024_v49 = vor.u32 %v6833_v12, %v6021_v9  ;;  %v6224_v46 = vor.u32 %v6883_v44, %v6221_v51  ;;  %v6285_v12 = vld [vmem:[#allocation11 + $0x398] sm:$0xf0]  ;;  %v6914_v44 = vld [vmem:[#allocation13 + $0x8] sm:$0xff] }
 0x236   :  { %v3113_v58 = vmax.f32 %v3001_v52, 0.0  ;;  %v6157_v52 = vld [vmem:[#allocation11 + $0x298] sm:$0xf0]  ;;  %v6288_v9 = vor.u32 %v6899_v33, %v6285_v12 }
 0x237   :  { %4061 = vmatpush.bf16.msrb.mxu0 %v6088_v62 }
 0x238   :  { %v3080_v22 = vpop.f32.mrf.mxu1  ;;  %v7396_v6 = vpack.c.bf16 %v3113_v58, %v3113_v58 }
 0x239   :  { %4043 = vmatpush.bf16.msra.mxu3 %v6064_v31  ;;  %v6160_v22 = vor.u32 %v6867_v54, %v6157_v52  ;;  %v6248_v31 = vor.u32 %v6889_v61, %v6245_v28  ;;  %v3255_v28 = vperm.slane %v7404_v57, 1  ;;  %v6928_v57 = vld [vmem:[#allocation13 + $0x78] sm:$0xff] }
 0x23a   :  { %3971 = vmatmul.bf16.vlgmr.msrb.gmra.mxu1 %v7396_v6  ;;  %4062 = vmatmul.bf16.vlgmr.msrb.gmra.mxu0 %v7382_v35  ;;  %v6056_v35 = vor.u32 %v6841_v32, %v6053_v34  ;;  %v6887_v32 = vld [vmem:[#allocation11 + $0x334] sm:$0xf]  ;;  %v6237_v34 = vld [vmem:[#allocation11 + $0x338] sm:$0xf0] }
 0x23b   :  { %v3002_v18 = vpop.f32.mrf.mxu3  ;;  %v3041_v19 = vpop.f32.mrf.mxu2  ;;  %4067 = vmatpush.bf16.msrb.mxu1 %v6208_v8  ;;  %v6032_v8 = vor.u32 %v6835_v0, %v6029_v3  ;;  %v6240_v38 = vor.u32 %v6887_v32, %v6237_v34  ;;  %v6907_v3 = vld [vmem:[#allocation11 + $0x3d4] sm:$0xf]  ;;  %v6918_v32 = vld [vmem:[#allocation13 + $0x28] sm:$0xff] }
 0x23c   :  { %v6893_v19 = vld [vmem:[#allocation11 + $0x364] sm:$0xf] }
 0x23d   :  { %4044 = vmatpush.bf16.msra.mxu3 %v6056_v35  ;;  %v6229_v35 = vld [vmem:[#allocation11 + $0x328] sm:$0xf0] }
 0x23f   :  { %4068 = vmatpush.bf16.msrb.mxu1 %v6200_v21  ;;  %v3907_v43 = vpop.f32.mrf.mxu0  ;;  %v6261_v21 = vld [vmem:[#allocation11 + $0x368] sm:$0xf0] }
 0x240   :  { %v3908_v62 = vadd.f32 %v3907_v43, %v3254_v20  ;;  %v6264_v26 = vor.u32 %v6893_v19, %v6261_v21  ;;  %v6253_v43 = vld [vmem:[#allocation11 + $0x358] sm:$0xf0]  ;;  %v6911_v20 = vld [vmem:[#allocation11 + $0x3f4] sm:$0xf] }
 0x241   :  { %4045 = vmatpush.bf16.msra.mxu3 %v6048_v37  ;;  %v6881_v37 = vld [vmem:[#allocation11 + $0x304] sm:$0xf]  ;;  %v6336_v54 = vor.u32 %v6911_v20, %v6333_v48  ;;  %v6924_v20 = vld [vmem:[#allocation13 + $0x58] sm:$0xff]  ;;  %v6923_v48 = vld [vmem:[#allocation13 + $0x50] sm:$0xff] }
 0x243   :  { %4069 = vmatpush.bf16.msrb.mxu1 %v6192_v30  ;;  %v6256_v30 = vor.u32 %v6891_v14, %v6253_v43  ;;  %v6920_v43 = vld [vmem:[#allocation13 + $0x38] sm:$0xff] }
 0x244   :  { %4242 = vmatpush.bf16.msra.mxu0 %v6920_v43 }
 0x245   :  { %4046 = vmatpush.bf16.msra.mxu3 %v6040_v53  ;;  %v6909_v53 = vld [vmem:[#allocation11 + $0x3e4] sm:$0xf] }
 0x247   :  { %4070 = vmatpush.bf16.msrb.mxu1 %v6184_v36  ;;  %v3909_v55 = vpop.f32.mrf.mxu0  ;;  %v1403_v36 = vperm.slane %v7385_v40, 7  ;;  %v6213_v40 = vld [vmem:[#allocation11 + $0x308] sm:$0xf0] }
 0x249   :  { %4047 = vmatpush.bf16.msra.mxu3 %v6032_v8  ;;  %v3066_v41 = vadd.f32 %v7378_v13, %v1403_v36  ;;  %v6216_v13 = vor.u32 %v6881_v37, %v6213_v40  ;;  %v6304_v8 = vor.u32 %v6903_v7, %v6301_v59  ;;  %v6927_v37 = vld [vmem:[#allocation13 + $0x70] sm:$0xff]  ;;  %v6926_v40 = vld [vmem:[#allocation13 + $0x68] sm:$0xff] }
 0x24a   :  { %4023 = vmatmul.bf16.vlgmr.msra.gmra.mxu1 %v7346_v63 }
 0x24b   :  { %4071 = vmatpush.bf16.msrb.mxu1 %v6176_v45  ;;  %v3079_v55 = vadd.f32 %v7390_v39, %v3066_v41 }
 0x24d   :  { %4048 = vmatpush.bf16.msra.mxu3 %v6024_v49 }
 0x24f   :  { %4072 = vmatpush.bf16.msrb.mxu1 %v6168_v50  ;;  %v3920_v58 = vpop.f32.mrf.mxu1 }
 0x250   :  { %v3921_v63 = vadd.f32 %v3920_v58, %v3908_v62  ;;  %v6328_v62 = vor.u32 %v6909_v53, %v6325_v42 }
 0x253   :  { %v3052_v5 = vpop.f32.mrf.mxu3  ;;  %v3091_v10 = vpop.f32.mrf.mxu2  ;;  %4073 = vmatpush.bf16.msrb.mxu1 %v6160_v22  ;;  %v6905_v22 = vld [vmem:[#allocation11 + $0x3c4] sm:$0xf] }
 0x254   :  { %v3053_v27 = vadd.f32 %v3052_v5, %v3040_v4  ;;  %v3092_v45 = vadd.f32 %v3091_v10, %v3079_v55  ;;  %v6317_v4 = vld [vmem:[#allocation11 + $0x3d8] sm:$0xf0]  ;;  %v6309_v5 = vld [vmem:[#allocation11 + $0x3c8] sm:$0xf0] }
 0x255   :  { %v6320_v58 = vor.u32 %v6907_v3, %v6317_v4  ;;  %v6293_v10 = vld [vmem:[#allocation11 + $0x3a8] sm:$0xf0] }
 0x256   :  { %v3114_v15 = vmax.f32 %v3053_v27, 0.0  ;;  %v6901_v27 = vld [vmem:[#allocation11 + $0x3a4] sm:$0xf] }
 0x257   :  { %4074 = vmatpush.bf16.msrb.mxu1 %v6152_v16  ;;  %v3922_v23 = vpop.f32.mrf.mxu1  ;;  %v6296_v11 = vor.u32 %v6901_v27, %v6293_v10  ;;  %v6897_v16 = vld [vmem:[#allocation11 + $0x384] sm:$0xf] }
 0x258   :  { %v3122_v18 = vpack.c.bf16 %v3114_v15, %v3114_v15 }
 0x25a   :  { %3984 = vmatmul.bf16.vlgmr.msrb.gmra.mxu2 %v3122_v18  ;;  %4075 = vmatmul.bf16.vlgmr.msrb.gmra.mxu1 %v7396_v6  ;;  %v6232_v6 = vor.u32 %v6885_v2, %v6229_v35  ;;  %v6917_v2 = vld [vmem:[#allocation13 + $0x20] sm:$0xff]  ;;  %v6916_v35 = vld [vmem:[#allocation13 + $0x18] sm:$0xff] }
 0x25b   :  { %v3054_v56 = vpop.f32.mrf.mxu3  ;;  %4080 = vmatpush.bf16.msrb.mxu2 %v6272_v17  ;;  %v3093_v29 = vpop.f32.mrf.mxu2  ;;  %v6277_v17 = vld [vmem:[#allocation11 + $0x388] sm:$0xf0]  ;;  %4255 = vmatpush.bf16.msra.mxu1 %v6928_v57 }
 0x25f   :  { %4081 = vmatpush.bf16.msrb.mxu2 %v6264_v26  ;;  %4256 = vmatpush.bf16.msra.mxu1 %v6927_v37 }
 0x263   :  { %4082 = vmatpush.bf16.msrb.mxu2 %v6256_v30  ;;  %4257 = vmatpush.bf16.msra.mxu1 %v6926_v40 }
 0x267   :  { %4083 = vmatpush.bf16.msrb.mxu2 %v6248_v31  ;;  %v6919_v31 = vld [vmem:[#allocation13 + $0x30] sm:$0xff] }
 0x268   :  { %4243 = vmatpush.bf16.msra.mxu0 %v6919_v31 }
 0x26a   :  { %4036 = vmatmul.bf16.vlgmr.msra.gmra.mxu2 %v7357_v24 }
 0x26b   :  { %4084 = vmatpush.bf16.msrb.mxu2 %v6240_v38 }
 0x26c   :  { %4244 = vmatpush.bf16.msra.mxu0 %v6918_v32 }
 0x26f   :  { %4085 = vmatpush.bf16.msrb.mxu2 %v6232_v6  ;;  %v6915_v6 = vld [vmem:[#allocation13 + $0x10] sm:$0xff] }
 0x270   :  { %4245 = vmatpush.bf16.msra.mxu0 %v6917_v2 }
 0x273   :  { %v3104_v1 = vpop.f32.mrf.mxu3  ;;  %v3933_v60 = vpop.f32.mrf.mxu2  ;;  %4086 = vmatpush.bf16.msrb.mxu2 %v6224_v46 }
 0x274   :  { %v3105_v47 = vadd.f32 %v3104_v1, %v3092_v45  ;;  %v3934_v50 = vadd.f32 %v3933_v60, %v3921_v63  ;;  %v6312_v63 = vor.u32 %v6905_v22, %v6309_v5  ;;  %4246 = vmatpush.bf16.msra.mxu0 %v6916_v35  ;;  %v6913_v45 = vld [vmem:[#allocation13] sm:$0xff] }
 0x275   :  { %v6925_v60 = vld [vmem:[#allocation13 + $0x60] sm:$0xff] }
 0x276   :  { %v3115_v24 = vmax.f32 %v3105_v47, 0.0  ;;  %4258 = vmatpush.bf16.msra.mxu1 %v6925_v60 }
 0x277   :  { %4087 = vmatpush.bf16.msrb.mxu2 %v6216_v13 }
 0x278   :  { %v3123_v52 = vpack.c.bf16 %v3115_v24, %v3115_v24  ;;  %4247 = vmatpush.bf16.msra.mxu0 %v6915_v6 }
 0x27a   :  { %3997 = vmatmul.bf16.vlgmr.msrb.gmra.mxu3 %v3123_v52  ;;  %4088 = vmatmul.bf16.vlgmr.msrb.gmra.mxu2 %v3122_v18  ;;  %v6280_v18 = vor.u32 %v6897_v16, %v6277_v17  ;;  %v6945_v16 = vld [vmem:[%s7432_s8] ss:$0 sm:$0xff] }
 0x27b   :  { %v3106_v39 = vpop.f32.mrf.mxu3  ;;  %4093 = vmatpush.bf16.msrb.mxu3 %v6336_v54  ;;  %v3935_v0 = vpop.f32.mrf.mxu2  ;;  %4259 = vmatpush.bf16.msra.mxu1 %v6924_v20  ;;  %v6922_v54 = vld [vmem:[#allocation13 + $0x48] sm:$0xff] }
 0x27c   :  { %4248 = vmatpush.bf16.msra.mxu0 %v6914_v44 }
 0x27f   :  { %4094 = vmatpush.bf16.msrb.mxu3 %v6328_v62  ;;  %4260 = vmatpush.bf16.msra.mxu1 %v6923_v48  ;;  %v6921_v62 = vld [vmem:[#allocation13 + $0x40] sm:$0xff] }
 0x280   :  { %4249 = vmatpush.bf16.msra.mxu0 %v6913_v45 }
 0x283   :  { %4095 = vmatpush.bf16.msrb.mxu3 %v6320_v58  ;;  %4261 = vmatpush.bf16.msra.mxu1 %v6922_v54 }
 0x287   :  { %4096 = vmatpush.bf16.msrb.mxu3 %v6312_v63  ;;  %4262 = vmatpush.bf16.msra.mxu1 %v6921_v62 }
 0x28a   :  { %4049 = vmatmul.bf16.vlgmr.msra.gmra.mxu3 %v7369_v25 }
 0x28b   :  { %4097 = vmatpush.bf16.msrb.mxu3 %v6304_v8 }
 0x28f   :  { %4098 = vmatpush.bf16.msrb.mxu3 %v6296_v11 }
 0x293   :  { %v3946_v15 = vpop.f32.mrf.mxu3  ;;  %4099 = vmatpush.bf16.msrb.mxu3 %v6288_v9 }
 0x294   :  { %v3947_v49 = vadd.f32 %v3946_v15, %v3934_v50 }
 0x297   :  { %4100 = vmatpush.bf16.msrb.mxu3 %v6280_v18  ;;  %v3959_v21 = vpop.f32.mrf.mxu0 }
 0x298   :  { %v3960_v23 = vadd.f32 %v3959_v21, %v3947_v49 }
 0x29a   :  { %4101 = vmatmul.bf16.vlgmr.msrb.gmra.mxu3 %v3123_v52 }
 0x29b   :  { %v3948_v19 = vpop.f32.mrf.mxu3 }
 0x29f   :  { %v3961_v56 = vpop.f32.mrf.mxu0 }
 0x2a7   :  { %v4011_v26 = vpop.f32.mrf.mxu0 }
 0x2a8   :  { %v4012_v34 = vadd.f32 %v4011_v26, %v3255_v28 }
 0x2af   :  { %v4013_v25 = vpop.f32.mrf.mxu0 }
 0x2b7   :  { %v3972_v29 = vpop.f32.mrf.mxu1  ;;  %v4063_v14 = vpop.f32.mrf.mxu0 }
 0x2b8   :  { %v3973_v24 = vadd.f32 %v3972_v29, %v3960_v23 }
 0x2bf   :  { %v3974_v30 = vpop.f32.mrf.mxu1  ;;  %v4065_v61 = vpop.f32.mrf.mxu0 }
 0x2c7   :  { %v4024_v36 = vpop.f32.mrf.mxu1 }
 0x2c8   :  { %v4025_v38 = vadd.f32 %v4024_v36, %v4012_v34 }
 0x2cf   :  { %v4026_v41 = vpop.f32.mrf.mxu1 }
 0x2d7   :  { %v4076_v51 = vpop.f32.mrf.mxu1 }
 0x2dd   :  { %v3985_v55 = vpop.f32.mrf.mxu2 }
 0x2de   :  { %v3986_v13 = vadd.f32 %v3985_v55, %v3973_v24 }
 0x2df   :  { %v4078_v46 = vpop.f32.mrf.mxu1 }
 0x2e5   :  { %v3987_v1 = vpop.f32.mrf.mxu2 }
 0x2ed   :  { %v4037_v47 = vpop.f32.mrf.mxu2 }
 0x2ee   :  { %v4038_v22 = vadd.f32 %v4037_v47, %v4025_v38 }
 0x2f5   :  { %v4039_v50 = vpop.f32.mrf.mxu2 }
 0x2fd   :  { %v3998_v52 = vpop.f32.mrf.mxu3  ;;  %v4089_v39 = vpop.f32.mrf.mxu2 }
 0x2fe   :  { %v3999_v53 = vadd.f32 %v3998_v52, %v3986_v13 }
 0x300   :  { %v4106_v42 = vmax.f32 %v3999_v53, 0.0 }
 0x302   :  { %v4108_v0 = vpack.c.bf16 %v4106_v42, %v4106_v42 }
 0x304   :  { %4250 = vmatmul.bf16.vlgmr.msra.gmra.mxu0 %v4108_v0 }
 0x305   :  { %v4000_v3 = vpop.f32.mrf.mxu3  ;;  %v4091_v4 = vpop.f32.mrf.mxu2 }
 0x30d   :  { %v4050_v58 = vpop.f32.mrf.mxu3 }
 0x30e   :  { %v4051_v5 = vadd.f32 %v4050_v58, %v4038_v22 }
 0x310   :  { %v4064_v63 = vadd.f32 %v4063_v14, %v4051_v5 }
 0x312   :  { %v4077_v59 = vadd.f32 %v4076_v51, %v4064_v63 }
 0x314   :  { %v4090_v8 = vadd.f32 %v4089_v39, %v4077_v59 }
 0x315   :  { %v4052_v7 = vpop.f32.mrf.mxu3 }
 0x31d   :  { %v4102_v27 = vpop.f32.mrf.mxu3 }
 0x31e   :  { %v4103_v10 = vadd.f32 %v4102_v27, %v4090_v8 }
 0x320   :  { %v4107_v11 = vmax.f32 %v4103_v10, 0.0 }
 0x322   :  { %v4109_v33 = vpack.c.bf16 %v4107_v11, %v4107_v11 }
 0x324   :  { %4263 = vmatmul.bf16.vlgmr.msra.gmra.mxu1 %v4109_v33 }
 0x325   :  { %v4104_v12 = vpop.f32.mrf.mxu3 }
 0x381   :  { %v4251_v9 = vpop.f32.mrf.mxu0 }
 0x382   :  { %v4252_v17 = vadd.f32 %v6945_v16, %v4251_v9 }
 0x389   :  { %v4253_v15 = vpop.f32.mrf.mxu0 }
 0x3a1   :  { %v4264_v49 = vpop.f32.mrf.mxu1 }
 0x3a2   :  { %v4265_v18 = vadd.f32 %v4264_v49, %v4252_v17 }
 0x3a4   :  { %4268 = vst [vmem:[#allocation14] sm:$0xff] %v4265_v18 }
 0x3a5   :  { %4279 = dma.vmem_to_hbm [thread:$0]  %s4275_s27, 128, %s4277_s29, [#allocation4]  }
 0x3a9   :  { %v4266_v19 = vpop.f32.mrf.mxu1 }
 0x3aa   :  { %7147 = dma.done.wait [#allocation4], 128  }
 0x3ab   :  { %7148 = vsyncadd [#allocation4], 4294967168 }
 0x3ac   :  { %4284 = vsyncpa [#allocation3], 1 }
 0x3ad   :  { %4285 = vsyncpa [#allocation6], 1 }
 0x3ae   :  { %4286 = vsyncpa [#allocation9], 1 }
 0x3af   :  { %4287 = vsyncpa [#allocation12], 1 }
 0x3b0   :  { %4288 = vsyncpa [#allocation4], 1 }

</bundles_post_ra>
